<compile_context>
chip_gen: v7x
topology: tpu7x:2x2x1
jax: 0.10.0
libtpu: 0.0.40
codegen_flags: <defaults>
</compile_context>

<pallas_src>
import numpy as np
import jax
import jax.numpy as jnp
from jax import lax
from jax.experimental import pallas as pl
from jax.experimental.pallas import tpu as pltpu

LN_EPS = 1e-5  # torch.nn.LayerNorm default eps


def _round_up(x, m):
    return ((x + m - 1) // m) * m


def _layernorm(v, gamma, beta):
    mu = jnp.mean(v, axis=-1, keepdims=True)
    d = v - mu
    var = jnp.mean(d * d, axis=-1, keepdims=True)
    return d * lax.rsqrt(var + LN_EPS) * gamma + beta


def _silu(v):
    return v * jax.nn.sigmoid(v)


# --------------------------------------------------------------------------
# Kernel A: edge pass.  Per (core, edge-tile): build one-hots from indices,
# one fused MXU dot -> [m | Bh_src], gating, edge output, scatter partial sums.
# --------------------------------------------------------------------------
def egc_edge_kernel(
    h_ref,        # [N, F]   f32 node features (resident)
    e_ref,        # [TE, F]  f32 edge-feature tile
    src_ref,      # [TE, 1]  i32 source node index per edge (-1 = padding)
    dst_ref,      # [TE, 1]  i32 destination node index per edge (-1 = padding)
    dstT_ref,     # [1, TE]  i32 destination index, lane-major (for the scatter)
    w_node_ref,   # [F, 3O]  bf16 fused [src_gate | dst_gate | dst_update]
    b_node_ref,   # [1, 3O]  f32 fused biases
    w_eg_ref,     # [F, O]   bf16 edge_gate weight
    vec_ref,      # [8, O]   f32 rows: 0 b_eg, 1 bn_edges gamma, 2 bn_edges beta
    xpart_ref,    # [N, 2O]  f32 per-core partial accumulator [sum_sigma_h | sum_sigma]
    y_ref,        # [TE, O]  f32 edge output tile
    wbig_ref,     # scratch bf16 [2N+F, 2O]  block-structured fused weight
    abuf_ref,     # scratch bf16 [TE, 2N+F]  fused operand assembly
    scat_ref,     # scratch bf16 [TE, 2O]    scatter operand assembly
):
    f32 = jnp.float32
    bf16 = jnp.bfloat16
    N, F = h_ref.shape
    TE, O = y_ref.shape
    i = pl.program_id(1)

    # ---- once per core: project nodes, assemble the block weight, zero partials
    @pl.when(i == 0)
    def _init():
        hp = jnp.dot(h_ref[...].astype(bf16), w_node_ref[...],
                     preferred_element_type=f32) + b_node_ref[...]     # [N, 3O]
        hp = hp.astype(bf16)
        wbig_ref[...] = jnp.zeros_like(wbig_ref)
        # rows 0:N      -> [src_gate(h)   | dst_update(h)]
        # rows N:2N     -> [dst_gate(h)   | 0            ]
        # rows 2N:2N+F  -> [w_edge_gate   | 0            ]
        wbig_ref[0:N, 0:O] = hp[:, 0:O]
        wbig_ref[0:N, O:2 * O] = hp[:, 2 * O:3 * O]
        wbig_ref[N:2 * N, 0:O] = hp[:, O:2 * O]
        wbig_ref[2 * N:2 * N + F, 0:O] = w_eg_ref[...]
        xpart_ref[...] = jnp.zeros_like(xpart_ref)

    # ---- in-kernel one-hot construction (index -1 -> all-zero row/column)
    lane_iota = lax.broadcasted_iota(jnp.int32, (TE, N), 1)
    S = jnp.where(lane_iota == src_ref[...], 1.0, 0.0).astype(bf16)    # [TE, N]
    D = jnp.where(lane_iota == dst_ref[...], 1.0, 0.0).astype(bf16)    # [TE, N]

    e = e_ref[...]
    abuf_ref[:, 0:N] = S
    abuf_ref[:, N:2 * N] = D
    abuf_ref[:, 2 * N:2 * N + F] = e.astype(bf16)

    # ---- single fused forward matmul: [S | D | e] @ W_big -> [m_pre | Bh_src]
    fused = jnp.dot(abuf_ref[...], wbig_ref[...], preferred_element_type=f32)
    m = fused[:, 0:O] + vec_ref[0:1, :]          # + edge_gate bias
    bh_src = fused[:, O:2 * O]
    sigma = jax.nn.sigmoid(m)

    # ---- scatter-add of [sigma*Bh | sigma] into the per-core node partials
    scat_ref[:, 0:O] = (bh_src * sigma).astype(bf16)
    scat_ref[:, O:2 * O] = sigma.astype(bf16)
    sub_iota = lax.broadcasted_iota(jnp.int32, (N, TE), 0)
    DT = jnp.where(sub_iota == dstT_ref[...], 1.0, 0.0).astype(bf16)   # [N, TE]
    xpart_ref[...] += jnp.dot(DT, scat_ref[...], preferred_element_type=f32)

    # ---- edge output: y = e + silu(LayerNorm(m))
    y_ref[...] = e + _silu(_layernorm(m, vec_ref[1:2, :], vec_ref[2:3, :]))


# --------------------------------------------------------------------------
# Kernel B: node finalize.  Combine per-core partials, exact division,
# src_update projection, LayerNorm, SiLU, residual.
# --------------------------------------------------------------------------
def egc_node_kernel(h_ref, part_ref, w_su_ref, vec_ref, x_ref):
    f32 = jnp.float32
    O = x_ref.shape[1]
    parts = jnp.sum(part_ref[...], axis=0)                 # [N, 2O]
    h_agg = parts[:, 0:O] / (parts[:, O:2 * O] + 1e-6)      # exact division
    su = jnp.dot(h_ref[...].astype(jnp.bfloat16), w_su_ref[...],
                 preferred_element_type=f32) + vec_ref[0:1, :]
    x = su + h_agg
    x_ref[...] = h_ref[...] + _silu(_layernorm(x, vec_ref[1:2, :], vec_ref[2:3, :]))


# --------------------------------------------------------------------------
# Wrapper for one EdgeGatedGraphConv layer
# --------------------------------------------------------------------------
def _pick_tile_e(E, N, F, O, target):
    """Largest edge tile (multiple of 128) that keeps the working set in VMEM."""
    te = max(128, min(_round_up(target, 128), _round_up(max(E, 1), 128)))
    budget = 40 * 1024 * 1024

    def est(t):
        resident = (N * F * 4) * 2 + (2 * N + F) * 2 * O * 2 \
            + N * 2 * O * 4 * 2 + F * 4 * O * 2 + 8 * O * 4
        streamed = 2 * t * (F * 4 + 4 + 4 + 4 + O * 4)       # double-buffered tiles
        scratch = t * (2 * N + F) * 2 + t * 2 * O * 2
        return resident + streamed + scratch

    while te > 128 and est(te) > budget:
        te -= 128
    return te


def edge_gated_graph_conv(node_feats, edge_feats, src_idx, dst_idx, params, *,
                          tile_e=512, core_splits=2):
    """One EdgeGatedGraphConv layer (residual=True, in_features == out_features)."""
    N0, F = node_feats.shape
    E0 = edge_feats.shape[0]
    O = params["w_eg"].shape[1]
    assert F == O, "residual EdgeGatedGraphConv requires in_features == out_features"

    N = _round_up(N0, 8)
    h = jnp.pad(node_feats, ((0, N - N0), (0, 0)))

    te = _pick_tile_e(E0, N, F, O, tile_e)
    C = core_splits                                   # >1 only pays off on v7x (2 TCs)
    tiles = max(1, (E0 + te - 1) // te)
    T = (tiles + C - 1) // C                          # edge tiles per core
    E_pad = C * T * te

    e = jnp.pad(edge_feats, ((0, E_pad - E0), (0, 0)))
    src = src_idx.astype(jnp.int32)
    dst = dst_idx.astype(jnp.int32)
    pad_ids = jnp.full((E_pad - E0,), -1, jnp.int32)   # -1 => all-zero one-hot row
    src_p = jnp.concatenate([src, pad_ids])
    dst_p = jnp.concatenate([dst, pad_ids])
    src_col = src_p.reshape(E_pad, 1)
    dst_col = dst_p.reshape(E_pad, 1)
    dst_row = dst_p.reshape(1, E_pad)

    w_node = params["w_node3"].astype(jnp.bfloat16)
    w_eg = params["w_eg"].astype(jnp.bfloat16)
    w_su = params["w_su"].astype(jnp.bfloat16)

    def etile(c, i):
        return (c * T + i, 0)

    def etile_row(c, i):
        return (0, c * T + i)

    x_part, y_out = pl.pallas_call(
        egc_edge_kernel,
        out_shape=(
            jax.ShapeDtypeStruct((C, N, 2 * O), jnp.float32),
            jax.ShapeDtypeStruct((E_pad, O), jnp.float32),
        ),
        grid_spec=pltpu.PrefetchScalarGridSpec(
            num_scalar_prefetch=0,
            grid=(C, T),
            in_specs=[
                pl.BlockSpec((N, F), lambda c, i: (0, 0)),         # node feats (resident)
                pl.BlockSpec((te, F), etile),                      # edge feature tile
                pl.BlockSpec((te, 1), etile),                      # src indices
                pl.BlockSpec((te, 1), etile),                      # dst indices
                pl.BlockSpec((1, te), etile_row),                  # dst indices (lane-major)
                pl.BlockSpec((F, 3 * O), lambda c, i: (0, 0)),     # fused node weights
                pl.BlockSpec((1, 3 * O), lambda c, i: (0, 0)),     # fused node biases
                pl.BlockSpec((F, O), lambda c, i: (0, 0)),         # edge_gate weight
                pl.BlockSpec((8, O), lambda c, i: (0, 0)),         # b_eg / LN(edges) vectors
            ],
            out_specs=(
                pl.BlockSpec((None, N, 2 * O), lambda c, i: (c, 0, 0)),  # per-core partials
                pl.BlockSpec((te, O), etile),                            # edge output tile
            ),
            scratch_shapes=[
                pltpu.VMEM((2 * N + F, 2 * O), jnp.bfloat16),   # block weight
                pltpu.VMEM((te, 2 * N + F), jnp.bfloat16),      # fused operand
                pltpu.VMEM((te, 2 * O), jnp.bfloat16),          # scatter operand
            ],
        ),
        compiler_params=pltpu.CompilerParams(
            # edge-tile axis is the reduction axis for the per-core accumulator;
            # the core-split axis is parallel (maps to both TCs on v7x).
            dimension_semantics=("parallel", "arbitrary"),
            vmem_limit_bytes=48 * 1024 * 1024,
        ),
    )(h, e, src_col, dst_col, dst_row, w_node, params["b_node3"], w_eg,
      params["vecs_edge"])

    x_out = pl.pallas_call(
        egc_node_kernel,
        out_shape=jax.ShapeDtypeStruct((N, O), jnp.float32),
        grid_spec=pltpu.PrefetchScalarGridSpec(
            num_scalar_prefetch=0,
            grid=(1,),
            in_specs=[
                pl.BlockSpec((N, F), lambda i: (0, 0)),
                pl.BlockSpec((C, N, 2 * O), lambda i: (0, 0, 0)),
                pl.BlockSpec((F, O), lambda i: (0, 0)),
                pl.BlockSpec((8, O), lambda i: (0, 0)),
            ],
            out_specs=pl.BlockSpec((N, O), lambda i: (0, 0)),
        ),
        compiler_params=pltpu.CompilerParams(
            dimension_semantics=("arbitrary",),
            vmem_limit_bytes=32 * 1024 * 1024,
        ),
    )(h, x_part, w_su, params["vecs_node"])

    return x_out[:N0], y_out[:E0]


def alignn_conv(x, y, z, g_src, g_dst, lg_src, lg_dst,
                node_update_params, edge_update_params):
    """ALIGNNConv.forward:  x, m = node_update(g, x, y); y, z = edge_update(lg, m, z)."""
    x_new, m = edge_gated_graph_conv(x, y, g_src, g_dst, node_update_params)
    y_new, z_new = edge_gated_graph_conv(m, z, lg_src, lg_dst, edge_update_params)
    return x_new, y_new, z_new


# --------------------------------------------------------------------------
# Parameter init (mimics torch.nn.Linear uniform +/- 1/sqrt(fan_in)), fused layout
# --------------------------------------------------------------------------
def init_egc_params(key, in_f, out_f):
    keys = jax.random.split(key, 10)
    bound = 1.0 / np.sqrt(in_f)

    def lin(kw, kb):
        w = jax.random.uniform(kw, (in_f, out_f), jnp.float32, -bound, bound)
        b = jax.random.uniform(kb, (out_f,), jnp.float32, -bound, bound)
        return w, b

    w_sg, b_sg = lin(keys[0], keys[1])   # src_gate
    w_dg, b_dg = lin(keys[2], keys[3])   # dst_gate
    w_eg, b_eg = lin(keys[4], keys[5])   # edge_gate
    w_su, b_su = lin(keys[6], keys[7])   # src_update
    w_du, b_du = lin(keys[8], keys[9])   # dst_update

    # fused node-side projection, column order: [src_gate | dst_gate | dst_update]
    w_node3 = jnp.concatenate([w_sg, w_dg, w_du], axis=1)        # [F, 3O]
    b_node3 = jnp.concatenate([b_sg, b_dg, b_du])[None, :]       # [1, 3O]

    vecs_edge = jnp.zeros((8, out_f), jnp.float32)
    vecs_edge = vecs_edge.at[0].set(b_eg)            # edge_gate bias
    vecs_edge = vecs_edge.at[1].set(1.0)             # bn_edges gamma
    vecs_edge = vecs_edge.at[2].set(0.0)             # bn_edges beta

    vecs_node = jnp.zeros((8, out_f), jnp.float32)
    vecs_node = vecs_node.at[0].set(b_su)            # src_update bias
    vecs_node = vecs_node.at[1].set(1.0)             # bn_nodes gamma
    vecs_node = vecs_node.at[2].set(0.0)             # bn_nodes beta

    return dict(w_node3=w_node3, b_node3=b_node3, w_eg=w_eg, w_su=w_su,
                vecs_edge=vecs_edge, vecs_node=vecs_node)


# --------------------------------------------------------------------------
# Pure-JAX f32 reference (for tolerance check)
# --------------------------------------------------------------------------
def egc_reference(h, e, src, dst, p):
    O = p["w_eg"].shape[1]
    w3, b3 = p["w_node3"], p["b_node3"][0]
    e_src = h @ w3[:, 0:O] + b3[0:O]
    e_dst = h @ w3[:, O:2 * O] + b3[O:2 * O]
    bh = h @ w3[:, 2 * O:3 * O] + b3[2 * O:3 * O]
    m = e_src[src] + e_dst[dst] + e @ p["w_eg"] + p["vecs_edge"][0]
    sigma = jax.nn.sigmoid(m)
    n = h.shape[0]
    sum_sh = jnp.zeros((n, O), jnp.float32).at[dst].add(bh[src] * sigma)
    sum_s = jnp.zeros((n, O), jnp.float32).at[dst].add(sigma)
    h_agg = sum_sh / (sum_s + 1e-6)
    su = h @ p["w_su"] + p["vecs_node"][0]

    def ln(v, g, b):
        mu = v.mean(-1, keepdims=True)
        var = ((v - mu) ** 2).mean(-1, keepdims=True)
        return (v - mu) * jax.lax.rsqrt(var + LN_EPS) * g + b

    x = h + jax.nn.silu(ln(su + h_agg, p["vecs_node"][1], p["vecs_node"][2]))
    y = e + jax.nn.silu(ln(m, p["vecs_edge"][1], p["vecs_edge"][2]))
    return x, y


if __name__ == "__main__":
    # Small deterministic graph: bidirectional ring of N nodes.
    N = 8
    HIDDEN = 32  # in_features == out_features (required for residual adds)

    src = np.concatenate([np.arange(N), (np.arange(N) + 1) % N]).astype(np.int32)
    dst = np.concatenate([(np.arange(N) + 1) % N, np.arange(N)]).astype(np.int32)
    E = src.shape[0]  # 16

    # Line graph: node per edge of g; connect e1 -> e2 whenever dst(e1) == src(e2).
    lg_src_list, lg_dst_list = [], []
    for e1 in range(E):
        for e2 in range(E):
            if dst[e1] == src[e2]:
                lg_src_list.append(e1)
                lg_dst_list.append(e2)
    lg_src = np.array(lg_src_list, dtype=np.int32)
    lg_dst = np.array(lg_dst_list, dtype=np.int32)
    E_LG = lg_src.shape[0]  # 32

    key = jax.random.PRNGKey(0)
    kx, ky, kz, kp1, kp2 = jax.random.split(key, 5)
    x = jax.random.normal(kx, (N, HIDDEN), jnp.float32)      # node features
    y = jax.random.normal(ky, (E, HIDDEN), jnp.float32)      # edge features
    z = jax.random.normal(kz, (E_LG, HIDDEN), jnp.float32)   # triplet features

    node_update_params = init_egc_params(kp1, HIDDEN, HIDDEN)
    edge_update_params = init_egc_params(kp2, HIDDEN, HIDDEN)

    x_out, y_out, z_out = jax.jit(alignn_conv)(
        x, y, z, jnp.asarray(src), jnp.asarray(dst),
        jnp.asarray(lg_src), jnp.asarray(lg_dst),
        node_update_params, edge_update_params,
    )
    jax.block_until_ready((x_out, y_out, z_out))

    # Reference check (f32 JAX); bf16 MXU operands give ~1e-2 relative deviation.
    x_ref, m_ref = egc_reference(x, y, src, dst, node_update_params)
    y_ref, z_ref = egc_reference(m_ref, z, lg_src, lg_dst, edge_update_params)

    assert x_out.shape == (N, HIDDEN)
    assert y_out.shape == (E, HIDDEN)
    assert z_out.shape == (E_LG, HIDDEN)
    for got, ref in ((x_out, x_ref), (y_out, y_ref), (z_out, z_ref)):
        assert bool(jnp.all(jnp.isfinite(got)))
        assert float(jnp.max(jnp.abs(got - ref))) < 0.25
    print("KERNEL_OK")
</pallas_src>

<mosaic_0001>
module attributes {stable_mosaic.version = 11 : i64} {
  func.func @egc_node_kernel(%arg0: i32, %arg1: memref<8x32xf32, #tpu.memory_space<vmem>>, %arg2: memref<2x8x64xf32, #tpu.memory_space<vmem>>, %arg3: memref<32x32xbf16, #tpu.memory_space<vmem>>, %arg4: memref<8x32xf32, #tpu.memory_space<vmem>>, %arg5: memref<8x32xf32, #tpu.memory_space<vmem>>) attributes {dimension_semantics = [#tpu.dimension_semantics<arbitrary>], iteration_bounds = array<i64: 1>, scalar_prefetch = 0 : i64, scratch_operands = 0 : i64, tpu.core_type = #tpu.core_type<tc>, window_params = [{pipeline_mode = #tpu.pipeline_mode<synchronous>, transform_indices = @transform_0, window_bounds = array<i64: 8, 32>}, {pipeline_mode = #tpu.pipeline_mode<synchronous>, transform_indices = @transform_1, window_bounds = array<i64: 2, 8, 64>}, {pipeline_mode = #tpu.pipeline_mode<synchronous>, transform_indices = @transform_2, window_bounds = array<i64: 32, 32>}, {pipeline_mode = #tpu.pipeline_mode<synchronous>, transform_indices = @transform_3, window_bounds = array<i64: 8, 32>}, {pipeline_mode = #tpu.pipeline_mode<synchronous>, transform_indices = @transform_4, window_bounds = array<i64: 8, 32>}]} {
    %c0 = arith.constant 0 : index
    %c0_0 = arith.constant 0 : index
    %c0_1 = arith.constant 0 : index
    %0 = vector.load %arg2[%c0, %c0_0, %c0_1] : memref<2x8x64xf32, #tpu.memory_space<vmem>>, vector<2x8x64xf32>
    %cst = arith.constant dense<0.000000e+00> : vector<8x64xf32>
    %1 = vector.multi_reduction <add>, %0, %cst [0] : vector<2x8x64xf32> to vector<8x64xf32>
    %2 = vector.extract_strided_slice %1 {offsets = [0, 0], sizes = [8, 32], strides = [1, 1]} : vector<8x64xf32> to vector<8x32xf32>
    %3 = vector.extract_strided_slice %1 {offsets = [0, 32], sizes = [8, 32], strides = [1, 1]} : vector<8x64xf32> to vector<8x32xf32>
    %cst_2 = arith.constant 9.99999997E-7 : f32
    %4 = vector.broadcast %cst_2 : f32 to vector<8x32xf32>
    %5 = arith.addf %3, %4 : vector<8x32xf32>
    %6 = arith.divf %2, %5 : vector<8x32xf32>
    %c0_3 = arith.constant 0 : index
    %c0_4 = arith.constant 0 : index
    %7 = vector.load %arg1[%c0_3, %c0_4] : memref<8x32xf32, #tpu.memory_space<vmem>>, vector<8x32xf32>
    %8 = arith.truncf %7 : vector<8x32xf32> to vector<8x32xbf16>
    %c0_5 = arith.constant 0 : index
    %c0_6 = arith.constant 0 : index
    %9 = vector.load %arg3[%c0_5, %c0_6] : memref<32x32xbf16, #tpu.memory_space<vmem>>, vector<32x32xbf16>
    %cst_7 = arith.constant dense<0.000000e+00> : vector<8x32xf32>
    %10 = tpu.matmul %8, %9, %cst_7 {dimension_numbers = #tpu.dot_dimension_numbers<[1], [0], [0], [1], [0, 0, 1, 1], [], []>} : vector<8x32xbf16>, vector<32x32xbf16>, vector<8x32xf32> -> vector<8x32xf32>
    %c0_8 = arith.constant 0 : index
    %c0_9 = arith.constant 0 : index
    %11 = vector.load %arg4[%c0_8, %c0_9] : memref<8x32xf32, #tpu.memory_space<vmem>>, vector<1x32xf32>
    %12 = vector.broadcast %11 : vector<1x32xf32> to vector<8x32xf32>
    %13 = arith.addf %10, %12 : vector<8x32xf32>
    %14 = arith.addf %13, %6 : vector<8x32xf32>
    %c0_10 = arith.constant 0 : index
    %c0_11 = arith.constant 0 : index
    %15 = vector.load %arg1[%c0_10, %c0_11] : memref<8x32xf32, #tpu.memory_space<vmem>>, vector<8x32xf32>
    %c1 = arith.constant 1 : index
    %c0_12 = arith.constant 0 : index
    %16 = vector.load %arg4[%c1, %c0_12] : memref<8x32xf32, #tpu.memory_space<vmem>>, vector<1x32xf32>
    %c2 = arith.constant 2 : index
    %c0_13 = arith.constant 0 : index
    %17 = vector.load %arg4[%c2, %c0_13] : memref<8x32xf32, #tpu.memory_space<vmem>>, vector<1x32xf32>
    %cst_14 = arith.constant dense<0.000000e+00> : vector<8xf32>
    %18 = vector.multi_reduction <add>, %14, %cst_14 [1] : vector<8x32xf32> to vector<8xf32>
    %19 = vector.shape_cast %18 : vector<8xf32> to vector<8x1xf32>
    %cst_15 = arith.constant 3.200000e+01 : f32
    %20 = vector.broadcast %cst_15 : f32 to vector<8x1xf32>
    %21 = arith.divf %19, %20 : vector<8x1xf32>
    %22 = vector.broadcast %21 : vector<8x1xf32> to vector<8x32xf32>
    %23 = arith.subf %14, %22 : vector<8x32xf32>
    %24 = arith.mulf %23, %23 : vector<8x32xf32>
    %cst_16 = arith.constant dense<0.000000e+00> : vector<8xf32>
    %25 = vector.multi_reduction <add>, %24, %cst_16 [1] : vector<8x32xf32> to vector<8xf32>
    %26 = vector.shape_cast %25 : vector<8xf32> to vector<8x1xf32>
    %cst_17 = arith.constant 3.200000e+01 : f32
    %27 = vector.broadcast %cst_17 : f32 to vector<8x1xf32>
    %28 = arith.divf %26, %27 : vector<8x1xf32>
    %cst_18 = arith.constant 9.99999974E-6 : f32
    %29 = vector.broadcast %cst_18 : f32 to vector<8x1xf32>
    %30 = arith.addf %28, %29 : vector<8x1xf32>
    %31 = math.rsqrt %30 : vector<8x1xf32>
    %32 = vector.broadcast %31 : vector<8x1xf32> to vector<8x32xf32>
    %33 = arith.mulf %23, %32 : vector<8x32xf32>
    %34 = vector.broadcast %16 : vector<1x32xf32> to vector<8x32xf32>
    %35 = arith.mulf %33, %34 : vector<8x32xf32>
    %36 = vector.broadcast %17 : vector<1x32xf32> to vector<8x32xf32>
    %37 = arith.addf %35, %36 : vector<8x32xf32>
    %38 = arith.negf %37 : vector<8x32xf32>
    %39 = math.exp %38 : vector<8x32xf32>
    %cst_19 = arith.constant 1.000000e+00 : f32
    %40 = vector.broadcast %cst_19 : f32 to vector<8x32xf32>
    %41 = arith.addf %40, %39 : vector<8x32xf32>
    %42 = arith.divf %40, %41 : vector<8x32xf32>
    %43 = arith.mulf %37, %42 : vector<8x32xf32>
    %44 = arith.addf %15, %43 : vector<8x32xf32>
    %c0_20 = arith.constant 0 : index
    %c0_21 = arith.constant 0 : index
    %45 = vector.load %arg5[%c0_20, %c0_21] : memref<8x32xf32, #tpu.memory_space<vmem>>, vector<8x32xf32>
    tpu.vector_store %arg5[%c0_20, %c0_21], %44 {strides = array<i32>} : memref<8x32xf32, #tpu.memory_space<vmem>>, vector<8x32xf32>,
    return
  }
  func.func @transform_0(%arg0: i32) -> (i32, i32) {
    %c0_i32 = arith.constant 0 : i32
    %c0_i32_0 = arith.constant 0 : i32
    %c0_i32_1 = arith.constant 0 : i32
    return %c0_i32, %c0_i32_0 : i32, i32
  }
  func.func @transform_1(%arg0: i32) -> (i32, i32, i32) {
    %c0_i32 = arith.constant 0 : i32
    %c0_i32_0 = arith.constant 0 : i32
    %c0_i32_1 = arith.constant 0 : i32
    %c0_i32_2 = arith.constant 0 : i32
    return %c0_i32, %c0_i32_0, %c0_i32_1 : i32, i32, i32
  }
  func.func @transform_2(%arg0: i32) -> (i32, i32) {
    %c0_i32 = arith.constant 0 : i32
    %c0_i32_0 = arith.constant 0 : i32
    %c0_i32_1 = arith.constant 0 : i32
    return %c0_i32, %c0_i32_0 : i32, i32
  }
  func.func @transform_3(%arg0: i32) -> (i32, i32) {
    %c0_i32 = arith.constant 0 : i32
    %c0_i32_0 = arith.constant 0 : i32
    %c0_i32_1 = arith.constant 0 : i32
    return %c0_i32, %c0_i32_0 : i32, i32
  }
  func.func @transform_4(%arg0: i32) -> (i32, i32) {
    %c0_i32 = arith.constant 0 : i32
    %c0_i32_0 = arith.constant 0 : i32
    %c0_i32_1 = arith.constant 0 : i32
    return %c0_i32, %c0_i32_0 : i32, i32
  }
}

module attributes {stable_mosaic.version = 11 : i64} {
  func.func @egc_edge_kernel(%arg0: i32, %arg1: i32, %arg2: memref<8x32xf32, #tpu.memory_space<vmem>>, %arg3: memref<128x32xf32, #tpu.memory_space<vmem>>, %arg4: memref<128x1xi32, #tpu.memory_space<vmem>>, %arg5: memref<128x1xi32, #tpu.memory_space<vmem>>, %arg6: memref<1x128xi32, #tpu.memory_space<vmem>>, %arg7: memref<32x96xbf16, #tpu.memory_space<vmem>>, %arg8: memref<1x96xf32, #tpu.memory_space<vmem>>, %arg9: memref<32x32xbf16, #tpu.memory_space<vmem>>, %arg10: memref<8x32xf32, #tpu.memory_space<vmem>>, %arg11: memref<1x8x64xf32, #tpu.memory_space<vmem>>, %arg12: memref<128x32xf32, #tpu.memory_space<vmem>>, %arg13: memref<48x64xbf16, #tpu.memory_space<vmem>>, %arg14: memref<128x48xbf16, #tpu.memory_space<vmem>>, %arg15: memref<128x64xbf16, #tpu.memory_space<vmem>>) attributes {dimension_semantics = [#tpu.dimension_semantics<parallel>, #tpu.dimension_semantics<arbitrary>], iteration_bounds = array<i64: 2, 1>, scalar_prefetch = 0 : i64, scratch_operands = 3 : i64, tpu.core_type = #tpu.core_type<tc>, window_params = [{pipeline_mode = #tpu.pipeline_mode<synchronous>, transform_indices = @transform_0, window_bounds = array<i64: 8, 32>}, {transform_indices = @transform_1, window_bounds = array<i64: 128, 32>}, {transform_indices = @transform_2, window_bounds = array<i64: 128, 1>}, {transform_indices = @transform_3, window_bounds = array<i64: 128, 1>}, {transform_indices = @transform_4, window_bounds = array<i64: 1, 128>}, {pipeline_mode = #tpu.pipeline_mode<synchronous>, transform_indices = @transform_5, window_bounds = array<i64: 32, 96>}, {pipeline_mode = #tpu.pipeline_mode<synchronous>, transform_indices = @transform_6, window_bounds = array<i64: 1, 96>}, {pipeline_mode = #tpu.pipeline_mode<synchronous>, transform_indices = @transform_7, window_bounds = array<i64: 32, 32>}, {pipeline_mode = #tpu.pipeline_mode<synchronous>, transform_indices = @transform_8, window_bounds = array<i64: 8, 32>}, {transform_indices = @transform_9, window_bounds = array<i64: 1, 8, 64>}, {transform_indices = @transform_10, window_bounds = array<i64: 128, 32>}]} {
    %c0_i32 = arith.constant 0 : i32
    %0 = arith.cmpi eq, %arg1, %c0_i32 : i32
    %1 = arith.extui %0 : i1 to i32
    %c0_i32_0 = arith.constant 0 : i32
    %2 = arith.cmpi ne, %1, %c0_i32_0 : i32
    scf.if %2 {
      %c0_47 = arith.constant 0 : index
      %c0_48 = arith.constant 0 : index
      %87 = vector.load %arg2[%c0_47, %c0_48] : memref<8x32xf32, #tpu.memory_space<vmem>>, vector<8x32xf32>
      %88 = arith.truncf %87 : vector<8x32xf32> to vector<8x32xbf16>
      %c0_49 = arith.constant 0 : index
      %c0_50 = arith.constant 0 : index
      %89 = vector.load %arg7[%c0_49, %c0_50] : memref<32x96xbf16, #tpu.memory_space<vmem>>, vector<32x96xbf16>
      %cst_51 = arith.constant dense<0.000000e+00> : vector<8x96xf32>
      %90 = tpu.matmul %88, %89, %cst_51 {dimension_numbers = #tpu.dot_dimension_numbers<[1], [0], [0], [1], [0, 0, 1, 1], [], []>} : vector<8x32xbf16>, vector<32x96xbf16>, vector<8x96xf32> -> vector<8x96xf32>
      %c0_52 = arith.constant 0 : index
      %c0_53 = arith.constant 0 : index
      %91 = vector.load %arg8[%c0_52, %c0_53] : memref<1x96xf32, #tpu.memory_space<vmem>>, vector<1x96xf32>
      %92 = vector.broadcast %91 : vector<1x96xf32> to vector<8x96xf32>
      %93 = arith.addf %90, %92 : vector<8x96xf32>
      %94 = arith.truncf %93 : vector<8x96xf32> to vector<8x96xbf16>
      %cst_54 = arith.constant 0.000000e+00 : bf16
      %95 = vector.broadcast %cst_54 : bf16 to vector<48x64xbf16>
      %c0_55 = arith.constant 0 : index
      %c0_56 = arith.constant 0 : index
      %96 = vector.load %arg13[%c0_55, %c0_56] : memref<48x64xbf16, #tpu.memory_space<vmem>>, vector<48x64xbf16>
      tpu.vector_store %arg13[%c0_55, %c0_56], %95 {strides = array<i32>} : memref<48x64xbf16, #tpu.memory_space<vmem>>, vector<48x64xbf16>,
      %97 = vector.extract_strided_slice %94 {offsets = [0, 0], sizes = [8, 32], strides = [1, 1]} : vector<8x96xbf16> to vector<8x32xbf16>
      %c0_57 = arith.constant 0 : index
      %c0_58 = arith.constant 0 : index
      %98 = vector.load %arg13[%c0_57, %c0_58] : memref<48x64xbf16, #tpu.memory_space<vmem>>, vector<8x32xbf16>
      tpu.vector_store %arg13[%c0_57, %c0_58], %97 {strides = array<i32>} : memref<48x64xbf16, #tpu.memory_space<vmem>>, vector<8x32xbf16>,
      %99 = vector.extract_strided_slice %94 {offsets = [0, 64], sizes = [8, 32], strides = [1, 1]} : vector<8x96xbf16> to vector<8x32xbf16>
      %c0_59 = arith.constant 0 : index
      %c32_60 = arith.constant 32 : index
      %100 = vector.load %arg13[%c0_59, %c32_60] : memref<48x64xbf16, #tpu.memory_space<vmem>>, vector<8x32xbf16>
      tpu.vector_store %arg13[%c0_59, %c32_60], %99 {strides = array<i32>} : memref<48x64xbf16, #tpu.memory_space<vmem>>, vector<8x32xbf16>,
      %101 = vector.extract_strided_slice %94 {offsets = [0, 32], sizes = [8, 32], strides = [1, 1]} : vector<8x96xbf16> to vector<8x32xbf16>
      %c8_61 = arith.constant 8 : index
      %c0_62 = arith.constant 0 : index
      %102 = vector.load %arg13[%c8_61, %c0_62] : memref<48x64xbf16, #tpu.memory_space<vmem>>, vector<8x32xbf16>
      tpu.vector_store %arg13[%c8_61, %c0_62], %101 {strides = array<i32>} : memref<48x64xbf16, #tpu.memory_space<vmem>>, vector<8x32xbf16>,
      %c0_63 = arith.constant 0 : index
      %c0_64 = arith.constant 0 : index
      %103 = vector.load %arg9[%c0_63, %c0_64] : memref<32x32xbf16, #tpu.memory_space<vmem>>, vector<32x32xbf16>
      %c16_65 = arith.constant 16 : index
      %c0_66 = arith.constant 0 : index
      %104 = vector.load %arg13[%c16_65, %c0_66] : memref<48x64xbf16, #tpu.memory_space<vmem>>, vector<32x32xbf16>
      tpu.vector_store %arg13[%c16_65, %c0_66], %103 {strides = array<i32>} : memref<48x64xbf16, #tpu.memory_space<vmem>>, vector<32x32xbf16>,
      %cst_67 = arith.constant 0.000000e+00 : f32
      %105 = vector.broadcast %cst_67 : f32 to vector<8x64xf32>
      %c0_68 = arith.constant 0 : index
      %c0_69 = arith.constant 0 : index
      %c0_70 = arith.constant 0 : index
      %106 = vector.load %arg11[%c0_68, %c0_69, %c0_70] : memref<1x8x64xf32, #tpu.memory_space<vmem>>, vector<1x8x64xf32>
      %107 = vector.shape_cast %106 : vector<1x8x64xf32> to vector<8x64xf32>
      %108 = vector.shape_cast %105 : vector<8x64xf32> to vector<1x8x64xf32>
      tpu.vector_store %arg11[%c0_68, %c0_69, %c0_70], %108 {strides = array<i32>} : memref<1x8x64xf32, #tpu.memory_space<vmem>>, vector<1x8x64xf32>,
    } else {
    }
    %3 = tpu.iota {dimensions = array<i32: 1>} : vector<128x8xi32>
    %c0 = arith.constant 0 : index
    %c0_1 = arith.constant 0 : index
    %4 = vector.load %arg4[%c0, %c0_1] : memref<128x1xi32, #tpu.memory_space<vmem>>, vector<128x1xi32>
    %5 = vector.broadcast %4 : vector<128x1xi32> to vector<128x8xi32>
    %6 = arith.cmpi eq, %3, %5 : vector<128x8xi32>
    %cst = arith.constant 1.000000e+00 : f32
    %cst_2 = arith.constant 0.000000e+00 : f32
    %7 = vector.broadcast %cst : f32 to vector<128x8xf32>
    %8 = vector.broadcast %cst_2 : f32 to vector<128x8xf32>
    %9 = arith.select %6, %7, %8 : vector<128x8xi1>, vector<128x8xf32>
    %10 = arith.truncf %9 : vector<128x8xf32> to vector<128x8xbf16>
    %c0_3 = arith.constant 0 : index
    %c0_4 = arith.constant 0 : index
    %11 = vector.load %arg5[%c0_3, %c0_4] : memref<128x1xi32, #tpu.memory_space<vmem>>, vector<128x1xi32>
    %12 = vector.broadcast %11 : vector<128x1xi32> to vector<128x8xi32>
    %13 = arith.cmpi eq, %3, %12 : vector<128x8xi32>
    %cst_5 = arith.constant 1.000000e+00 : f32
    %cst_6 = arith.constant 0.000000e+00 : f32
    %14 = vector.broadcast %cst_5 : f32 to vector<128x8xf32>
    %15 = vector.broadcast %cst_6 : f32 to vector<128x8xf32>
    %16 = arith.select %13, %14, %15 : vector<128x8xi1>, vector<128x8xf32>
    %17 = arith.truncf %16 : vector<128x8xf32> to vector<128x8xbf16>
    %c0_7 = arith.constant 0 : index
    %c0_8 = arith.constant 0 : index
    %18 = vector.load %arg3[%c0_7, %c0_8] : memref<128x32xf32, #tpu.memory_space<vmem>>, vector<128x32xf32>
    %c0_9 = arith.constant 0 : index
    %c0_10 = arith.constant 0 : index
    %19 = vector.load %arg14[%c0_9, %c0_10] : memref<128x48xbf16, #tpu.memory_space<vmem>>, vector<128x8xbf16>
    tpu.vector_store %arg14[%c0_9, %c0_10], %10 {strides = array<i32>} : memref<128x48xbf16, #tpu.memory_space<vmem>>, vector<128x8xbf16>,
    %c0_11 = arith.constant 0 : index
    %c8 = arith.constant 8 : index
    %20 = vector.load %arg14[%c0_11, %c8] : memref<128x48xbf16, #tpu.memory_space<vmem>>, vector<128x8xbf16>
    tpu.vector_store %arg14[%c0_11, %c8], %17 {strides = array<i32>} : memref<128x48xbf16, #tpu.memory_space<vmem>>, vector<128x8xbf16>,
    %21 = arith.truncf %18 : vector<128x32xf32> to vector<128x32xbf16>
    %c0_12 = arith.constant 0 : index
    %c16 = arith.constant 16 : index
    %22 = vector.load %arg14[%c0_12, %c16] : memref<128x48xbf16, #tpu.memory_space<vmem>>, vector<128x32xbf16>
    tpu.vector_store %arg14[%c0_12, %c16], %21 {strides = array<i32>} : memref<128x48xbf16, #tpu.memory_space<vmem>>, vector<128x32xbf16>,
    %c0_13 = arith.constant 0 : index
    %c0_14 = arith.constant 0 : index
    %23 = vector.load %arg14[%c0_13, %c0_14] : memref<128x48xbf16, #tpu.memory_space<vmem>>, vector<128x48xbf16>
    %c0_15 = arith.constant 0 : index
    %c0_16 = arith.constant 0 : index
    %24 = vector.load %arg13[%c0_15, %c0_16] : memref<48x64xbf16, #tpu.memory_space<vmem>>, vector<48x64xbf16>
    %cst_17 = arith.constant dense<0.000000e+00> : vector<128x64xf32>
    %25 = tpu.matmul %23, %24, %cst_17 {dimension_numbers = #tpu.dot_dimension_numbers<[1], [0], [0], [1], [0, 0, 1, 1], [], []>} : vector<128x48xbf16>, vector<48x64xbf16>, vector<128x64xf32> -> vector<128x64xf32>
    %26 = vector.extract_strided_slice %25 {offsets = [0, 0], sizes = [128, 32], strides = [1, 1]} : vector<128x64xf32> to vector<128x32xf32>
    %c0_18 = arith.constant 0 : index
    %c0_19 = arith.constant 0 : index
    %27 = vector.load %arg10[%c0_18, %c0_19] : memref<8x32xf32, #tpu.memory_space<vmem>>, vector<1x32xf32>
    %28 = vector.broadcast %27 : vector<1x32xf32> to vector<128x32xf32>
    %29 = arith.addf %26, %28 : vector<128x32xf32>
    %30 = vector.extract_strided_slice %25 {offsets = [0, 32], sizes = [128, 32], strides = [1, 1]} : vector<128x64xf32> to vector<128x32xf32>
    %31 = arith.negf %29 : vector<128x32xf32>
    %32 = math.exp %31 : vector<128x32xf32>
    %cst_20 = arith.constant 1.000000e+00 : f32
    %33 = vector.broadcast %cst_20 : f32 to vector<128x32xf32>
    %34 = arith.addf %33, %32 : vector<128x32xf32>
    %35 = arith.divf %33, %34 : vector<128x32xf32>
    %36 = arith.mulf %30, %35 : vector<128x32xf32>
    %37 = arith.truncf %36 : vector<128x32xf32> to vector<128x32xbf16>
    %c0_21 = arith.constant 0 : index
    %c0_22 = arith.constant 0 : index
    %38 = vector.load %arg15[%c0_21, %c0_22] : memref<128x64xbf16, #tpu.memory_space<vmem>>, vector<128x32xbf16>
    tpu.vector_store %arg15[%c0_21, %c0_22], %37 {strides = array<i32>} : memref<128x64xbf16, #tpu.memory_space<vmem>>, vector<128x32xbf16>,
    %39 = arith.truncf %35 : vector<128x32xf32> to vector<128x32xbf16>
    %c0_23 = arith.constant 0 : index
    %c32 = arith.constant 32 : index
    %40 = vector.load %arg15[%c0_23, %c32] : memref<128x64xbf16, #tpu.memory_space<vmem>>, vector<128x32xbf16>
    tpu.vector_store %arg15[%c0_23, %c32], %39 {strides = array<i32>} : memref<128x64xbf16, #tpu.memory_space<vmem>>, vector<128x32xbf16>,
    %41 = tpu.iota {dimensions = array<i32: 0>} : vector<8x128xi32>
    %c0_24 = arith.constant 0 : index
    %c0_25 = arith.constant 0 : index
    %42 = vector.load %arg6[%c0_24, %c0_25] : memref<1x128xi32, #tpu.memory_space<vmem>>, vector<1x128xi32>
    %43 = vector.broadcast %42 : vector<1x128xi32> to vector<8x128xi32>
    %44 = arith.cmpi eq, %41, %43 : vector<8x128xi32>
    %cst_26 = arith.constant 1.000000e+00 : f32
    %cst_27 = arith.constant 0.000000e+00 : f32
    %45 = vector.broadcast %cst_26 : f32 to vector<8x128xf32>
    %46 = vector.broadcast %cst_27 : f32 to vector<8x128xf32>
    %47 = arith.select %44, %45, %46 : vector<8x128xi1>, vector<8x128xf32>
    %48 = arith.truncf %47 : vector<8x128xf32> to vector<8x128xbf16>
    %c0_28 = arith.constant 0 : index
    %c0_29 = arith.constant 0 : index
    %c0_30 = arith.constant 0 : index
    %49 = vector.load %arg11[%c0_28, %c0_29, %c0_30] : memref<1x8x64xf32, #tpu.memory_space<vmem>>, vector<1x8x64xf32>
    %50 = vector.shape_cast %49 : vector<1x8x64xf32> to vector<8x64xf32>
    %c0_31 = arith.constant 0 : index
    %c0_32 = arith.constant 0 : index
    %51 = vector.load %arg15[%c0_31, %c0_32] : memref<128x64xbf16, #tpu.memory_space<vmem>>, vector<128x64xbf16>
    %cst_33 = arith.constant dense<0.000000e+00> : vector<8x64xf32>
    %52 = tpu.matmul %48, %51, %cst_33 {dimension_numbers = #tpu.dot_dimension_numbers<[1], [0], [0], [1], [0, 0, 1, 1], [], []>} : vector<8x128xbf16>, vector<128x64xbf16>, vector<8x64xf32> -> vector<8x64xf32>
    %53 = arith.addf %50, %52 : vector<8x64xf32>
    %c0_34 = arith.constant 0 : index
    %c0_35 = arith.constant 0 : index
    %c0_36 = arith.constant 0 : index
    %54 = vector.load %arg11[%c0_34, %c0_35, %c0_36] : memref<1x8x64xf32, #tpu.memory_space<vmem>>, vector<1x8x64xf32>
    %55 = vector.shape_cast %54 : vector<1x8x64xf32> to vector<8x64xf32>
    %56 = vector.shape_cast %53 : vector<8x64xf32> to vector<1x8x64xf32>
    tpu.vector_store %arg11[%c0_34, %c0_35, %c0_36], %56 {strides = array<i32>} : memref<1x8x64xf32, #tpu.memory_space<vmem>>, vector<1x8x64xf32>,
    %c1 = arith.constant 1 : index
    %c0_37 = arith.constant 0 : index
    %57 = vector.load %arg10[%c1, %c0_37] : memref<8x32xf32, #tpu.memory_space<vmem>>, vector<1x32xf32>
    %c2 = arith.constant 2 : index
    %c0_38 = arith.constant 0 : index
    %58 = vector.load %arg10[%c2, %c0_38] : memref<8x32xf32, #tpu.memory_space<vmem>>, vector<1x32xf32>
    %cst_39 = arith.constant dense<0.000000e+00> : vector<128xf32>
    %59 = vector.multi_reduction <add>, %29, %cst_39 [1] : vector<128x32xf32> to vector<128xf32>
    %60 = vector.shape_cast %59 : vector<128xf32> to vector<128x1xf32>
    %cst_40 = arith.constant 3.200000e+01 : f32
    %61 = vector.broadcast %cst_40 : f32 to vector<128x1xf32>
    %62 = arith.divf %60, %61 : vector<128x1xf32>
    %63 = vector.broadcast %62 : vector<128x1xf32> to vector<128x32xf32>
    %64 = arith.subf %29, %63 : vector<128x32xf32>
    %65 = arith.mulf %64, %64 : vector<128x32xf32>
    %cst_41 = arith.constant dense<0.000000e+00> : vector<128xf32>
    %66 = vector.multi_reduction <add>, %65, %cst_41 [1] : vector<128x32xf32> to vector<128xf32>
    %67 = vector.shape_cast %66 : vector<128xf32> to vector<128x1xf32>
    %cst_42 = arith.constant 3.200000e+01 : f32
    %68 = vector.broadcast %cst_42 : f32 to vector<128x1xf32>
    %69 = arith.divf %67, %68 : vector<128x1xf32>
    %cst_43 = arith.constant 9.99999974E-6 : f32
    %70 = vector.broadcast %cst_43 : f32 to vector<128x1xf32>
    %71 = arith.addf %69, %70 : vector<128x1xf32>
    %72 = math.rsqrt %71 : vector<128x1xf32>
    %73 = vector.broadcast %72 : vector<128x1xf32> to vector<128x32xf32>
    %74 = arith.mulf %64, %73 : vector<128x32xf32>
    %75 = vector.broadcast %57 : vector<1x32xf32> to vector<128x32xf32>
    %76 = arith.mulf %74, %75 : vector<128x32xf32>
    %77 = vector.broadcast %58 : vector<1x32xf32> to vector<128x32xf32>
    %78 = arith.addf %76, %77 : vector<128x32xf32>
    %79 = arith.negf %78 : vector<128x32xf32>
    %80 = math.exp %79 : vector<128x32xf32>
    %cst_44 = arith.constant 1.000000e+00 : f32
    %81 = vector.broadcast %cst_44 : f32 to vector<128x32xf32>
    %82 = arith.addf %81, %80 : vector<128x32xf32>
    %83 = arith.divf %81, %82 : vector<128x32xf32>
    %84 = arith.mulf %78, %83 : vector<128x32xf32>
    %85 = arith.addf %18, %84 : vector<128x32xf32>
    %c0_45 = arith.constant 0 : index
    %c0_46 = arith.constant 0 : index
    %86 = vector.load %arg12[%c0_45, %c0_46] : memref<128x32xf32, #tpu.memory_space<vmem>>, vector<128x32xf32>
    tpu.vector_store %arg12[%c0_45, %c0_46], %85 {strides = array<i32>} : memref<128x32xf32, #tpu.memory_space<vmem>>, vector<128x32xf32>,
    return
  }
  func.func @transform_0(%arg0: i32, %arg1: i32) -> (i32, i32) {
    %c0_i32 = arith.constant 0 : i32
    %c0_i32_0 = arith.constant 0 : i32
    %c0_i32_1 = arith.constant 0 : i32
    return %c0_i32, %c0_i32_0 : i32, i32
  }
  func.func @transform_1(%arg0: i32, %arg1: i32) -> (i32, i32) {
    %c1_i32 = arith.constant 1 : i32
    %0 = arith.muli %arg0, %c1_i32 : i32
    %1 = arith.addi %0, %arg1 : i32
    %c0_i32 = arith.constant 0 : i32
    %c0_i32_0 = arith.constant 0 : i32
    return %1, %c0_i32 : i32, i32
  }
  func.func @transform_2(%arg0: i32, %arg1: i32) -> (i32, i32) {
    %c1_i32 = arith.constant 1 : i32
    %0 = arith.muli %arg0, %c1_i32 : i32
    %1 = arith.addi %0, %arg1 : i32
    %c0_i32 = arith.constant 0 : i32
    %c0_i32_0 = arith.constant 0 : i32
    return %1, %c0_i32 : i32, i32
  }
  func.func @transform_3(%arg0: i32, %arg1: i32) -> (i32, i32) {
    %c1_i32 = arith.constant 1 : i32
    %0 = arith.muli %arg0, %c1_i32 : i32
    %1 = arith.addi %0, %arg1 : i32
    %c0_i32 = arith.constant 0 : i32
    %c0_i32_0 = arith.constant 0 : i32
    return %1, %c0_i32 : i32, i32
  }
  func.func @transform_4(%arg0: i32, %arg1: i32) -> (i32, i32) {
    %c1_i32 = arith.constant 1 : i32
    %0 = arith.muli %arg0, %c1_i32 : i32
    %1 = arith.addi %0, %arg1 : i32
    %c0_i32 = arith.constant 0 : i32
    %c0_i32_0 = arith.constant 0 : i32
    return %c0_i32, %1 : i32, i32
  }
  func.func @transform_5(%arg0: i32, %arg1: i32) -> (i32, i32) {
    %c0_i32 = arith.constant 0 : i32
    %c0_i32_0 = arith.constant 0 : i32
    %c0_i32_1 = arith.constant 0 : i32
    return %c0_i32, %c0_i32_0 : i32, i32
  }
  func.func @transform_6(%arg0: i32, %arg1: i32) -> (i32, i32) {
    %c0_i32 = arith.constant 0 : i32
    %c0_i32_0 = arith.constant 0 : i32
    %c0_i32_1 = arith.constant 0 : i32
    return %c0_i32, %c0_i32_0 : i32, i32
  }
  func.func @transform_7(%arg0: i32, %arg1: i32) -> (i32, i32) {
    %c0_i32 = arith.constant 0 : i32
    %c0_i32_0 = arith.constant 0 : i32
    %c0_i32_1 = arith.constant 0 : i32
    return %c0_i32, %c0_i32_0 : i32, i32
  }
  func.func @transform_8(%arg0: i32, %arg1: i32) -> (i32, i32) {
    %c0_i32 = arith.constant 0 : i32
    %c0_i32_0 = arith.constant 0 : i32
    %c0_i32_1 = arith.constant 0 : i32
    return %c0_i32, %c0_i32_0 : i32, i32
  }
  func.func @transform_9(%arg0: i32, %arg1: i32) -> (i32, i32, i32) {
    %c0_i32 = arith.constant 0 : i32
    %c0_i32_0 = arith.constant 0 : i32
    %c0_i32_1 = arith.constant 0 : i32
    return %arg0, %c0_i32, %c0_i32_0 : i32, i32, i32
  }
  func.func @transform_10(%arg0: i32, %arg1: i32) -> (i32, i32) {
    %c1_i32 = arith.constant 1 : i32
    %0 = arith.muli %arg0, %c1_i32 : i32
    %1 = arith.addi %0, %arg1 : i32
    %c0_i32 = arith.constant 0 : i32
    %c0_i32_0 = arith.constant 0 : i32
    return %1, %c0_i32 : i32, i32
  }
}

module attributes {stable_mosaic.version = 11 : i64} {
  func.func @egc_node_kernel(%arg0: i32, %arg1: memref<16x32xf32, #tpu.memory_space<vmem>>, %arg2: memref<2x16x64xf32, #tpu.memory_space<vmem>>, %arg3: memref<32x32xbf16, #tpu.memory_space<vmem>>, %arg4: memref<8x32xf32, #tpu.memory_space<vmem>>, %arg5: memref<16x32xf32, #tpu.memory_space<vmem>>) attributes {dimension_semantics = [#tpu.dimension_semantics<arbitrary>], iteration_bounds = array<i64: 1>, scalar_prefetch = 0 : i64, scratch_operands = 0 : i64, tpu.core_type = #tpu.core_type<tc>, window_params = [{pipeline_mode = #tpu.pipeline_mode<synchronous>, transform_indices = @transform_0, window_bounds = array<i64: 16, 32>}, {pipeline_mode = #tpu.pipeline_mode<synchronous>, transform_indices = @transform_1, window_bounds = array<i64: 2, 16, 64>}, {pipeline_mode = #tpu.pipeline_mode<synchronous>, transform_indices = @transform_2, window_bounds = array<i64: 32, 32>}, {pipeline_mode = #tpu.pipeline_mode<synchronous>, transform_indices = @transform_3, window_bounds = array<i64: 8, 32>}, {pipeline_mode = #tpu.pipeline_mode<synchronous>, transform_indices = @transform_4, window_bounds = array<i64: 16, 32>}]} {
    %c0 = arith.constant 0 : index
    %c0_0 = arith.constant 0 : index
    %c0_1 = arith.constant 0 : index
    %0 = vector.load %arg2[%c0, %c0_0, %c0_1] : memref<2x16x64xf32, #tpu.memory_space<vmem>>, vector<2x16x64xf32>
    %cst = arith.constant dense<0.000000e+00> : vector<16x64xf32>
    %1 = vector.multi_reduction <add>, %0, %cst [0] : vector<2x16x64xf32> to vector<16x64xf32>
    %2 = vector.extract_strided_slice %1 {offsets = [0, 0], sizes = [16, 32], strides = [1, 1]} : vector<16x64xf32> to vector<16x32xf32>
    %3 = vector.extract_strided_slice %1 {offsets = [0, 32], sizes = [16, 32], strides = [1, 1]} : vector<16x64xf32> to vector<16x32xf32>
    %cst_2 = arith.constant 9.99999997E-7 : f32
    %4 = vector.broadcast %cst_2 : f32 to vector<16x32xf32>
    %5 = arith.addf %3, %4 : vector<16x32xf32>
    %6 = arith.divf %2, %5 : vector<16x32xf32>
    %c0_3 = arith.constant 0 : index
    %c0_4 = arith.constant 0 : index
    %7 = vector.load %arg1[%c0_3, %c0_4] : memref<16x32xf32, #tpu.memory_space<vmem>>, vector<16x32xf32>
    %8 = arith.truncf %7 : vector<16x32xf32> to vector<16x32xbf16>
    %c0_5 = arith.constant 0 : index
    %c0_6 = arith.constant 0 : index
    %9 = vector.load %arg3[%c0_5, %c0_6] : memref<32x32xbf16, #tpu.memory_space<vmem>>, vector<32x32xbf16>
    %cst_7 = arith.constant dense<0.000000e+00> : vector<16x32xf32>
    %10 = tpu.matmul %8, %9, %cst_7 {dimension_numbers = #tpu.dot_dimension_numbers<[1], [0], [0], [1], [0, 0, 1, 1], [], []>} : vector<16x32xbf16>, vector<32x32xbf16>, vector<16x32xf32> -> vector<16x32xf32>
    %c0_8 = arith.constant 0 : index
    %c0_9 = arith.constant 0 : index
    %11 = vector.load %arg4[%c0_8, %c0_9] : memref<8x32xf32, #tpu.memory_space<vmem>>, vector<1x32xf32>
    %12 = vector.broadcast %11 : vector<1x32xf32> to vector<16x32xf32>
    %13 = arith.addf %10, %12 : vector<16x32xf32>
    %14 = arith.addf %13, %6 : vector<16x32xf32>
    %c0_10 = arith.constant 0 : index
    %c0_11 = arith.constant 0 : index
    %15 = vector.load %arg1[%c0_10, %c0_11] : memref<16x32xf32, #tpu.memory_space<vmem>>, vector<16x32xf32>
    %c1 = arith.constant 1 : index
    %c0_12 = arith.constant 0 : index
    %16 = vector.load %arg4[%c1, %c0_12] : memref<8x32xf32, #tpu.memory_space<vmem>>, vector<1x32xf32>
    %c2 = arith.constant 2 : index
    %c0_13 = arith.constant 0 : index
    %17 = vector.load %arg4[%c2, %c0_13] : memref<8x32xf32, #tpu.memory_space<vmem>>, vector<1x32xf32>
    %cst_14 = arith.constant dense<0.000000e+00> : vector<16xf32>
    %18 = vector.multi_reduction <add>, %14, %cst_14 [1] : vector<16x32xf32> to vector<16xf32>
    %19 = vector.shape_cast %18 : vector<16xf32> to vector<16x1xf32>
    %cst_15 = arith.constant 3.200000e+01 : f32
    %20 = vector.broadcast %cst_15 : f32 to vector<16x1xf32>
    %21 = arith.divf %19, %20 : vector<16x1xf32>
    %22 = vector.broadcast %21 : vector<16x1xf32> to vector<16x32xf32>
    %23 = arith.subf %14, %22 : vector<16x32xf32>
    %24 = arith.mulf %23, %23 : vector<16x32xf32>
    %cst_16 = arith.constant dense<0.000000e+00> : vector<16xf32>
    %25 = vector.multi_reduction <add>, %24, %cst_16 [1] : vector<16x32xf32> to vector<16xf32>
    %26 = vector.shape_cast %25 : vector<16xf32> to vector<16x1xf32>
    %cst_17 = arith.constant 3.200000e+01 : f32
    %27 = vector.broadcast %cst_17 : f32 to vector<16x1xf32>
    %28 = arith.divf %26, %27 : vector<16x1xf32>
    %cst_18 = arith.constant 9.99999974E-6 : f32
    %29 = vector.broadcast %cst_18 : f32 to vector<16x1xf32>
    %30 = arith.addf %28, %29 : vector<16x1xf32>
    %31 = math.rsqrt %30 : vector<16x1xf32>
    %32 = vector.broadcast %31 : vector<16x1xf32> to vector<16x32xf32>
    %33 = arith.mulf %23, %32 : vector<16x32xf32>
    %34 = vector.broadcast %16 : vector<1x32xf32> to vector<16x32xf32>
    %35 = arith.mulf %33, %34 : vector<16x32xf32>
    %36 = vector.broadcast %17 : vector<1x32xf32> to vector<16x32xf32>
    %37 = arith.addf %35, %36 : vector<16x32xf32>
    %38 = arith.negf %37 : vector<16x32xf32>
    %39 = math.exp %38 : vector<16x32xf32>
    %cst_19 = arith.constant 1.000000e+00 : f32
    %40 = vector.broadcast %cst_19 : f32 to vector<16x32xf32>
    %41 = arith.addf %40, %39 : vector<16x32xf32>
    %42 = arith.divf %40, %41 : vector<16x32xf32>
    %43 = arith.mulf %37, %42 : vector<16x32xf32>
    %44 = arith.addf %15, %43 : vector<16x32xf32>
    %c0_20 = arith.constant 0 : index
    %c0_21 = arith.constant 0 : index
    %45 = vector.load %arg5[%c0_20, %c0_21] : memref<16x32xf32, #tpu.memory_space<vmem>>, vector<16x32xf32>
    tpu.vector_store %arg5[%c0_20, %c0_21], %44 {strides = array<i32>} : memref<16x32xf32, #tpu.memory_space<vmem>>, vector<16x32xf32>,
    return
  }
  func.func @transform_0(%arg0: i32) -> (i32, i32) {
    %c0_i32 = arith.constant 0 : i32
    %c0_i32_0 = arith.constant 0 : i32
    %c0_i32_1 = arith.constant 0 : i32
    return %c0_i32, %c0_i32_0 : i32, i32
  }
  func.func @transform_1(%arg0: i32) -> (i32, i32, i32) {
    %c0_i32 = arith.constant 0 : i32
    %c0_i32_0 = arith.constant 0 : i32
    %c0_i32_1 = arith.constant 0 : i32
    %c0_i32_2 = arith.constant 0 : i32
    return %c0_i32, %c0_i32_0, %c0_i32_1 : i32, i32, i32
  }
  func.func @transform_2(%arg0: i32) -> (i32, i32) {
    %c0_i32 = arith.constant 0 : i32
    %c0_i32_0 = arith.constant 0 : i32
    %c0_i32_1 = arith.constant 0 : i32
    return %c0_i32, %c0_i32_0 : i32, i32
  }
  func.func @transform_3(%arg0: i32) -> (i32, i32) {
    %c0_i32 = arith.constant 0 : i32
    %c0_i32_0 = arith.constant 0 : i32
    %c0_i32_1 = arith.constant 0 : i32
    return %c0_i32, %c0_i32_0 : i32, i32
  }
  func.func @transform_4(%arg0: i32) -> (i32, i32) {
    %c0_i32 = arith.constant 0 : i32
    %c0_i32_0 = arith.constant 0 : i32
    %c0_i32_1 = arith.constant 0 : i32
    return %c0_i32, %c0_i32_0 : i32, i32
  }
}

module attributes {stable_mosaic.version = 11 : i64} {
  func.func @egc_edge_kernel(%arg0: i32, %arg1: i32, %arg2: memref<16x32xf32, #tpu.memory_space<vmem>>, %arg3: memref<128x32xf32, #tpu.memory_space<vmem>>, %arg4: memref<128x1xi32, #tpu.memory_space<vmem>>, %arg5: memref<128x1xi32, #tpu.memory_space<vmem>>, %arg6: memref<1x128xi32, #tpu.memory_space<vmem>>, %arg7: memref<32x96xbf16, #tpu.memory_space<vmem>>, %arg8: memref<1x96xf32, #tpu.memory_space<vmem>>, %arg9: memref<32x32xbf16, #tpu.memory_space<vmem>>, %arg10: memref<8x32xf32, #tpu.memory_space<vmem>>, %arg11: memref<1x16x64xf32, #tpu.memory_space<vmem>>, %arg12: memref<128x32xf32, #tpu.memory_space<vmem>>, %arg13: memref<64x64xbf16, #tpu.memory_space<vmem>>, %arg14: memref<128x64xbf16, #tpu.memory_space<vmem>>, %arg15: memref<128x64xbf16, #tpu.memory_space<vmem>>) attributes {dimension_semantics = [#tpu.dimension_semantics<parallel>, #tpu.dimension_semantics<arbitrary>], iteration_bounds = array<i64: 2, 1>, scalar_prefetch = 0 : i64, scratch_operands = 3 : i64, tpu.core_type = #tpu.core_type<tc>, window_params = [{pipeline_mode = #tpu.pipeline_mode<synchronous>, transform_indices = @transform_0, window_bounds = array<i64: 16, 32>}, {transform_indices = @transform_1, window_bounds = array<i64: 128, 32>}, {transform_indices = @transform_2, window_bounds = array<i64: 128, 1>}, {transform_indices = @transform_3, window_bounds = array<i64: 128, 1>}, {transform_indices = @transform_4, window_bounds = array<i64: 1, 128>}, {pipeline_mode = #tpu.pipeline_mode<synchronous>, transform_indices = @transform_5, window_bounds = array<i64: 32, 96>}, {pipeline_mode = #tpu.pipeline_mode<synchronous>, transform_indices = @transform_6, window_bounds = array<i64: 1, 96>}, {pipeline_mode = #tpu.pipeline_mode<synchronous>, transform_indices = @transform_7, window_bounds = array<i64: 32, 32>}, {pipeline_mode = #tpu.pipeline_mode<synchronous>, transform_indices = @transform_8, window_bounds = array<i64: 8, 32>}, {transform_indices = @transform_9, window_bounds = array<i64: 1, 16, 64>}, {transform_indices = @transform_10, window_bounds = array<i64: 128, 32>}]} {
    %c0_i32 = arith.constant 0 : i32
    %0 = arith.cmpi eq, %arg1, %c0_i32 : i32
    %1 = arith.extui %0 : i1 to i32
    %c0_i32_0 = arith.constant 0 : i32
    %2 = arith.cmpi ne, %1, %c0_i32_0 : i32
    scf.if %2 {
      %c0_48 = arith.constant 0 : index
      %c0_49 = arith.constant 0 : index
      %87 = vector.load %arg2[%c0_48, %c0_49] : memref<16x32xf32, #tpu.memory_space<vmem>>, vector<16x32xf32>
      %88 = arith.truncf %87 : vector<16x32xf32> to vector<16x32xbf16>
      %c0_50 = arith.constant 0 : index
      %c0_51 = arith.constant 0 : index
      %89 = vector.load %arg7[%c0_50, %c0_51] : memref<32x96xbf16, #tpu.memory_space<vmem>>, vector<32x96xbf16>
      %cst_52 = arith.constant dense<0.000000e+00> : vector<16x96xf32>
      %90 = tpu.matmul %88, %89, %cst_52 {dimension_numbers = #tpu.dot_dimension_numbers<[1], [0], [0], [1], [0, 0, 1, 1], [], []>} : vector<16x32xbf16>, vector<32x96xbf16>, vector<16x96xf32> -> vector<16x96xf32>
      %c0_53 = arith.constant 0 : index
      %c0_54 = arith.constant 0 : index
      %91 = vector.load %arg8[%c0_53, %c0_54] : memref<1x96xf32, #tpu.memory_space<vmem>>, vector<1x96xf32>
      %92 = vector.broadcast %91 : vector<1x96xf32> to vector<16x96xf32>
      %93 = arith.addf %90, %92 : vector<16x96xf32>
      %94 = arith.truncf %93 : vector<16x96xf32> to vector<16x96xbf16>
      %cst_55 = arith.constant 0.000000e+00 : bf16
      %95 = vector.broadcast %cst_55 : bf16 to vector<64x64xbf16>
      %c0_56 = arith.constant 0 : index
      %c0_57 = arith.constant 0 : index
      %96 = vector.load %arg13[%c0_56, %c0_57] : memref<64x64xbf16, #tpu.memory_space<vmem>>, vector<64x64xbf16>
      tpu.vector_store %arg13[%c0_56, %c0_57], %95 {strides = array<i32>} : memref<64x64xbf16, #tpu.memory_space<vmem>>, vector<64x64xbf16>,
      %97 = vector.extract_strided_slice %94 {offsets = [0, 0], sizes = [16, 32], strides = [1, 1]} : vector<16x96xbf16> to vector<16x32xbf16>
      %c0_58 = arith.constant 0 : index
      %c0_59 = arith.constant 0 : index
      %98 = vector.load %arg13[%c0_58, %c0_59] : memref<64x64xbf16, #tpu.memory_space<vmem>>, vector<16x32xbf16>
      tpu.vector_store %arg13[%c0_58, %c0_59], %97 {strides = array<i32>} : memref<64x64xbf16, #tpu.memory_space<vmem>>, vector<16x32xbf16>,
      %99 = vector.extract_strided_slice %94 {offsets = [0, 64], sizes = [16, 32], strides = [1, 1]} : vector<16x96xbf16> to vector<16x32xbf16>
      %c0_60 = arith.constant 0 : index
      %c32_61 = arith.constant 32 : index
      %100 = vector.load %arg13[%c0_60, %c32_61] : memref<64x64xbf16, #tpu.memory_space<vmem>>, vector<16x32xbf16>
      tpu.vector_store %arg13[%c0_60, %c32_61], %99 {strides = array<i32>} : memref<64x64xbf16, #tpu.memory_space<vmem>>, vector<16x32xbf16>,
      %101 = vector.extract_strided_slice %94 {offsets = [0, 32], sizes = [16, 32], strides = [1, 1]} : vector<16x96xbf16> to vector<16x32xbf16>
      %c16_62 = arith.constant 16 : index
      %c0_63 = arith.constant 0 : index
      %102 = vector.load %arg13[%c16_62, %c0_63] : memref<64x64xbf16, #tpu.memory_space<vmem>>, vector<16x32xbf16>
      tpu.vector_store %arg13[%c16_62, %c0_63], %101 {strides = array<i32>} : memref<64x64xbf16, #tpu.memory_space<vmem>>, vector<16x32xbf16>,
      %c0_64 = arith.constant 0 : index
      %c0_65 = arith.constant 0 : index
      %103 = vector.load %arg9[%c0_64, %c0_65] : memref<32x32xbf16, #tpu.memory_space<vmem>>, vector<32x32xbf16>
      %c32_66 = arith.constant 32 : index
      %c0_67 = arith.constant 0 : index
      %104 = vector.load %arg13[%c32_66, %c0_67] : memref<64x64xbf16, #tpu.memory_space<vmem>>, vector<32x32xbf16>
      tpu.vector_store %arg13[%c32_66, %c0_67], %103 {strides = array<i32>} : memref<64x64xbf16, #tpu.memory_space<vmem>>, vector<32x32xbf16>,
      %cst_68 = arith.constant 0.000000e+00 : f32
      %105 = vector.broadcast %cst_68 : f32 to vector<16x64xf32>
      %c0_69 = arith.constant 0 : index
      %c0_70 = arith.constant 0 : index
      %c0_71 = arith.constant 0 : index
      %106 = vector.load %arg11[%c0_69, %c0_70, %c0_71] : memref<1x16x64xf32, #tpu.memory_space<vmem>>, vector<1x16x64xf32>
      %107 = vector.shape_cast %106 : vector<1x16x64xf32> to vector<16x64xf32>
      %108 = vector.shape_cast %105 : vector<16x64xf32> to vector<1x16x64xf32>
      tpu.vector_store %arg11[%c0_69, %c0_70, %c0_71], %108 {strides = array<i32>} : memref<1x16x64xf32, #tpu.memory_space<vmem>>, vector<1x16x64xf32>,
    } else {
    }
    %3 = tpu.iota {dimensions = array<i32: 1>} : vector<128x16xi32>
    %c0 = arith.constant 0 : index
    %c0_1 = arith.constant 0 : index
    %4 = vector.load %arg4[%c0, %c0_1] : memref<128x1xi32, #tpu.memory_space<vmem>>, vector<128x1xi32>
    %5 = vector.broadcast %4 : vector<128x1xi32> to vector<128x16xi32>
    %6 = arith.cmpi eq, %3, %5 : vector<128x16xi32>
    %cst = arith.constant 1.000000e+00 : f32
    %cst_2 = arith.constant 0.000000e+00 : f32
    %7 = vector.broadcast %cst : f32 to vector<128x16xf32>
    %8 = vector.broadcast %cst_2 : f32 to vector<128x16xf32>
    %9 = arith.select %6, %7, %8 : vector<128x16xi1>, vector<128x16xf32>
    %10 = arith.truncf %9 : vector<128x16xf32> to vector<128x16xbf16>
    %c0_3 = arith.constant 0 : index
    %c0_4 = arith.constant 0 : index
    %11 = vector.load %arg5[%c0_3, %c0_4] : memref<128x1xi32, #tpu.memory_space<vmem>>, vector<128x1xi32>
    %12 = vector.broadcast %11 : vector<128x1xi32> to vector<128x16xi32>
    %13 = arith.cmpi eq, %3, %12 : vector<128x16xi32>
    %cst_5 = arith.constant 1.000000e+00 : f32
    %cst_6 = arith.constant 0.000000e+00 : f32
    %14 = vector.broadcast %cst_5 : f32 to vector<128x16xf32>
    %15 = vector.broadcast %cst_6 : f32 to vector<128x16xf32>
    %16 = arith.select %13, %14, %15 : vector<128x16xi1>, vector<128x16xf32>
    %17 = arith.truncf %16 : vector<128x16xf32> to vector<128x16xbf16>
    %c0_7 = arith.constant 0 : index
    %c0_8 = arith.constant 0 : index
    %18 = vector.load %arg3[%c0_7, %c0_8] : memref<128x32xf32, #tpu.memory_space<vmem>>, vector<128x32xf32>
    %c0_9 = arith.constant 0 : index
    %c0_10 = arith.constant 0 : index
    %19 = vector.load %arg14[%c0_9, %c0_10] : memref<128x64xbf16, #tpu.memory_space<vmem>>, vector<128x16xbf16>
    tpu.vector_store %arg14[%c0_9, %c0_10], %10 {strides = array<i32>} : memref<128x64xbf16, #tpu.memory_space<vmem>>, vector<128x16xbf16>,
    %c0_11 = arith.constant 0 : index
    %c16 = arith.constant 16 : index
    %20 = vector.load %arg14[%c0_11, %c16] : memref<128x64xbf16, #tpu.memory_space<vmem>>, vector<128x16xbf16>
    tpu.vector_store %arg14[%c0_11, %c16], %17 {strides = array<i32>} : memref<128x64xbf16, #tpu.memory_space<vmem>>, vector<128x16xbf16>,
    %21 = arith.truncf %18 : vector<128x32xf32> to vector<128x32xbf16>
    %c0_12 = arith.constant 0 : index
    %c32 = arith.constant 32 : index
    %22 = vector.load %arg14[%c0_12, %c32] : memref<128x64xbf16, #tpu.memory_space<vmem>>, vector<128x32xbf16>
    tpu.vector_store %arg14[%c0_12, %c32], %21 {strides = array<i32>} : memref<128x64xbf16, #tpu.memory_space<vmem>>, vector<128x32xbf16>,
    %c0_13 = arith.constant 0 : index
    %c0_14 = arith.constant 0 : index
    %23 = vector.load %arg14[%c0_13, %c0_14] : memref<128x64xbf16, #tpu.memory_space<vmem>>, vector<128x64xbf16>
    %c0_15 = arith.constant 0 : index
    %c0_16 = arith.constant 0 : index
    %24 = vector.load %arg13[%c0_15, %c0_16] : memref<64x64xbf16, #tpu.memory_space<vmem>>, vector<64x64xbf16>
    %cst_17 = arith.constant dense<0.000000e+00> : vector<128x64xf32>
    %25 = tpu.matmul %23, %24, %cst_17 {dimension_numbers = #tpu.dot_dimension_numbers<[1], [0], [0], [1], [0, 0, 1, 1], [], []>} : vector<128x64xbf16>, vector<64x64xbf16>, vector<128x64xf32> -> vector<128x64xf32>
    %26 = vector.extract_strided_slice %25 {offsets = [0, 0], sizes = [128, 32], strides = [1, 1]} : vector<128x64xf32> to vector<128x32xf32>
    %c0_18 = arith.constant 0 : index
    %c0_19 = arith.constant 0 : index
    %27 = vector.load %arg10[%c0_18, %c0_19] : memref<8x32xf32, #tpu.memory_space<vmem>>, vector<1x32xf32>
    %28 = vector.broadcast %27 : vector<1x32xf32> to vector<128x32xf32>
    %29 = arith.addf %26, %28 : vector<128x32xf32>
    %30 = vector.extract_strided_slice %25 {offsets = [0, 32], sizes = [128, 32], strides = [1, 1]} : vector<128x64xf32> to vector<128x32xf32>
    %31 = arith.negf %29 : vector<128x32xf32>
    %32 = math.exp %31 : vector<128x32xf32>
    %cst_20 = arith.constant 1.000000e+00 : f32
    %33 = vector.broadcast %cst_20 : f32 to vector<128x32xf32>
    %34 = arith.addf %33, %32 : vector<128x32xf32>
    %35 = arith.divf %33, %34 : vector<128x32xf32>
    %36 = arith.mulf %30, %35 : vector<128x32xf32>
    %37 = arith.truncf %36 : vector<128x32xf32> to vector<128x32xbf16>
    %c0_21 = arith.constant 0 : index
    %c0_22 = arith.constant 0 : index
    %38 = vector.load %arg15[%c0_21, %c0_22] : memref<128x64xbf16, #tpu.memory_space<vmem>>, vector<128x32xbf16>
    tpu.vector_store %arg15[%c0_21, %c0_22], %37 {strides = array<i32>} : memref<128x64xbf16, #tpu.memory_space<vmem>>, vector<128x32xbf16>,
    %39 = arith.truncf %35 : vector<128x32xf32> to vector<128x32xbf16>
    %c0_23 = arith.constant 0 : index
    %c32_24 = arith.constant 32 : index
    %40 = vector.load %arg15[%c0_23, %c32_24] : memref<128x64xbf16, #tpu.memory_space<vmem>>, vector<128x32xbf16>
    tpu.vector_store %arg15[%c0_23, %c32_24], %39 {strides = array<i32>} : memref<128x64xbf16, #tpu.memory_space<vmem>>, vector<128x32xbf16>,
    %41 = tpu.iota {dimensions = array<i32: 0>} : vector<16x128xi32>
    %c0_25 = arith.constant 0 : index
    %c0_26 = arith.constant 0 : index
    %42 = vector.load %arg6[%c0_25, %c0_26] : memref<1x128xi32, #tpu.memory_space<vmem>>, vector<1x128xi32>
    %43 = vector.broadcast %42 : vector<1x128xi32> to vector<16x128xi32>
    %44 = arith.cmpi eq, %41, %43 : vector<16x128xi32>
    %cst_27 = arith.constant 1.000000e+00 : f32
    %cst_28 = arith.constant 0.000000e+00 : f32
    %45 = vector.broadcast %cst_27 : f32 to vector<16x128xf32>
    %46 = vector.broadcast %cst_28 : f32 to vector<16x128xf32>
    %47 = arith.select %44, %45, %46 : vector<16x128xi1>, vector<16x128xf32>
    %48 = arith.truncf %47 : vector<16x128xf32> to vector<16x128xbf16>
    %c0_29 = arith.constant 0 : index
    %c0_30 = arith.constant 0 : index
    %c0_31 = arith.constant 0 : index
    %49 = vector.load %arg11[%c0_29, %c0_30, %c0_31] : memref<1x16x64xf32, #tpu.memory_space<vmem>>, vector<1x16x64xf32>
    %50 = vector.shape_cast %49 : vector<1x16x64xf32> to vector<16x64xf32>
    %c0_32 = arith.constant 0 : index
    %c0_33 = arith.constant 0 : index
    %51 = vector.load %arg15[%c0_32, %c0_33] : memref<128x64xbf16, #tpu.memory_space<vmem>>, vector<128x64xbf16>
    %cst_34 = arith.constant dense<0.000000e+00> : vector<16x64xf32>
    %52 = tpu.matmul %48, %51, %cst_34 {dimension_numbers = #tpu.dot_dimension_numbers<[1], [0], [0], [1], [0, 0, 1, 1], [], []>} : vector<16x128xbf16>, vector<128x64xbf16>, vector<16x64xf32> -> vector<16x64xf32>
    %53 = arith.addf %50, %52 : vector<16x64xf32>
    %c0_35 = arith.constant 0 : index
    %c0_36 = arith.constant 0 : index
    %c0_37 = arith.constant 0 : index
    %54 = vector.load %arg11[%c0_35, %c0_36, %c0_37] : memref<1x16x64xf32, #tpu.memory_space<vmem>>, vector<1x16x64xf32>
    %55 = vector.shape_cast %54 : vector<1x16x64xf32> to vector<16x64xf32>
    %56 = vector.shape_cast %53 : vector<16x64xf32> to vector<1x16x64xf32>
    tpu.vector_store %arg11[%c0_35, %c0_36, %c0_37], %56 {strides = array<i32>} : memref<1x16x64xf32, #tpu.memory_space<vmem>>, vector<1x16x64xf32>,
    %c1 = arith.constant 1 : index
    %c0_38 = arith.constant 0 : index
    %57 = vector.load %arg10[%c1, %c0_38] : memref<8x32xf32, #tpu.memory_space<vmem>>, vector<1x32xf32>
    %c2 = arith.constant 2 : index
    %c0_39 = arith.constant 0 : index
    %58 = vector.load %arg10[%c2, %c0_39] : memref<8x32xf32, #tpu.memory_space<vmem>>, vector<1x32xf32>
    %cst_40 = arith.constant dense<0.000000e+00> : vector<128xf32>
    %59 = vector.multi_reduction <add>, %29, %cst_40 [1] : vector<128x32xf32> to vector<128xf32>
    %60 = vector.shape_cast %59 : vector<128xf32> to vector<128x1xf32>
    %cst_41 = arith.constant 3.200000e+01 : f32
    %61 = vector.broadcast %cst_41 : f32 to vector<128x1xf32>
    %62 = arith.divf %60, %61 : vector<128x1xf32>
    %63 = vector.broadcast %62 : vector<128x1xf32> to vector<128x32xf32>
    %64 = arith.subf %29, %63 : vector<128x32xf32>
    %65 = arith.mulf %64, %64 : vector<128x32xf32>
    %cst_42 = arith.constant dense<0.000000e+00> : vector<128xf32>
    %66 = vector.multi_reduction <add>, %65, %cst_42 [1] : vector<128x32xf32> to vector<128xf32>
    %67 = vector.shape_cast %66 : vector<128xf32> to vector<128x1xf32>
    %cst_43 = arith.constant 3.200000e+01 : f32
    %68 = vector.broadcast %cst_43 : f32 to vector<128x1xf32>
    %69 = arith.divf %67, %68 : vector<128x1xf32>
    %cst_44 = arith.constant 9.99999974E-6 : f32
    %70 = vector.broadcast %cst_44 : f32 to vector<128x1xf32>
    %71 = arith.addf %69, %70 : vector<128x1xf32>
    %72 = math.rsqrt %71 : vector<128x1xf32>
    %73 = vector.broadcast %72 : vector<128x1xf32> to vector<128x32xf32>
    %74 = arith.mulf %64, %73 : vector<128x32xf32>
    %75 = vector.broadcast %57 : vector<1x32xf32> to vector<128x32xf32>
    %76 = arith.mulf %74, %75 : vector<128x32xf32>
    %77 = vector.broadcast %58 : vector<1x32xf32> to vector<128x32xf32>
    %78 = arith.addf %76, %77 : vector<128x32xf32>
    %79 = arith.negf %78 : vector<128x32xf32>
    %80 = math.exp %79 : vector<128x32xf32>
    %cst_45 = arith.constant 1.000000e+00 : f32
    %81 = vector.broadcast %cst_45 : f32 to vector<128x32xf32>
    %82 = arith.addf %81, %80 : vector<128x32xf32>
    %83 = arith.divf %81, %82 : vector<128x32xf32>
    %84 = arith.mulf %78, %83 : vector<128x32xf32>
    %85 = arith.addf %18, %84 : vector<128x32xf32>
    %c0_46 = arith.constant 0 : index
    %c0_47 = arith.constant 0 : index
    %86 = vector.load %arg12[%c0_46, %c0_47] : memref<128x32xf32, #tpu.memory_space<vmem>>, vector<128x32xf32>
    tpu.vector_store %arg12[%c0_46, %c0_47], %85 {strides = array<i32>} : memref<128x32xf32, #tpu.memory_space<vmem>>, vector<128x32xf32>,
    return
  }
  func.func @transform_0(%arg0: i32, %arg1: i32) -> (i32, i32) {
    %c0_i32 = arith.constant 0 : i32
    %c0_i32_0 = arith.constant 0 : i32
    %c0_i32_1 = arith.constant 0 : i32
    return %c0_i32, %c0_i32_0 : i32, i32
  }
  func.func @transform_1(%arg0: i32, %arg1: i32) -> (i32, i32) {
    %c1_i32 = arith.constant 1 : i32
    %0 = arith.muli %arg0, %c1_i32 : i32
    %1 = arith.addi %0, %arg1 : i32
    %c0_i32 = arith.constant 0 : i32
    %c0_i32_0 = arith.constant 0 : i32
    return %1, %c0_i32 : i32, i32
  }
  func.func @transform_2(%arg0: i32, %arg1: i32) -> (i32, i32) {
    %c1_i32 = arith.constant 1 : i32
    %0 = arith.muli %arg0, %c1_i32 : i32
    %1 = arith.addi %0, %arg1 : i32
    %c0_i32 = arith.constant 0 : i32
    %c0_i32_0 = arith.constant 0 : i32
    return %1, %c0_i32 : i32, i32
  }
  func.func @transform_3(%arg0: i32, %arg1: i32) -> (i32, i32) {
    %c1_i32 = arith.constant 1 : i32
    %0 = arith.muli %arg0, %c1_i32 : i32
    %1 = arith.addi %0, %arg1 : i32
    %c0_i32 = arith.constant 0 : i32
    %c0_i32_0 = arith.constant 0 : i32
    return %1, %c0_i32 : i32, i32
  }
  func.func @transform_4(%arg0: i32, %arg1: i32) -> (i32, i32) {
    %c1_i32 = arith.constant 1 : i32
    %0 = arith.muli %arg0, %c1_i32 : i32
    %1 = arith.addi %0, %arg1 : i32
    %c0_i32 = arith.constant 0 : i32
    %c0_i32_0 = arith.constant 0 : i32
    return %c0_i32, %1 : i32, i32
  }
  func.func @transform_5(%arg0: i32, %arg1: i32) -> (i32, i32) {
    %c0_i32 = arith.constant 0 : i32
    %c0_i32_0 = arith.constant 0 : i32
    %c0_i32_1 = arith.constant 0 : i32
    return %c0_i32, %c0_i32_0 : i32, i32
  }
  func.func @transform_6(%arg0: i32, %arg1: i32) -> (i32, i32) {
    %c0_i32 = arith.constant 0 : i32
    %c0_i32_0 = arith.constant 0 : i32
    %c0_i32_1 = arith.constant 0 : i32
    return %c0_i32, %c0_i32_0 : i32, i32
  }
  func.func @transform_7(%arg0: i32, %arg1: i32) -> (i32, i32) {
    %c0_i32 = arith.constant 0 : i32
    %c0_i32_0 = arith.constant 0 : i32
    %c0_i32_1 = arith.constant 0 : i32
    return %c0_i32, %c0_i32_0 : i32, i32
  }
  func.func @transform_8(%arg0: i32, %arg1: i32) -> (i32, i32) {
    %c0_i32 = arith.constant 0 : i32
    %c0_i32_0 = arith.constant 0 : i32
    %c0_i32_1 = arith.constant 0 : i32
    return %c0_i32, %c0_i32_0 : i32, i32
  }
  func.func @transform_9(%arg0: i32, %arg1: i32) -> (i32, i32, i32) {
    %c0_i32 = arith.constant 0 : i32
    %c0_i32_0 = arith.constant 0 : i32
    %c0_i32_1 = arith.constant 0 : i32
    return %arg0, %c0_i32, %c0_i32_0 : i32, i32, i32
  }
  func.func @transform_10(%arg0: i32, %arg1: i32) -> (i32, i32) {
    %c1_i32 = arith.constant 1 : i32
    %0 = arith.muli %arg0, %c1_i32 : i32
    %1 = arith.addi %0, %arg1 : i32
    %c0_i32 = arith.constant 0 : i32
    %c0_i32_0 = arith.constant 0 : i32
    return %1, %c0_i32 : i32, i32
  }
}

</mosaic_0001>

<bundles_post_ra>
// kernel: alignn_conv.7
= control target key start
LH: loop header
LB: loop body
LE: loop exit
PB: predicated region body
PF: predicated region fallthrough
CT: control target
= control target key end

     0   :  { %v257_v1 = vmov 0.0   ;;  %vm258_vm0 = vmmov 0   ;;  %vm23_vm1 = vcmask 523264   ;;  %s348_s0 = inlined_call_operand.vmem [shape: f32[16,32], index: 0, kind: input, shape index: {}]   ;;  %s349_s1 = inlined_call_operand.vmem [shape: f32[2,16,64], index: 1, kind: input, shape index: {}]   ;;  %s350_s2 = inlined_call_operand.vmem [shape: bf16[32,32], index: 2, kind: input, shape index: {}]   ;;  %s351_s3 = inlined_call_operand.vmem [shape: f32[8,32], index: 3, kind: input, shape index: {}]   ;;  %s352_s4 = inlined_call_operand.hbm [shape: f32[16,32], index: 4, kind: output, shape index: {}]  }
   0x1   :  { %v215_v0 = vld [vmem:[%s350_s2] sm:$0xff]   ;;  %201 = vmatprep.subr.bf16.mxu0 %v257_v1  ;;  %v216_v2 = vld [vmem:[%s350_s2 + $0x8] sm:$0xff]   ;;  %205 = vmatprep.mubr.msk.bf16.mxu0 %vm258_vm0, %v257_v1  ;;  %v21_v6 = vld [vmem:[%s349_s1 + $0x10] sm:$0xff] }
   0x2   :  { %202 = vmatpush3.bf16.msra.mxu0 %v215_v0  ;;  %v297_v3 = vld [vmem:[%s348_s0] sm:$0xff]  ;;  %v302_v4 = vld [vmem:[%s348_s0 + $0x8] sm:$0xff]  ;;  %v22_v9 = vld [vmem:[%s349_s1 + $0x18] sm:$0xff]  ;;  %v25_v10 = vsel %vm23_vm1, %v21_v6, 0.0 }
   0x3   :  { %v19_v5 = vld [vmem:[%s349_s1] sm:$0xff]  ;;  %203 = vmatprep.subr.bf16.mxu0 %v257_v1  ;;  %v20_v8 = vld [vmem:[%s349_s1 + $0x8] sm:$0xff]  ;;  %v28_v12 = vsel %vm23_vm1, %v22_v9, 0.0  ;;  %v46_v13 = vpack.c.bf16 %v302_v4, %v297_v3 }
   0x4   :  { %v24_v7 = vsel %vm23_vm1, %v19_v5, 0.0  ;;  %v27_v11 = vsel %vm23_vm1, %v20_v8, 0.0 }
   0x5   :  { %v26_v14 = vadd.f32 %v25_v10, %v24_v7  ;;  %v29_v15 = vadd.f32 %v28_v12, %v27_v11 }
   0x6   :  { %9 = vsyncpa [#allocation3], 0  ;;  %204 = vmatpush3.bf16.msra.mxu0 %v216_v2  ;;  %vm68_vm2 = vcmask 261120   ;;  %s259_s0 = smov 96   ;;  %v190_v22 = vld [vmem:[%s351_s3] ss:$0 sm:$0xff] }
   0x7   :  { %v30_v16 = vadd.f32 1e-06, %v26_v14  ;;  %v31_v17 = vadd.f32 1e-06, %v29_v15  ;;  %v194_v52 = vld [vmem:[%s351_s3 + $0x1] ss:$0 sm:$0xff] }
   0x8   :  { %v195_v54 = vld [vmem:[%s351_s3 + $0x2] ss:$0 sm:$0xff]  ;;  %s260_s3 = smov [#allocation2]  }
   0x9   :  { %206 = vmatmul.mubr.msk.bf16.vlgmr.msra.gmra.mrb[0].mxu0 %vm68_vm2, %v46_v13  ;;  %34 = vrot.lane.b32.xlu0 %v30_v16, %s259_s0  ;;  %s179_s9 = sshll.u32 %s260_s3, 4  ;;  %s180_s9 = int_to_ptr.vmem [resolvable:$true] %s179_s9 }
   0xa   :  { %s233_s10 = scalar_lea.vmem %s180_s9, 256  ;;  %p238_p1 = scmp.lt.s32.totalorder %s180_s9, %s180_s9 }
   0xb   :  { %p234_p0 = scmp.ne.s32.totalorder %s180_s9, %s233_s10  ;;  %p239_p2 = scmp.lt.s32.totalorder %s233_s10, %s233_s10 }
   0xd   :  { %36 = vrot.lane.b32.xlu0 %v31_v17, %s259_s0  ;;  %p240_p3 = por %p239_p2, %p238_p1 }
   0xf   :  { %p241_p4 = pnand %p240_p3, %p234_p0 }
  0x7b   :  { %v35_v18 = vpop.permute.xlu0 %34 }
  0x7c   :  { %217 = vrcp.f32 %v35_v18 }
  0x7f   :  { %v37_v19 = vpop.permute.xlu0 %36 }
  0x80   :  { %219 = vrcp.f32 %v37_v19 }
  0x86   :  { %v218_v20 = vpop.eup %217 }
  0x87   :  { %v41_v23 = vmul.f32 %v218_v20, %v26_v14 }
  0x8a   :  { %v220_v21 = vpop.eup %219 }
  0x8b   :  { %v43_v27 = vmul.f32 %v220_v21, %v29_v15 }
  0xdc   :  { %v106_v24 = vpop.f32.mrb[0].mxu0 }
  0xdd   :  { %v107_v25 = vadd.f32 %v190_v22, %v106_v24  ;;  %v207_v26 = vpop.f32.mrb[1].mxu0 }
  0xde   :  { %v109_v28 = vpop.f32.mrb[2].mxu0 }
  0xdf   :  { %v110_v29 = vadd.f32 %v190_v22, %v109_v28  ;;  %v208_v30 = vpop.f32.mrb[3].mxu0  ;;  %v113_v31 = vadd.f32 %v107_v25, %v41_v23 }
  0xe1   :  { %v117_v32 = vsel %vm68_vm2, %v113_v31, 0.0  ;;  %v114_v33 = vadd.f32 %v110_v29, %v43_v27 }
  0xe2   :  { %118 = vadd.xlane.f32.xlu1 %v117_v32 }
  0xe3   :  { %v120_v34 = vsel %vm68_vm2, %v114_v33, 0.0 }
  0xe6   :  { %121 = vadd.xlane.f32.xlu1 %v120_v34 }
 0x16f   :  { %v119_v35 = vpop.xlane.xlu1 %118 }
 0x170   :  { %v124_v36 = vmul.f32 0.03125, %v119_v35 }
 0x172   :  { %v126_v37 = vsub.f32 %v113_v31, %v124_v36 }
 0x173   :  { %v122_v38 = vpop.xlane.xlu1 %121 }
 0x174   :  { %v125_v39 = vmul.f32 0.03125, %v122_v38  ;;  %v128_v40 = vmul.f32 %v126_v37, %v126_v37 }
 0x176   :  { %v127_v41 = vsub.f32 %v114_v33, %v125_v39  ;;  %v130_v42 = vsel %vm68_vm2, %v128_v40, 0.0 }
 0x177   :  { %131 = vadd.xlane.f32.xlu0 %v130_v42 }
 0x178   :  { %v129_v43 = vmul.f32 %v127_v41, %v127_v41 }
 0x17a   :  { %v133_v44 = vsel %vm68_vm2, %v129_v43, 0.0 }
 0x17b   :  { %134 = vadd.xlane.f32.xlu1 %v133_v44 }
 0x204   :  { %v132_v45 = vpop.xlane.xlu0 %131 }
 0x205   :  { %v136_v46 = vmul.f32 0.03125, %v132_v45 }
 0x207   :  { %v138_v47 = vadd.f32 1e-05, %v136_v46 }
 0x208   :  { %v135_v48 = vpop.xlane.xlu1 %134 }
 0x209   :  { %221 = vrsqrt.f32 %v138_v47  ;;  %v137_v49 = vmul.f32 0.03125, %v135_v48 }
 0x20b   :  { %v139_v50 = vadd.f32 1e-05, %v137_v49 }
 0x20d   :  { %223 = vrsqrt.f32 %v139_v50 }
 0x213   :  { %v222_v51 = vpop.eup %221 }
 0x214   :  { %v142_v53 = vmul.f32 %v222_v51, %v126_v37 }
 0x216   :  { %v148_v55 = vmul.f32 %v194_v52, %v142_v53 }
 0x217   :  { %v224_v56 = vpop.eup %223 }
 0x218   :  { %v143_v57 = vmul.f32 %v224_v56, %v127_v41  ;;  %v154_v58 = vadd.f32 %v195_v54, %v148_v55 }
 0x21a   :  { %v149_v59 = vmul.f32 %v194_v52, %v143_v57  ;;  %v196_v60 = vmul.f32 -1.442695, %v154_v58 }
 0x21c   :  { %v155_v61 = vadd.f32 %v195_v54, %v149_v59  ;;  %225 = vpow2.f32 %v196_v60 }
 0x21e   :  { %v197_v62 = vmul.f32 -1.442695, %v155_v61 }
 0x220   :  { %227 = vpow2.f32 %v197_v62 }
 0x226   :  { %v226_v63 = vpop.eup %225 }
 0x227   :  { %v162_v0 = vadd.f32 1.0, %v226_v63 }
 0x229   :  { %229 = vrcp.f32 %v162_v0 }
 0x22a   :  { %v228_v1 = vpop.eup %227 }
 0x22b   :  { %v163_v2 = vadd.f32 1.0, %v228_v1 }
 0x22d   :  { %231 = vrcp.f32 %v163_v2 }
 0x233   :  { %v230_v5 = vpop.eup %229 }
 0x234   :  { %v168_v6 = vmul.f32 %v230_v5, %v154_v58 }
 0x236   :  { %v170_v7 = vadd.f32 %v168_v6, %v297_v3 }
 0x237   :  { %v232_v8 = vpop.eup %231 }
 0x238   :  { %v169_v9 = vmul.f32 %v232_v8, %v155_v61  ;;  %172 = vst.msk [vmem:[#allocation2] sm:$0xff] %vm68_vm2, %v170_v7 }
 0x23a   :  { %v171_v10 = vadd.f32 %v169_v9, %v302_v4 }
 0x23c   :  { %173 = vst.msk [vmem:[#allocation2 + $0x8] sm:$0xff] %vm68_vm2, %v171_v10 }
 0x23d   :  { %244 = shalt.err (!%p241_p4)
}
 0x23e   :  { %s245_s13 = scalar_lea.hbm %s352_s4, 256 }
 0x23f   :  { %p246_p5 = scmp.ne.s32.totalorder %s352_s4, %s245_s13  ;;  %p249_p6 = scmp.lt.u32.totalorder %s245_s13, %s352_s4 }
 0x241   :  { %p251_p7 = pnand %p249_p6, %p246_p5 }
 0x243   :  { %254 = shalt.err (!%p251_p7)
}
 0x244   :  { %s261_s18 = smov 128   ;;  %s262_s19 = smov 8  }
 0x245   :  { %185 = dma.vmem_to_hbm [thread:$0]  %s180_s9, 256, %s352_s4, [#allocation3], %s261_s18, %s261_s18, %s262_s19  }
 0x246   :  { %255 = dma.done.wait [#allocation3], 256  }
 0x247   :  { %256 = vsyncadd [#allocation3], 4294967040 }
 0x248   :  { %189 = vsyncpa [#allocation3], 1 }

// kernel: alignn_conv.5
= control target key start
LH: loop header
LB: loop body
LE: loop exit
PB: predicated region body
PF: predicated region fallthrough
CT: control target
= control target key end

     0   :  { %v205_v1 = vmov 0.0   ;;  %vm206_vm0 = vmmov 0   ;;  %vm21_vm1 = vcmask 523264   ;;  %s274_s0 = inlined_call_operand.vmem [shape: f32[8,32], index: 0, kind: input, shape index: {}]   ;;  %s275_s1 = inlined_call_operand.vmem [shape: f32[2,8,64], index: 1, kind: input, shape index: {}]   ;;  %s276_s2 = inlined_call_operand.vmem [shape: bf16[32,32], index: 2, kind: input, shape index: {}]   ;;  %s277_s3 = inlined_call_operand.vmem [shape: f32[8,32], index: 3, kind: input, shape index: {}]   ;;  %s278_s4 = inlined_call_operand.hbm [shape: f32[8,32], index: 4, kind: output, shape index: {}]  }
   0x1   :  { %v171_v0 = vld [vmem:[%s276_s2] sm:$0xff]   ;;  %159 = vmatprep.subr.bf16.mxu0 %v205_v1  ;;  %v172_v2 = vld [vmem:[%s276_s2 + $0x8] sm:$0xff]   ;;  %163 = vmatprep.mubr.msk.bf16.mxu0 %vm206_vm0, %v205_v1 }
   0x2   :  { %160 = vmatpush3.bf16.msra.mxu0 %v171_v0  ;;  %v32_v3 = vld [vmem:[%s274_s0] sm:$0xff]  ;;  %v20_v5 = vld [vmem:[%s275_s1 + $0x8] sm:$0xff] }
   0x3   :  { %v19_v4 = vld [vmem:[%s275_s1] sm:$0xff]  ;;  %161 = vmatprep.subr.bf16.mxu0 %v205_v1  ;;  %v23_v7 = vsel %vm21_vm1, %v20_v5, 0.0 }
   0x4   :  { %v22_v6 = vsel %vm21_vm1, %v19_v4, 0.0 }
   0x5   :  { %9 = vsyncpa [#allocation3], 0  ;;  %v24_v8 = vadd.f32 %v23_v7, %v22_v6  ;;  %v33_v9 = vpack.c.bf16 %v32_v3, %v32_v3  ;;  %vm55_vm2 = vcmask 261120   ;;  %s207_s2 = smov 96   ;;  %v149_v13 = vld [vmem:[%s277_s3] ss:$0 sm:$0xff] }
   0x6   :  { %162 = vmatpush3.bf16.msra.mxu0 %v172_v2  ;;  %v153_v31 = vld [vmem:[%s277_s3 + $0x1] ss:$0 sm:$0xff]  ;;  %v154_v33 = vld [vmem:[%s277_s3 + $0x2] ss:$0 sm:$0xff]  ;;  %s208_s29 = smov [#allocation2]  }
   0x7   :  { %v25_v10 = vadd.f32 1e-06, %v24_v8  ;;  %s141_s30 = sshll.u32 %s208_s29, 4  ;;  %s142_s30 = int_to_ptr.vmem [resolvable:$true] %s141_s30 }
   0x8   :  { %s181_s5 = scalar_lea.vmem %s142_s30, 128  ;;  %p186_p1 = scmp.lt.s32.totalorder %s142_s30, %s142_s30 }
   0x9   :  { %27 = vrot.lane.b32.xlu0 %v25_v10, %s207_s2  ;;  %164 = vmatmul.mubr.msk.bf16.vlgmr.msra.gmra.mrb[0].mxu0 %vm55_vm2, %v33_v9  ;;  %p182_p0 = scmp.ne.s32.totalorder %s142_s30, %s181_s5  ;;  %p187_p2 = scmp.lt.s32.totalorder %s181_s5, %s181_s5 }
   0xb   :  { %p188_p3 = por %p187_p2, %p186_p1 }
   0xd   :  { %p189_p4 = pnand %p188_p3, %p182_p0 }
  0x7b   :  { %v28_v11 = vpop.permute.xlu0 %27 }
  0x7c   :  { %173 = vrcp.f32 %v28_v11 }
  0x86   :  { %v174_v12 = vpop.eup %173 }
  0x87   :  { %v31_v14 = vmul.f32 %v174_v12, %v24_v8 }
  0xdc   :  { %v93_v15 = vpop.f32.mrb[0].mxu0 }
  0xdd   :  { %v94_v16 = vadd.f32 %v149_v13, %v93_v15  ;;  %v165_v17 = vpop.f32.mrb[1].mxu0 }
  0xde   :  { %v96_v18 = vpop.f32.mrb[2].mxu0 }
  0xdf   :  { %v166_v19 = vpop.f32.mrb[3].mxu0  ;;  %v99_v20 = vadd.f32 %v94_v16, %v31_v14 }
  0xe1   :  { %v102_v21 = vsel %vm55_vm2, %v99_v20, 0.0 }
  0xe2   :  { %103 = vadd.xlane.f32.xlu0 %v102_v21 }
 0x16f   :  { %v104_v22 = vpop.xlane.xlu0 %103 }
 0x170   :  { %v106_v23 = vmul.f32 0.03125, %v104_v22 }
 0x172   :  { %v107_v24 = vsub.f32 %v99_v20, %v106_v23 }
 0x174   :  { %v108_v25 = vmul.f32 %v107_v24, %v107_v24 }
 0x176   :  { %v109_v26 = vsel %vm55_vm2, %v108_v25, 0.0 }
 0x177   :  { %110 = vadd.xlane.f32.xlu1 %v109_v26 }
 0x204   :  { %v111_v27 = vpop.xlane.xlu1 %110 }
 0x205   :  { %v112_v28 = vmul.f32 0.03125, %v111_v27 }
 0x207   :  { %v113_v29 = vadd.f32 1e-05, %v112_v28 }
 0x209   :  { %175 = vrsqrt.f32 %v113_v29 }
 0x213   :  { %v176_v30 = vpop.eup %175 }
 0x214   :  { %v115_v32 = vmul.f32 %v176_v30, %v107_v24 }
 0x216   :  { %v120_v34 = vmul.f32 %v153_v31, %v115_v32 }
 0x218   :  { %v125_v35 = vadd.f32 %v154_v33, %v120_v34 }
 0x21a   :  { %v155_v36 = vmul.f32 -1.442695, %v125_v35 }
 0x21c   :  { %177 = vpow2.f32 %v155_v36 }
 0x226   :  { %v178_v37 = vpop.eup %177 }
 0x227   :  { %v129_v38 = vadd.f32 1.0, %v178_v37 }
 0x229   :  { %179 = vrcp.f32 %v129_v38 }
 0x233   :  { %v180_v39 = vpop.eup %179 }
 0x234   :  { %v132_v40 = vmul.f32 %v180_v39, %v125_v35 }
 0x236   :  { %v133_v41 = vadd.f32 %v132_v40, %v32_v3 }
 0x238   :  { %134 = vst.msk [vmem:[#allocation2] sm:$0xff] %vm55_vm2, %v133_v41 }
 0x239   :  { %192 = shalt.err (!%p189_p4)
}
 0x23a   :  { %s193_s7 = scalar_lea.hbm %s278_s4, 128 }
 0x23b   :  { %p194_p5 = scmp.ne.s32.totalorder %s278_s4, %s193_s7  ;;  %p197_p6 = scmp.lt.u32.totalorder %s193_s7, %s278_s4 }
 0x23d   :  { %p199_p7 = pnand %p197_p6, %p194_p5 }
 0x23f   :  { %202 = shalt.err (!%p199_p7)
}
 0x240   :  { %144 = dma.vmem_to_hbm [thread:$0]  %s142_s30, 128, %s278_s4, [#allocation3]  }
 0x241   :  { %203 = dma.done.wait [#allocation3], 128  }
 0x242   :  { %204 = vsyncadd [#allocation3], 4294967168 }
 0x243   :  { %148 = vsyncpa [#allocation3], 1 }

// kernel: alignn_conv.4
= control target key start
LH: loop header
LB: loop body
LE: loop exit
PB: predicated region body
PF: predicated region fallthrough
CT: control target
= control target key end

     0   :  { %s2373_s13 = smov 0   ;;  %s2375_s14 = smov 0   ;;  %s3191_s0 = inlined_call_operand.vmem [shape: f32[8,32], index: 0, kind: input, shape index: {}]   ;;  %s3192_s1 = inlined_call_operand.vmem [shape: f32[256,32], index: 1, kind: input, shape index: {}]   ;;  %s3193_s2 = inlined_call_operand.vmem [shape: s32[256,1], index: 2, kind: input, shape index: {}]   ;;  %s3194_s3 = inlined_call_operand.vmem [shape: s32[256,1], index: 3, kind: input, shape index: {}]   ;;  %s3195_s4 = inlined_call_operand.vmem [shape: s32[1,256], index: 4, kind: input, shape index: {}]   ;;  %s3196_s5 = inlined_call_operand.vmem [shape: bf16[32,96], index: 5, kind: input, shape index: {}]   ;;  %s3197_s6 = inlined_call_operand.vmem [shape: f32[1,96], index: 6, kind: input, shape index: {}]   ;;  %s3198_s7 = inlined_call_operand.vmem [shape: bf16[32,32], index: 7, kind: input, shape index: {}]   ;;  %s3199_s8 = inlined_call_operand.vmem [shape: f32[8,32], index: 8, kind: input, shape index: {}]   ;;  %s3200_s9 = inlined_call_operand.vmem [shape: f32[2,8,64], index: 9, kind: output, shape index: {0}]   ;;  %s3201_s10 = inlined_call_operand.vmem [shape: f32[256,32], index: 10, kind: output, shape index: {1}]  }
   0x1   :  { %s2377_s15 = smov 0  }
   0x2 LB: > { %s33_s16 = sadd.s32 1, %s2304_s14  ;;  %p1935_p0 = scmp.ge.s32.totalorder %s2308_s15, 1  ;;  %s2308_s15 = sphi %s2377_s15, %s21_s15   ;;  %s2304_s14 = sphi %s2375_s14, %s3203_s14   ;;  %s2300_s13 = sphi %s2373_s13, %s3202_s13  }
   0x3   : > { %p35_p1 = scmp.ge.s32.totalorder %s33_s16, 2  ;;  %p376_p2 = scmp.lt.s32.totalorder %s2308_s15, 3 }
   0x5   : > { %s3205_s16 = smov (%p35_p1, %s33_s16), 0  ;;  %p377_p3 = pnand %p1935_p0, %p376_p2 }
   0x6   : > { %v2106_v0 = vld [vmem:[%s3196_s5] sm:$0xff] (!%p377_p3)   ;;  %v2310_v1 = vmov (!%p377_p3), 0.0   ;;  %v2107_v2 = vld [vmem:[%s3196_s5 + $0x8] sm:$0xff] (!%p377_p3)   ;;  %vm2311_vm0 = vmmov (!%p377_p3), 0   ;;  %s1936_s23 = sshll.u32 (!%p377_p3), %s2300_s13, 4  ;;  %v2312_v4 = vmov (!%p377_p3), 0   ;;  %v589_v39 = vlaneseq (!%p377_p3) }
   0x7   : > { %380 = sbr.rel (%p377_p3) target bundleno = 1183 (0x49f), region = 56  ;;  %2022 = vmatprep.subr.bf16.mxu0 (!%p377_p3), %v2310_v1  ;;  %2026 = vmatprep.mubr.msk.bf16.mxu0 (!%p377_p3), %vm2311_vm0, %v2310_v1  ;;  %v482_v3 = vld [vmem:[%s3191_s0] sm:$0xff] (!%p377_p3)  ;;  %p438_p4 = scmp.lt.s32.totalorder (!%p377_p3), %s1936_s23, 31  ;;  %vm507_vm1 = vcmask (!%p377_p3), 261120   ;;  %vm552_vm2 = vcmask (!%p377_p3), 523264   ;;  %v2109_v48 = vld [vmem:[%s3198_s7 + $0x8] sm:$0xff] (!%p377_p3)  }
   0x8   : > { %2023 = vmatpush3.bf16.msra.mxu0 (!%p377_p3), %v2106_v0  ;;  %2104 = vset.pattern.permute.xlu0 (!%p377_p3), %v2312_v4  ;;  %v483_v5 = vpack.c.bf16 (!%p377_p3), %v482_v3, %v482_v3  ;;  %s2313_s18 = smov (!%p377_p3), 16   ;;  %553 = vst.msk [vmem:[#allocation2] sm:$0xff] (!%p377_p3), %vm552_vm2, %v2312_v4  ;;  %554 = vst.msk [vmem:[#allocation2 + $0x8] sm:$0xff] (!%p377_p3), %vm552_vm2, %v2312_v4  ;;  %v2473_v40 = vand.u32 (!%p377_p3), 127, %v589_v39  ;;  %v2108_v47 = vld [vmem:[%s3198_s7] sm:$0xff] (!%p377_p3)   ;;  %vm815_vm9 = vcmask (!%p377_p3), 64512  }
   0x9   : > { %2024 = vmatprep.subr.bf16.mxu0 (!%p377_p3), %v2310_v1  ;;  %2105 = vset.pattern.permute.xlu1 (!%p377_p3), %v2312_v4  ;;  %555 = vst.msk [vmem:[#allocation2 + $0x10] sm:$0xff] (!%p377_p3), %vm552_vm2, %v2312_v4  ;;  %p461_p5 = scmp.lt.s32.totalorder (!%p377_p3), %s2300_s13, 1 }
   0xa   : > { %586 = vst.msk [vmem:[#allocation2 + $0x8] sm:$0xff] (!%p377_p3), %vm507_vm1, %v2108_v47  ;;  %587 = vst.msk [vmem:[#allocation2 + $0x10] sm:$0xff] (!%p377_p3), %vm507_vm1, %v2109_v48 }
   0xc   : > { %2025 = vmatpush3.bf16.msra.mxu0 (!%p377_p3), %v2107_v2 }
   0xd   : > { %2052 = vmatprep.subr.bf16.mxu0 (!%p377_p3), %v2310_v1 }
   0xe   : > { %s3207_s23 = smov (!%p438_p4, %s1936_s23), 31  ;;  %s3209_s13 = smov (!%p461_p5, %s2300_s13), 1 }
   0xf   : > { %s2409_s24 = sshll.u32 %s3207_s23, 3  ;;  %2027 = vmatmul.mubr.msk.bf16.vlgmr.msra.gmra.mrb[0].mxu0 %vm507_vm1, %v483_v5  ;;  %s2314_s23 = smov 8  }
  0x10   : > { %s2416_s27 = scalar_lea.vmem %s3194_s3, %s2409_s24  ;;  %2068 = vmatprep.mubr.msk.bf16.mxu0 %vm2311_vm0, %v2310_v1  ;;  %s2441_s30 = scalar_lea.vmem %s3193_s2, %s2409_s24 }
  0x11   : > { %v695_v6 = vld [vmem:[%s2416_s27] sm:$0xff]  ;;  %v697_v7 = vld [vmem:[%s2416_s27 + $0x10] sm:$0xff]  ;;  %v696_v8 = vld [vmem:[%s2416_s27 + $0x8] sm:$0xff]  ;;  %s2453_s17 = scalar_lea.vmem %s3192_s1, %s2409_s24 }
  0x12   : > { %712 = vperm.xlu0 %2104, %v695_v6   ;;  %718 = vperm.xlu1 %2105, %v697_v7   ;;  %v698_v9 = vld [vmem:[%s2416_s27 + $0x18] sm:$0xff]  ;;  %v699_v10 = vld [vmem:[%s2416_s27 + $0x20] sm:$0xff]  ;;  %v700_v11 = vld [vmem:[%s2416_s27 + $0x28] sm:$0xff] }
  0x13   : > { %v701_v12 = vld [vmem:[%s2416_s27 + $0x30] sm:$0xff]  ;;  %v702_v13 = vld [vmem:[%s2416_s27 + $0x38] sm:$0xff]  ;;  %v703_v14 = vld [vmem:[%s2416_s27 + $0x40] sm:$0xff] }
  0x14   : > { %v704_v15 = vld [vmem:[%s2416_s27 + $0x48] sm:$0xff]  ;;  %v705_v16 = vld [vmem:[%s2416_s27 + $0x50] sm:$0xff]  ;;  %v706_v17 = vld [vmem:[%s2416_s27 + $0x58] sm:$0xff] }
  0x15   : > { %v707_v18 = vld [vmem:[%s2416_s27 + $0x60] sm:$0xff]  ;;  %v708_v19 = vld [vmem:[%s2416_s27 + $0x68] sm:$0xff]  ;;  %v709_v20 = vld [vmem:[%s2416_s27 + $0x70] sm:$0xff] }
  0x16   : > { %715 = vperm.xlu0 %2104, %v696_v8   ;;  %721 = vperm.xlu1 %2105, %v698_v9   ;;  %v710_v21 = vld [vmem:[%s2416_s27 + $0x78] sm:$0xff]  ;;  %v591_v22 = vld [vmem:[%s2441_s30] sm:$0xff]  ;;  %v592_v23 = vld [vmem:[%s2441_s30 + $0x8] sm:$0xff]  ;;  %s2315_s27 = smov 96  }
  0x17   : > { %v593_v24 = vld [vmem:[%s2441_s30 + $0x10] sm:$0xff]  ;;  %v594_v25 = vld [vmem:[%s2441_s30 + $0x18] sm:$0xff]  ;;  %v595_v26 = vld [vmem:[%s2441_s30 + $0x20] sm:$0xff] }
  0x18   : > { %v596_v27 = vld [vmem:[%s2441_s30 + $0x28] sm:$0xff]  ;;  %v597_v28 = vld [vmem:[%s2441_s30 + $0x30] sm:$0xff]  ;;  %v598_v29 = vld [vmem:[%s2441_s30 + $0x38] sm:$0xff] }
  0x19   : > { %v799_v30 = vld [vmem:[%s2453_s17] sm:$0xff]  ;;  %v800_v31 = vld [vmem:[%s2453_s17 + $0x8] sm:$0xff]  ;;  %v801_v32 = vld [vmem:[%s2453_s17 + $0x10] sm:$0xff] }
  0x1a   : > { %724 = vperm.xlu0 %2104, %v699_v10   ;;  %727 = vperm.xlu1 %2105, %v700_v11   ;;  %v802_v33 = vld [vmem:[%s2453_s17 + $0x18] sm:$0xff]  ;;  %v865_v34 = vpack.c.bf16 %v800_v31, %v799_v30  ;;  %v599_v36 = vld [vmem:[%s2441_s30 + $0x40] sm:$0xff]  ;;  %v600_v37 = vld [vmem:[%s2441_s30 + $0x48] sm:$0xff] }
  0x1b   : > { %v866_v35 = vpack.c.bf16 %v802_v33, %v801_v32  ;;  %v601_v38 = vld [vmem:[%s2441_s30 + $0x50] sm:$0xff] }
  0x1c   : > { %v805_v48 = vld [vmem:[%s2453_s17 + $0x30] sm:$0xff] }
  0x1e   : > { %730 = vperm.xlu0 %2104, %v701_v12   ;;  %733 = vperm.xlu1 %2105, %v702_v13  }
  0x22   : > { %736 = vperm.xlu0 %2104, %v703_v14   ;;  %739 = vperm.xlu1 %2105, %v704_v15  }
  0x26   : > { %742 = vperm.xlu0 %2104, %v705_v16   ;;  %745 = vperm.xlu1 %2105, %v706_v17  }
  0x2a   : > { %748 = vperm.xlu0 %2104, %v707_v18   ;;  %751 = vperm.xlu1 %2105, %v708_v19  }
  0x2e   : > { %754 = vperm.xlu0 %2104, %v709_v20   ;;  %757 = vperm.xlu1 %2105, %v710_v21  }
  0x32   : > { %608 = vperm.xlu0 %2104, %v591_v22   ;;  %611 = vperm.xlu1 %2105, %v592_v23  }
  0x36   : > { %614 = vperm.xlu0 %2104, %v593_v24   ;;  %617 = vperm.xlu1 %2105, %v594_v25  }
  0x3a   : > { %620 = vperm.xlu0 %2104, %v595_v26   ;;  %623 = vperm.xlu1 %2105, %v596_v27  }
  0x3e   : > { %626 = vperm.xlu0 %2104, %v597_v28   ;;  %629 = vperm.xlu1 %2105, %v598_v29   ;;  %v1945_v29 = vld [vmem:[%s3197_s6] ss:$0 sm:$0xff] }
  0x42   : > { %881 = vrot.lane.b32.xlu0 %v865_v34, %s2313_s18  ;;  %883 = vrot.lane.b32.xlu1 %v866_v35, %s2313_s18 }
  0x46   : > { %632 = vperm.xlu0 %2104, %v599_v36   ;;  %635 = vperm.xlu1 %2105, %v600_v37  }
  0x4a   : > { %638 = vperm.xlu0 %2104, %v601_v38  }
  0x91   : > { %v713_v41 = vpop.permute.xlu0 %712  ;;  %v719_v42 = vpop.permute.xlu1 %718 }
  0x92   : > { %vm759_vm3 = vcmp.eq.s32.totalorder %v2473_v40, %v713_v41  ;;  %vm761_vm4 = vcmp.eq.s32.totalorder %v2473_v40, %v719_v42  ;;  %v803_v41 = vld [vmem:[%s2453_s17 + $0x20] sm:$0xff]  ;;  %v804_v42 = vld [vmem:[%s2453_s17 + $0x28] sm:$0xff] }
  0x93   : > { %v775_v43 = vsel %vm759_vm3, 1.0, %v2310_v1  ;;  %v777_v44 = vsel %vm761_vm4, 1.0, %v2310_v1 }
  0x95   : > { %v716_v45 = vpop.permute.xlu0 %715  ;;  %v722_v46 = vpop.permute.xlu1 %721 }
  0x96   : > { %vm760_vm5 = vcmp.eq.s32.totalorder %v2473_v40, %v716_v45  ;;  %vm762_vm6 = vcmp.eq.s32.totalorder %v2473_v40, %v722_v46  ;;  %v867_v45 = vpack.c.bf16 %v804_v42, %v803_v41 }
  0x97   : > { %v776_v49 = vsel %vm760_vm5, 1.0, %v2310_v1  ;;  %v778_v50 = vsel %vm762_vm6, 1.0, %v2310_v1  ;;  %vm556_vm6 = vcmask 257024  }
  0x98   : > { %v791_v51 = vpack.c.bf16 %v776_v49, %v775_v43  ;;  %v792_v52 = vpack.c.bf16 %v778_v50, %v777_v44  ;;  %v602_v44 = vld [vmem:[%s2441_s30 + $0x58] sm:$0xff] }
  0x99   : > { %v2491_v53 = vpop.permute.xlu0 %724  ;;  %v2493_v54 = vpop.permute.xlu1 %727  ;;  %v806_v49 = vld [vmem:[%s2453_s17 + $0x38] sm:$0xff] }
  0x9a   : > { %832 = vrot.lane.b32.xlu0 %v791_v51, %s2314_s23  ;;  %834 = vrot.lane.b32.xlu1 %v792_v52, %s2314_s23  ;;  %vm763_vm4 = vcmp.eq.s32.totalorder %v2473_v40, %v2491_v53  ;;  %vm764_vm5 = vcmp.eq.s32.totalorder %v2473_v40, %v2493_v54  ;;  %v603_v51 = vld [vmem:[%s2441_s30 + $0x60] sm:$0xff]  ;;  %v868_v52 = vpack.c.bf16 %v806_v49, %v805_v48  ;;  %v605_v53 = vld [vmem:[%s2441_s30 + $0x70] sm:$0xff] }
  0x9b   : > { %v779_v36 = vsel %vm763_vm4, 1.0, %v2310_v1  ;;  %v780_v37 = vsel %vm764_vm5, 1.0, %v2310_v1  ;;  %vm856_vm4 = vcmask 130112   ;;  %vm905_vm5 = vcmask 392320  }
  0x9c   : > { %v793_v43 = vpack.c.bf16 %v780_v37, %v779_v36 }
  0x9d   : > { %v2497_v55 = vpop.permute.xlu0 %730  ;;  %v2499_v56 = vpop.permute.xlu1 %733 }
  0xa1   : > { %v2501_v57 = vpop.permute.xlu0 %736  ;;  %v2503_v58 = vpop.permute.xlu1 %739 }
  0xa5   : > { %v2505_v59 = vpop.permute.xlu0 %742  ;;  %v2507_v60 = vpop.permute.xlu1 %745 }
  0xa9   : > { %v2509_v61 = vpop.permute.xlu0 %748  ;;  %v2511_v62 = vpop.permute.xlu1 %751 }
  0xad   : > { %v2513_v63 = vpop.permute.xlu0 %754  ;;  %v2515_v0 = vpop.permute.xlu1 %757 }
  0xb1   : > { %v609_v2 = vpop.permute.xlu0 %608  ;;  %v612_v3 = vpop.permute.xlu1 %611 }
  0xb2   : > { %vm655_vm7 = vcmp.eq.s32.totalorder %v2473_v40, %v609_v2  ;;  %vm656_vm8 = vcmp.eq.s32.totalorder %v2473_v40, %v612_v3  ;;  %v807_v2 = vld [vmem:[%s2453_s17 + $0x40] sm:$0xff]  ;;  %v808_v3 = vld [vmem:[%s2453_s17 + $0x48] sm:$0xff] }
  0xb3   : > { %v671_v4 = vsel %vm655_vm7, 1.0, %v2310_v1  ;;  %v672_v5 = vsel %vm656_vm8, 1.0, %v2310_v1  ;;  %vm765_vm7 = vcmp.eq.s32.totalorder %v2473_v40, %v2497_v55  ;;  %vm766_vm8 = vcmp.eq.s32.totalorder %v2473_v40, %v2499_v56  ;;  %v604_v56 = vld [vmem:[%s2441_s30 + $0x68] sm:$0xff] }
  0xb4   : > { %v687_v6 = vpack.c.bf16 %v672_v5, %v671_v4  ;;  %v781_v46 = vsel %vm765_vm7, 1.0, %v2310_v1  ;;  %v782_v47 = vsel %vm766_vm8, 1.0, %v2310_v1  ;;  %vm562_vm7 = vcmask 519424  }
  0xb5   : > { %v615_v7 = vpop.permute.xlu0 %614  ;;  %v618_v8 = vpop.permute.xlu1 %617  ;;  %v794_v50 = vpack.c.bf16 %v782_v47, %v781_v46  ;;  %vm568_vm8 = vcmask 261124  }
  0xb6   : > { %vm657_vm10 = vcmp.eq.s32.totalorder %v2473_v40, %v615_v7  ;;  %vm658_vm11 = vcmp.eq.s32.totalorder %v2473_v40, %v618_v8  ;;  %816 = vst.msk [vmem:[#allocation3] sm:$0xff] %vm815_vm9, %v687_v6  ;;  %v809_v7 = vld [vmem:[%s2453_s17 + $0x50] sm:$0xff]  ;;  %v810_v8 = vld [vmem:[%s2453_s17 + $0x58] sm:$0xff] }
  0xb7   : > { %v673_v9 = vsel %vm657_vm10, 1.0, %v2310_v1  ;;  %v674_v10 = vsel %vm658_vm11, 1.0, %v2310_v1  ;;  %vm767_vm10 = vcmp.eq.s32.totalorder %v2473_v40, %v2501_v57  ;;  %vm768_vm11 = vcmp.eq.s32.totalorder %v2473_v40, %v2503_v58  ;;  %v606_v57 = vld [vmem:[%s2441_s30 + $0x78] sm:$0xff]  ;;  %s2316_s30 = smov 32  }
  0xb8   : > { %v688_v11 = vpack.c.bf16 %v674_v10, %v673_v9  ;;  %v783_v54 = vsel %vm767_vm10, 1.0, %v2310_v1  ;;  %v784_v55 = vsel %vm768_vm11, 1.0, %v2310_v1  ;;  %v869_v58 = vpack.c.bf16 %v808_v3, %v807_v2 }
  0xb9   : > { %v621_v12 = vpop.permute.xlu0 %620  ;;  %v624_v13 = vpop.permute.xlu1 %623  ;;  %v795_v4 = vpack.c.bf16 %v784_v55, %v783_v54 }
  0xba   : > { %vm659_vm12 = vcmp.eq.s32.totalorder %v2473_v40, %v621_v12  ;;  %vm660_vm13 = vcmp.eq.s32.totalorder %v2473_v40, %v624_v13  ;;  %817 = vst.msk [vmem:[#allocation3 + $0x8] sm:$0xff] %vm815_vm9, %v688_v11  ;;  %v870_v11 = vpack.c.bf16 %v810_v8, %v809_v7 }
  0xbb   : > { %v675_v14 = vsel %vm659_vm12, 1.0, %v2310_v1  ;;  %v676_v15 = vsel %vm660_vm13, 1.0, %v2310_v1  ;;  %vm769_vm12 = vcmp.eq.s32.totalorder %v2473_v40, %v2505_v59  ;;  %vm770_vm13 = vcmp.eq.s32.totalorder %v2473_v40, %v2507_v60 }
  0xbc   : > { %v689_v16 = vpack.c.bf16 %v676_v15, %v675_v14  ;;  %v785_v5 = vsel %vm769_vm12, 1.0, %v2310_v1  ;;  %v786_v59 = vsel %vm770_vm13, 1.0, %v2310_v1 }
  0xbd   : > { %v627_v17 = vpop.permute.xlu0 %626  ;;  %v630_v18 = vpop.permute.xlu1 %629  ;;  %v796_v9 = vpack.c.bf16 %v786_v59, %v785_v5 }
  0xbe   : > { %vm661_vm14 = vcmp.eq.s32.totalorder %v2473_v40, %v627_v17  ;;  %vm662_vm15 = vcmp.eq.s32.totalorder %v2473_v40, %v630_v18  ;;  %818 = vst.msk [vmem:[#allocation3 + $0x10] sm:$0xff] %vm815_vm9, %v689_v16  ;;  %v813_v16 = vld [vmem:[%s2453_s17 + $0x70] sm:$0xff]  ;;  %v814_v17 = vld [vmem:[%s2453_s17 + $0x78] sm:$0xff] }
  0xbf   : > { %v677_v19 = vsel %vm661_vm14, 1.0, %v2310_v1  ;;  %v678_v20 = vsel %vm662_vm15, 1.0, %v2310_v1  ;;  %vm771_vm14 = vcmp.eq.s32.totalorder %v2473_v40, %v2509_v61  ;;  %vm772_vm15 = vcmp.eq.s32.totalorder %v2473_v40, %v2511_v62  ;;  %v811_v61 = vld [vmem:[%s2453_s17 + $0x60] sm:$0xff]  ;;  %v812_v62 = vld [vmem:[%s2453_s17 + $0x68] sm:$0xff] }
  0xc0   : > { %v690_v21 = vpack.c.bf16 %v678_v20, %v677_v19  ;;  %v787_v60 = vsel %vm771_vm14, 1.0, %v2310_v1  ;;  %v788_v6 = vsel %vm772_vm15, 1.0, %v2310_v1  ;;  %v871_v12 = vpack.c.bf16 %v812_v62, %v811_v61 }
  0xc1   : > { %v2536_v22 = vpop.permute.xlu0 %881  ;;  %v2538_v23 = vpop.permute.xlu1 %883  ;;  %v797_v10 = vpack.c.bf16 %v788_v6, %v787_v60 }
  0xc2   : > { %819 = vst.msk [vmem:[#allocation3 + $0x18] sm:$0xff] %vm815_vm9, %v690_v21 }
  0xc5   : > { %v633_v24 = vpop.permute.xlu0 %632  ;;  %v636_v25 = vpop.permute.xlu1 %635 }
  0xc6   : > { %vm663_vm0 = vcmp.eq.s32.totalorder %v2473_v40, %v633_v24  ;;  %vm664_vm3 = vcmp.eq.s32.totalorder %v2473_v40, %v636_v25 }
  0xc7   : > { %v679_v26 = vsel %vm663_vm0, 1.0, %v2310_v1  ;;  %v680_v27 = vsel %vm664_vm3, 1.0, %v2310_v1  ;;  %vm773_vm0 = vcmp.eq.s32.totalorder %v2473_v40, %v2513_v63  ;;  %vm774_vm3 = vcmp.eq.s32.totalorder %v2473_v40, %v2515_v0 }
  0xc8   : > { %v691_v28 = vpack.c.bf16 %v680_v27, %v679_v26  ;;  %v789_v13 = vsel %vm773_vm0, 1.0, %v2310_v1  ;;  %v790_v14 = vsel %vm774_vm3, 1.0, %v2310_v1  ;;  %v872_v63 = vpack.c.bf16 %v814_v17, %v813_v16  ;;  %v924_v27 = vld [vmem:[#allocation2 + $0x10] sm:$0xff] }
  0xc9   : > { %v639_v15 = vpop.permute.xlu0 %638  ;;  %v798_v18 = vpack.c.bf16 %v790_v14, %v789_v13 }
  0xca   : > { %820 = vst.msk [vmem:[#allocation3 + $0x20] sm:$0xff] %vm815_vm9, %v691_v28  ;;  %vm665_vm10 = vcmp.eq.s32.totalorder %v2473_v40, %v639_v15 }
  0xe2   : > { %v545_v30 = vpop.f32.mrb[0].mxu0 }
  0xe3   : > { %v546_v31 = vadd.f32 %v1945_v29, %v545_v30  ;;  %v2028_v32 = vpop.f32.mrb[1].mxu0  ;;  %v681_v29 = vsel %vm665_vm10, 1.0, %v2310_v1 }
  0xe4   : > { %v548_v33 = vpop.f32.mrb[2].mxu0 }
  0xe5   : > { %v551_v34 = vpack.c.bf16 %v546_v31, %v546_v31  ;;  %v2029_v35 = vpop.f32.mrb[3].mxu0 }
  0xe7   : > { %559 = vrot.lane.b32.xlu0 %v551_v34, %s2315_s27  ;;  %v564_v38 = vrot.slane %v551_v34, 4  ;;  %557 = vst.msk [vmem:[#allocation2] sm:$0xf] %vm556_vm6, %v551_v34  ;;  %vm925_vm6 = vcmask 392192  }
  0xe9   : > { %565 = vrot.lane.b32.xlu1 %v564_v38, %s2315_s27 }
  0xeb   : > { %836 = vrot.lane.b32.xlu0 %v793_v43, %s2314_s23 }
  0xed   : > { %641 = vperm.xlu1 %2105, %v602_v44  }
  0xef   : > { %885 = vrot.lane.b32.xlu0 %v867_v45, %s2313_s18 }
  0xf1   : > { %838 = vrot.lane.b32.xlu1 %v794_v50, %s2314_s23 }
  0xf3   : > { %644 = vperm.xlu0 %2104, %v603_v51  }
  0xf5   : > { %887 = vrot.lane.b32.xlu1 %v868_v52, %s2313_s18 }
  0xf7   : > { %650 = vperm.xlu0 %2104, %v605_v53  }
  0xf9   : > { %647 = vperm.xlu1 %2105, %v604_v56  }
  0xfb   : > { %840 = vrot.lane.b32.xlu0 %v795_v4, %s2314_s23 }
  0xfd   : > { %653 = vperm.xlu1 %2105, %v606_v57   ;;  %v2660_v57 = vld [vmem:[%s3199_s8] ss:$0 sm:$0xff] }
  0xff   : > { %889 = vrot.lane.b32.xlu0 %v869_v58, %s2313_s18 }
 0x101   : > { %842 = vrot.lane.b32.xlu1 %v796_v9, %s2314_s23 }
 0x103   : > { %844 = vrot.lane.b32.xlu0 %v797_v10, %s2314_s23 }
 0x105   : > { %891 = vrot.lane.b32.xlu1 %v870_v11, %s2313_s18 }
 0x107   : > { %893 = vrot.lane.b32.xlu0 %v871_v12, %s2313_s18 }
 0x109   : > { %846 = vrot.lane.b32.xlu1 %v798_v18, %s2314_s23  ;;  %s1942_s23 = sshll.u32 %s3209_s13, 3 }
 0x10c   : > { %v833_v0 = vpop.permute.xlu0 %832  ;;  %v835_v19 = vpop.permute.xlu1 %834 }
 0x10d   : > { %857 = vst.msk [vmem:[#allocation3] sm:$0xff] %vm856_vm4, %v833_v0  ;;  %858 = vst.msk [vmem:[#allocation3 + $0x8] sm:$0xff] %vm856_vm4, %v835_v19  ;;  %895 = vrot.lane.b32.xlu1 %v872_v63, %s2313_s18  ;;  %s463_s18 = scalar_lea.vmem %s3195_s4, %s3209_s13 }
 0x10e   : > { %906 = vst.msk [vmem:[#allocation3] sm:$0xff] %vm905_vm5, %v2536_v22  ;;  %907 = vst.msk [vmem:[#allocation3 + $0x8] sm:$0xff] %vm905_vm5, %v2538_v23  ;;  %v923_v23 = vld [vmem:[#allocation2 + $0x8] sm:$0xff] }
 0x115   : > { %v914_v20 = vld [vmem:[#allocation3] sm:$0xff]  ;;  %v915_v32 = vld [vmem:[#allocation3 + $0x8] sm:$0xff] }
 0x116   : > { %2036 = vmatprep.mubr.msk.bf16.mxu1 %vm925_vm6, %v914_v20 }
 0x159   : > { %v560_v21 = vpop.permute.xlu0 %559 }
 0x15a   : > { %563 = vst.msk [vmem:[#allocation2] sm:$0xf] %vm562_vm7, %v560_v21 }
 0x15b   : > { %v566_v24 = vpop.permute.xlu1 %565 }
 0x15c   : > { %569 = vst.msk [vmem:[#allocation2] sm:$0xf0] %vm568_vm8, %v566_v24 }
 0x15d   : > { %v837_v25 = vpop.permute.xlu0 %836 }
 0x15e   : > { %859 = vst.msk [vmem:[#allocation3 + $0x10] sm:$0xff] %vm856_vm4, %v837_v25 }
 0x161   : > { %v886_v26 = vpop.permute.xlu0 %885 }
 0x162   : > { %908 = vst.msk [vmem:[#allocation3 + $0x10] sm:$0xff] %vm905_vm5, %v886_v26 }
 0x163   : > { %v922_v22 = vld [vmem:[#allocation2] sm:$0xff] }
 0x164   : > { %2030 = vmatprep.subr.bf16.mxu1 %v922_v22 }
 0x165   : > { %2031 = vmatpush3.bf16.msra.mxu1 %v922_v22 }
 0x166   : > { %2032 = vmatprep.subr.bf16.mxu1 %v923_v23 }
 0x169   : > { %2033 = vmatpush3.bf16.msra.mxu1 %v923_v23  ;;  %v916_v34 = vld [vmem:[#allocation3 + $0x10] sm:$0xff] }
 0x16a   : > { %2034 = vmatprep.subr.bf16.mxu1 %v924_v27 }
 0x16c   : > { %v642_v28 = vpop.permute.xlu1 %641 }
 0x16d   : > { %vm666_vm11 = vcmp.eq.s32.totalorder %v2473_v40, %v642_v28  ;;  %2035 = vmatpush3.bf16.msra.mxu1 %v924_v27 }
 0x16e   : > { %v682_v30 = vsel %vm666_vm11, 1.0, %v2310_v1 }
 0x16f   : > { %v692_v31 = vpack.c.bf16 %v682_v30, %v681_v29 }
 0x170   : > { %v839_v33 = vpop.permute.xlu1 %838  ;;  %2037 = vmatmul.mubr.msk.bf16.vlgmr.msra.gmra.mrb[0].mxu1 %vm925_vm6, %v915_v32 }
 0x171   : > { %821 = vst.msk [vmem:[#allocation3 + $0x28] sm:$0xff] %vm815_vm9, %v692_v31  ;;  %2040 = vmatprep.mubr.msk.bf16.mxu1 %vm925_vm6, %v916_v34 }
 0x172   : > { %860 = vst.msk [vmem:[#allocation3 + $0x18] sm:$0xff] %vm856_vm4, %v839_v33  ;;  %v645_v35 = vpop.permute.xlu0 %644 }
 0x173   : > { %vm667_vm12 = vcmp.eq.s32.totalorder %v2473_v40, %v645_v35 }
 0x174   : > { %v888_v36 = vpop.permute.xlu1 %887  ;;  %v683_v41 = vsel %vm667_vm12, 1.0, %v2310_v1 }
 0x175   : > { %909 = vst.msk [vmem:[#allocation3 + $0x18] sm:$0xff] %vm905_vm5, %v888_v36 }
 0x176   : > { %v651_v37 = vpop.permute.xlu0 %650 }
 0x177   : > { %vm669_vm14 = vcmp.eq.s32.totalorder %v2473_v40, %v651_v37 }
 0x178   : > { %v648_v38 = vpop.permute.xlu1 %647  ;;  %v685_v47 = vsel %vm669_vm14, 1.0, %v2310_v1 }
 0x179   : > { %vm668_vm13 = vcmp.eq.s32.totalorder %v2473_v40, %v648_v38 }
 0x17a   : > { %v684_v42 = vsel %vm668_vm13, 1.0, %v2310_v1  ;;  %v841_v43 = vpop.permute.xlu0 %840 }
 0x17b   : > { %v693_v44 = vpack.c.bf16 %v684_v42, %v683_v41  ;;  %861 = vst.msk [vmem:[#allocation3 + $0x20] sm:$0xff] %vm856_vm4, %v841_v43 }
 0x17c   : > { %v654_v45 = vpop.permute.xlu1 %653  ;;  %v917_v46 = vld [vmem:[#allocation3 + $0x18] sm:$0xff] }
 0x17d   : > { %822 = vst.msk [vmem:[#allocation3 + $0x30] sm:$0xff] %vm815_vm9, %v693_v44  ;;  %vm670_vm15 = vcmp.eq.s32.totalorder %v2473_v40, %v654_v45  ;;  %2041 = vmatmul.mubr.msk.bf16.gmra.mrb[4].mxu1 %vm925_vm6, %v917_v46 }
 0x17e   : > { %v686_v48 = vsel %vm670_vm15, 1.0, %v2310_v1  ;;  %v890_v49 = vpop.permute.xlu0 %889 }
 0x17f   : > { %v694_v50 = vpack.c.bf16 %v686_v48, %v685_v47  ;;  %910 = vst.msk [vmem:[#allocation3 + $0x20] sm:$0xff] %vm905_vm5, %v890_v49 }
 0x180   : > { %v843_v51 = vpop.permute.xlu1 %842 }
 0x181   : > { %823 = vst.msk [vmem:[#allocation3 + $0x38] sm:$0xff] %vm815_vm9, %v694_v50  ;;  %vm1333_vm9 = vcmask 523520  }
 0x182   : > { %862 = vst.msk [vmem:[#allocation3 + $0x28] sm:$0xff] %vm856_vm4, %v843_v51  ;;  %v845_v52 = vpop.permute.xlu0 %844 }
 0x183   : > { %863 = vst.msk [vmem:[#allocation3 + $0x30] sm:$0xff] %vm856_vm4, %v845_v52 }
 0x184   : > { %v892_v53 = vpop.permute.xlu1 %891 }
 0x185   : > { %911 = vst.msk [vmem:[#allocation3 + $0x28] sm:$0xff] %vm905_vm5, %v892_v53 }
 0x186   : > { %v894_v40 = vpop.permute.xlu0 %893  ;;  %v918_v54 = vld [vmem:[#allocation3 + $0x20] sm:$0xff] }
 0x187   : > { %912 = vst.msk [vmem:[#allocation3 + $0x30] sm:$0xff] %vm905_vm5, %v894_v40  ;;  %2044 = vmatprep.mubr.msk.bf16.mxu1 %vm925_vm6, %v918_v54 }
 0x188   : > { %v847_v55 = vpop.permute.xlu1 %846 }
 0x189   : > { %864 = vst.msk [vmem:[#allocation3 + $0x38] sm:$0xff] %vm856_vm4, %v847_v55 }
 0x18c   : > { %v896_v56 = vpop.permute.xlu1 %895  ;;  %v919_v2 = vld [vmem:[#allocation3 + $0x28] sm:$0xff] }
 0x18d   : > { %913 = vst.msk [vmem:[#allocation3 + $0x38] sm:$0xff] %vm905_vm5, %v896_v56  ;;  %2045 = vmatmul.mubr.msk.bf16.gmra.mrb[8].mxu1 %vm925_vm6, %v919_v2 }
 0x18e   : > { %v920_v3 = vld [vmem:[#allocation3 + $0x30] sm:$0xff] }
 0x18f   : > { %2048 = vmatprep.mubr.msk.bf16.mxu1 %vm925_vm6, %v920_v3 }
 0x194   : > { %v921_v4 = vld [vmem:[#allocation3 + $0x38] sm:$0xff] }
 0x195   : > { %2049 = vmatmul.mubr.msk.bf16.gmra.mrb[12].mxu1 %vm925_vm6, %v921_v4 }
 0x243   : > { %v2662_v58 = vpop.f32.mrb[0].mxu1 }
 0x244   : > { %v2666_v5 = vadd.f32 %v2662_v58, %v2660_v57  ;;  %v2668_v59 = vpop.f32.mrb[1].mxu1 }
 0x245   : > { %v2672_v60 = vadd.f32 %v2660_v57, %v2668_v59  ;;  %v2674_v6 = vpop.f32.mrb[2].mxu1 }
 0x246   : > { %v1962_v7 = vmul.f32 -1.442695, %v2666_v5  ;;  %v2679_v8 = vadd.f32 %v2674_v6, %v2660_v57  ;;  %v2681_v9 = vpop.f32.mrb[3].mxu1 }
 0x247   : > { %v1960_v61 = vmul.f32 -1.442695, %v2672_v60  ;;  %v2686_v62 = vadd.f32 %v2660_v57, %v2681_v9 }
 0x248   : > { %2110 = vpow2.f32 %v1962_v7  ;;  %v1963_v10 = vmul.f32 -1.442695, %v2679_v8 }
 0x249   : > { %2112 = vpow2.f32 %v1960_v61  ;;  %v1961_v11 = vmul.f32 -1.442695, %v2686_v62 }
 0x24a   : > { %2114 = vpow2.f32 %v1963_v10 }
 0x24b   : > { %2116 = vpow2.f32 %v1961_v11 }
 0x250   : > { %v2690_v12 = vpop.f32.mrb[4].mxu1 }
 0x251   : > { %v2694_v13 = vadd.f32 %v2690_v12, %v2660_v57  ;;  %v2696_v14 = vpop.f32.mrb[5].mxu1 }
 0x252   : > { %v2111_v15 = vpop.eup %2110  ;;  %v2700_v16 = vadd.f32 %v2660_v57, %v2696_v14  ;;  %v2702_v17 = vpop.f32.mrb[6].mxu1 }
 0x253   : > { %v2113_v18 = vpop.eup %2112  ;;  %v1118_v63 = vadd.f32 1.0, %v2111_v15  ;;  %v2706_v0 = vadd.f32 %v2702_v17, %v2660_v57  ;;  %v2708_v19 = vpop.f32.mrb[7].mxu1  ;;  %v1966_v22 = vmul.f32 -1.442695, %v2694_v13 }
 0x254   : > { %v2115_v20 = vpop.eup %2114  ;;  %v1116_v21 = vadd.f32 1.0, %v2113_v18  ;;  %v2712_v24 = vadd.f32 %v2660_v57, %v2708_v19  ;;  %v1964_v27 = vmul.f32 -1.442695, %v2700_v16 }
 0x255   : > { %v2117_v25 = vpop.eup %2116  ;;  %2118 = vrcp.f32 %v1118_v63  ;;  %v1119_v26 = vadd.f32 1.0, %v2115_v20  ;;  %v1967_v28 = vmul.f32 -1.442695, %v2706_v0 }
 0x256   : > { %2120 = vrcp.f32 %v1116_v21  ;;  %v1117_v23 = vadd.f32 1.0, %v2117_v25  ;;  %v1965_v29 = vmul.f32 -1.442695, %v2712_v24 }
 0x257   : > { %2122 = vrcp.f32 %v1119_v26 }
 0x258   : > { %2124 = vrcp.f32 %v1117_v23 }
 0x259   : > { %2126 = vpow2.f32 %v1966_v22 }
 0x25a   : > { %2128 = vpow2.f32 %v1964_v27 }
 0x25b   : > { %2130 = vpow2.f32 %v1967_v28 }
 0x25c   : > { %2132 = vpow2.f32 %v1965_v29 }
 0x25f   : > { %v2718_v30 = vpop.eup %2118 }
 0x260   : > { %v2720_v31 = vpop.eup %2120  ;;  %v2722_v32 = vpop.f32.mrb[8].mxu1 }
 0x261   : > { %v2724_v33 = vpop.eup %2122  ;;  %v2728_v34 = vadd.f32 %v2722_v32, %v2660_v57  ;;  %1180 = vrot.lane.b32.xlu0 %v2720_v31, %s2316_s30  ;;  %v2732_v35 = vpop.f32.mrb[9].mxu1 }
 0x262   : > { %v2734_v36 = vpop.eup %2124  ;;  %v2738_v37 = vadd.f32 %v2660_v57, %v2732_v35  ;;  %v2740_v38 = vpop.f32.mrb[10].mxu1 }
 0x263   : > { %v2127_v41 = vpop.eup %2126  ;;  %v1970_v42 = vmul.f32 -1.442695, %v2728_v34  ;;  %v2745_v43 = vadd.f32 %v2740_v38, %v2660_v57  ;;  %1182 = vrot.lane.b32.xlu1 %v2734_v36, %s2316_s30  ;;  %v2749_v44 = vpop.f32.mrb[11].mxu1 }
 0x264   : > { %v2129_v45 = vpop.eup %2128  ;;  %v1122_v46 = vadd.f32 1.0, %v2127_v41  ;;  %v2753_v47 = vadd.f32 %v2660_v57, %v2749_v44  ;;  %v1968_v51 = vmul.f32 -1.442695, %v2738_v37 }
 0x265   : > { %v2131_v48 = vpop.eup %2130  ;;  %v1120_v49 = vadd.f32 1.0, %v2129_v45  ;;  %1184 = vrot.lane.b32.xlu0 %v2718_v30, %s2316_s30  ;;  %2134 = vpow2.f32 %v1970_v42  ;;  %v1971_v53 = vmul.f32 -1.442695, %v2745_v43 }
 0x266   : > { %v2133_v50 = vpop.eup %2132  ;;  %v1969_v40 = vmul.f32 -1.442695, %v2753_v47  ;;  %v1123_v55 = vadd.f32 1.0, %v2131_v48 }
 0x267   : > { %2136 = vrcp.f32 %v1120_v49  ;;  %v1121_v52 = vadd.f32 1.0, %v2133_v50  ;;  %1186 = vrot.lane.b32.xlu1 %v2724_v33, %s2316_s30 }
 0x268   : > { %2138 = vrcp.f32 %v1122_v46  ;;  %v2762_v54 = vpop.f32.mrb[12].mxu1 }
 0x269   : > { %2140 = vrcp.f32 %v1121_v52  ;;  %v2764_v56 = vpop.f32.mrb[13].mxu1  ;;  %v2768_v2 = vadd.f32 %v2762_v54, %v2660_v57 }
 0x26a   : > { %2142 = vpow2.f32 %v1968_v51  ;;  %v2772_v3 = vadd.f32 %v2660_v57, %v2764_v56  ;;  %v2774_v4 = vpop.f32.mrb[14].mxu1 }
 0x26b   : > { %2144 = vpow2.f32 %v1971_v53  ;;  %v2776_v7 = vpop.f32.mrb[15].mxu1  ;;  %v2781_v10 = vadd.f32 %v2774_v4, %v2660_v57  ;;  %v1974_v15 = vmul.f32 -1.442695, %v2768_v2 }
 0x26c   : > { %2146 = vpow2.f32 %v1969_v40  ;;  %v1972_v61 = vmul.f32 -1.442695, %v2772_v3  ;;  %v2785_v11 = vadd.f32 %v2660_v57, %v2776_v7 }
 0x26d   : > { %2148 = vrcp.f32 %v1123_v55  ;;  %v1975_v20 = vmul.f32 -1.442695, %v2781_v10 }
 0x26e   : > { %2150 = vpow2.f32 %v1972_v61  ;;  %v1973_v18 = vmul.f32 -1.442695, %v2785_v11 }
 0x26f   : > { %v2135_v63 = vpop.eup %2134 }
 0x270   : > { %2152 = vpow2.f32 %v1973_v18  ;;  %v1126_v29 = vadd.f32 1.0, %v2135_v63 }
 0x271   : > { %v2137_v21 = vpop.eup %2136  ;;  %2154 = vpow2.f32 %v1974_v15 }
 0x272   : > { %v2139_v25 = vpop.eup %2138  ;;  %1188 = vrot.lane.b32.xlu0 %v2137_v21, %s2316_s30  ;;  %2156 = vpow2.f32 %v1975_v20 }
 0x273   : > { %v2141_v26 = vpop.eup %2140 }
 0x274   : > { %v2143_v22 = vpop.eup %2142  ;;  %1190 = vrot.lane.b32.xlu1 %v2141_v26, %s2316_s30 }
 0x275   : > { %v2145_v57 = vpop.eup %2144  ;;  %v1124_v23 = vadd.f32 1.0, %v2143_v22 }
 0x276   : > { %v2147_v27 = vpop.eup %2146  ;;  %1192 = vrot.lane.b32.xlu0 %v2139_v25, %s2316_s30  ;;  %v1127_v45 = vadd.f32 1.0, %v2145_v57  ;;  %v1293_v57 = vpack.c.bf16 %v2734_v36, %v2720_v31 }
 0x277   : > { %v2149_v28 = vpop.eup %2148  ;;  %2158 = vrcp.f32 %v1124_v23  ;;  %v1125_v41 = vadd.f32 1.0, %v2147_v27  ;;  %v1294_v23 = vpack.c.bf16 %v2724_v33, %v2718_v30  ;;  %v1295_v27 = vpack.c.bf16 %v2141_v26, %v2137_v21 }
 0x278   : > { %v2151_v42 = vpop.eup %2150  ;;  %1194 = vrot.lane.b32.xlu1 %v2149_v28, %s2316_s30  ;;  %v1409_v30 = vsel %vm507_vm1, %v2686_v62, 0.0 }
 0x279   : > { %2160 = vrcp.f32 %v1125_v41  ;;  %v1128_v46 = vadd.f32 1.0, %v2151_v42 }
 0x27a   : > { %v2153_v48 = vpop.eup %2152  ;;  %2162 = vrcp.f32 %v1126_v29  ;;  %v1296_v29 = vpack.c.bf16 %v2149_v28, %v2139_v25  ;;  %v1418_v28 = vsel %vm507_vm1, %v2700_v16, 0.0 }
 0x27b   : > { %v1129_v49 = vadd.f32 1.0, %v2153_v48  ;;  %v2155_v50 = vpop.eup %2154  ;;  %2164 = vrcp.f32 %v1127_v45 }
 0x27c   : > { %2166 = vrcp.f32 %v1128_v46  ;;  %v2157_v51 = vpop.eup %2156  ;;  %v1130_v52 = vadd.f32 1.0, %v2155_v50 }
 0x27d   : > { %2168 = vrcp.f32 %v1129_v49  ;;  %v1131_v40 = vadd.f32 1.0, %v2157_v51  ;;  %v1424_v51 = vsel %vm507_vm1, %v2694_v13, 0.0 }
 0x27e   : > { %2170 = vrcp.f32 %v1130_v52  ;;  %v1436_v52 = vsel %vm507_vm1, %v2728_v34, 0.0 }
 0x27f   : > { %2172 = vrcp.f32 %v1131_v40 }
 0x281   : > { %v2159_v53 = vpop.eup %2158 }
 0x282   : > { %1196 = vrot.lane.b32.xlu0 %v2159_v53, %s2316_s30 }
 0x283   : > { %v2161_v55 = vpop.eup %2160 }
 0x284   : > { %1198 = vrot.lane.b32.xlu1 %v2161_v55, %s2316_s30  ;;  %v2163_v61 = vpop.eup %2162  ;;  %v1297_v41 = vpack.c.bf16 %v2161_v55, %v2159_v53  ;;  %v1442_v55 = vsel %vm507_vm1, %v2772_v3, 0.0 }
 0x285   : > { %v2165_v15 = vpop.eup %2164 }
 0x286   : > { %1200 = vrot.lane.b32.xlu0 %v2163_v61, %s2316_s30  ;;  %v2167_v18 = vpop.eup %2166  ;;  %v1298_v42 = vpack.c.bf16 %v2165_v15, %v2163_v61 }
 0x287   : > { %v2169_v63 = vpop.eup %2168 }
 0x288   : > { %1202 = vrot.lane.b32.xlu1 %v2165_v15, %s2316_s30  ;;  %v2171_v20 = vpop.eup %2170  ;;  %v1299_v31 = vpack.c.bf16 %v2169_v63, %v2167_v18 }
 0x289   : > { %v2173_v22 = vpop.eup %2172 }
 0x28a   : > { %1204 = vrot.lane.b32.xlu0 %v2167_v18, %s2316_s30  ;;  %v1300_v36 = vpack.c.bf16 %v2173_v22, %v2171_v20 }
 0x28c   : > { %1206 = vrot.lane.b32.xlu1 %v2169_v63, %s2316_s30 }
 0x28e   : > { %1208 = vrot.lane.b32.xlu0 %v2171_v20, %s2316_s30 }
 0x290   : > { %1210 = vrot.lane.b32.xlu1 %v2173_v22, %s2316_s30  ;;  %v1448_v22 = vsel %vm507_vm1, %v2768_v2, 0.0 }
 0x294   : > { %1309 = vrot.lane.b32.xlu1 %v1293_v57, %s2316_s30 }
 0x298   : > { %1311 = vrot.lane.b32.xlu1 %v1294_v23, %s2316_s30 }
 0x29c   : > { %1313 = vrot.lane.b32.xlu1 %v1295_v27, %s2316_s30 }
 0x2a0   : > { %1315 = vrot.lane.b32.xlu1 %v1296_v29, %s2316_s30 }
 0x2a4   : > { %1317 = vrot.lane.b32.xlu1 %v1297_v41, %s2316_s30 }
 0x2a8   : > { %1319 = vrot.lane.b32.xlu1 %v1298_v42, %s2316_s30 }
 0x2ac   : > { %1321 = vrot.lane.b32.xlu1 %v1299_v31, %s2316_s30 }
 0x2b0   : > { %1323 = vrot.lane.b32.xlu1 %v1300_v36, %s2316_s30  ;;  %s3024_s30 = scalar_lea.vmem %s3201_s10, %s2409_s24 }
 0x2d3   : > { %v1181_v33 = vpop.permute.xlu0 %1180 }
 0x2d4   : > { %1410 = vadd.xlane.f32.xlu1 %v1409_v30  ;;  %v1228_v25 = vmul.f32 %v1181_v33, %v2668_v59 }
 0x2d5   : > { %v1183_v21 = vpop.permute.xlu1 %1182 }
 0x2d6   : > { %v1229_v26 = vmul.f32 %v1183_v21, %v2681_v9  ;;  %v1430_v9 = vsel %vm507_vm1, %v2738_v37, 0.0 }
 0x2d7   : > { %v1185_v45 = vpop.permute.xlu0 %1184 }
 0x2d8   : > { %1419 = vadd.xlane.f32.xlu1 %v1418_v28  ;;  %v1244_v46 = vpack.c.bf16 %v1229_v26, %v1228_v25  ;;  %v1230_v49 = vmul.f32 %v2662_v58, %v1185_v45  ;;  %v1406_v28 = vsel %vm507_vm1, %v2672_v60, 0.0  ;;  %v1427_v45 = vsel %vm507_vm1, %v2706_v0, 0.0 }
 0x2d9   : > { %v1187_v48 = vpop.permute.xlu1 %1186 }
 0x2da   : > { %v1231_v50 = vmul.f32 %v2674_v6, %v1187_v48  ;;  %1260 = vrot.lane.b32.xlu0 %v1244_v46, %s2315_s27  ;;  %v1433_v48 = vsel %vm507_vm1, %v2753_v47, 0.0 }
 0x2dc   : > { %1425 = vadd.xlane.f32.xlu1 %v1424_v51  ;;  %v1245_v59 = vpack.c.bf16 %v1231_v50, %v1230_v49  ;;  %v1439_v49 = vsel %vm507_vm1, %v2745_v43, 0.0  ;;  %v1445_v51 = vsel %vm507_vm1, %v2785_v11, 0.0 }
 0x2de   : > { %1262 = vrot.lane.b32.xlu0 %v1245_v59, %s2315_s27 }
 0x2e0   : > { %1431 = vadd.xlane.f32.xlu1 %v1430_v9  ;;  %v1451_v9 = vsel %vm507_vm1, %v2781_v10, 0.0 }
 0x2e4   : > { %1437 = vadd.xlane.f32.xlu1 %v1436_v52  ;;  %v1189_v58 = vpop.permute.xlu0 %1188 }
 0x2e5   : > { %v1232_v6 = vmul.f32 %v1189_v58, %v2696_v14 }
 0x2e6   : > { %v1191_v53 = vpop.permute.xlu1 %1190 }
 0x2e7   : > { %v1233_v40 = vmul.f32 %v1191_v53, %v2708_v19 }
 0x2e8   : > { %1443 = vadd.xlane.f32.xlu1 %v1442_v55  ;;  %v1193_v61 = vpop.permute.xlu0 %1192 }
 0x2e9   : > { %v1246_v15 = vpack.c.bf16 %v1233_v40, %v1232_v6  ;;  %v1234_v63 = vmul.f32 %v2690_v12, %v1193_v61 }
 0x2ea   : > { %v1195_v18 = vpop.permute.xlu1 %1194 }
 0x2eb   : > { %v1235_v20 = vmul.f32 %v2702_v17, %v1195_v18  ;;  %1264 = vrot.lane.b32.xlu0 %v1246_v15, %s2315_s27 }
 0x2ec   : > { %1449 = vadd.xlane.f32.xlu1 %v1448_v22 }
 0x2ed   : > { %v1247_v14 = vpack.c.bf16 %v1235_v20, %v1234_v63 }
 0x2ef   : > { %1266 = vrot.lane.b32.xlu0 %v1247_v14, %s2315_s27 }
 0x2f4   : > { %v1197_v19 = vpop.permute.xlu0 %1196 }
 0x2f5   : > { %v1236_v23 = vmul.f32 %v1197_v19, %v2732_v35 }
 0x2f6   : > { %v1199_v57 = vpop.permute.xlu1 %1198 }
 0x2f7   : > { %v1237_v27 = vmul.f32 %v1199_v57, %v2749_v44 }
 0x2f8   : > { %v1201_v29 = vpop.permute.xlu0 %1200 }
 0x2f9   : > { %v1248_v41 = vpack.c.bf16 %v1237_v27, %v1236_v23  ;;  %v1238_v17 = vmul.f32 %v2722_v32, %v1201_v29 }
 0x2fa   : > { %v1203_v12 = vpop.permute.xlu1 %1202 }
 0x2fb   : > { %v1239_v42 = vmul.f32 %v2740_v38, %v1203_v12  ;;  %1268 = vrot.lane.b32.xlu0 %v1248_v41, %s2315_s27 }
 0x2fc   : > { %v1205_v31 = vpop.permute.xlu0 %1204 }
 0x2fd   : > { %v1249_v36 = vpack.c.bf16 %v1239_v42, %v1238_v17  ;;  %v1240_v33 = vmul.f32 %v1205_v31, %v2764_v56  ;;  %v1412_v56 = vsel %vm507_vm1, %v2666_v5, 0.0  ;;  %v1343_v31 = vshrl.u32 %v589_v39, 7 }
 0x2fe   : > { %v1207_v30 = vpop.permute.xlu1 %1206 }
 0x2ff   : > { %v1241_v21 = vmul.f32 %v1207_v30, %v2776_v7  ;;  %1270 = vrot.lane.b32.xlu0 %v1249_v36, %s2315_s27  ;;  %v1415_v7 = vsel %vm507_vm1, %v2679_v8, 0.0  ;;  %v1976_v36 = vld [vmem:[%s463_s18] ss:$0 sm:$0xff] }
 0x300   : > { %v1209_v35 = vpop.permute.xlu0 %1208  ;;  %vm1349_vm0 = vcmp.eq.s32.totalorder %v1343_v31, %v1976_v36 }
 0x301   : > { %v1250_v44 = vpack.c.bf16 %v1241_v21, %v1240_v33  ;;  %v1242_v26 = vmul.f32 %v2762_v54, %v1209_v35  ;;  %v1421_v54 = vsel %vm507_vm1, %v2712_v24, 0.0  ;;  %vm1977_vm3 = vmpackc.low %vm1349_vm0, %vm1349_vm0  ;;  %v2317_v21 = vmov 1.0|1.0  }
 0x302   : > { %v1211_v25 = vpop.permute.xlu1 %1210 }
 0x303   : > { %v1243_v32 = vmul.f32 %v2774_v4, %v1211_v25  ;;  %1272 = vrot.lane.b32.xlu0 %v1250_v44, %s2315_s27 }
 0x305   : > { %v1251_v38 = vpack.c.bf16 %v1243_v32, %v1242_v26 }
 0x306   : > { %v1310_v4 = vpop.permute.xlu1 %1309 }
 0x307   : > { %1274 = vrot.lane.b32.xlu0 %v1251_v38, %s2315_s27  ;;  %s3015_s27 = scalar_lea.vmem %s3200_s9, %s1942_s23 }
 0x308   : > { %588 = vst.msk [vmem:[%s3015_s27] sm:$0xff] %vm552_vm2, %v2310_v1 }
 0x30a   : > { %v1312_v46 = vpop.permute.xlu1 %1311 }
 0x30e   : > { %v1314_v50 = vpop.permute.xlu1 %1313 }
 0x312   : > { %v1316_v59 = vpop.permute.xlu1 %1315 }
 0x316   : > { %v1318_v52 = vpop.permute.xlu1 %1317 }
 0x31a   : > { %v1320_v6 = vpop.permute.xlu1 %1319 }
 0x31e   : > { %v1322_v55 = vpop.permute.xlu1 %1321 }
 0x322   : > { %v1324_v15 = vpop.permute.xlu1 %1323 }
 0x326   : > { %1407 = vadd.xlane.f32.xlu0 %v1406_v28 }
 0x32a   : > { %1413 = vadd.xlane.f32.xlu0 %v1412_v56 }
 0x32e   : > { %1416 = vadd.xlane.f32.xlu0 %v1415_v7 }
 0x332   : > { %1422 = vadd.xlane.f32.xlu0 %v1421_v54 }
 0x336   : > { %1428 = vadd.xlane.f32.xlu0 %v1427_v45 }
 0x33a   : > { %1434 = vadd.xlane.f32.xlu0 %v1433_v48 }
 0x33e   : > { %1440 = vadd.xlane.f32.xlu0 %v1439_v49 }
 0x342   : > { %1446 = vadd.xlane.f32.xlu0 %v1445_v51 }
 0x346   : > { %1452 = vadd.xlane.f32.xlu0 %v1451_v9 }
 0x34c   : > { %v1261_v58 = vpop.permute.xlu0 %1260 }
 0x34d   : > { %1285 = vst.msk [vmem:[#allocation4] sm:$0xff] %vm507_vm1, %v1261_v58 }
 0x34e   : > { %1334 = vst.msk [vmem:[#allocation4] sm:$0xff] %vm1333_vm9, %v1310_v4 }
 0x350   : > { %v1263_v53 = vpop.permute.xlu0 %1262 }
 0x351   : > { %1286 = vst.msk [vmem:[#allocation4 + $0x8] sm:$0xff] %vm507_vm1, %v1263_v53 }
 0x352   : > { %1335 = vst.msk [vmem:[#allocation4 + $0x8] sm:$0xff] %vm1333_vm9, %v1312_v46 }
 0x355   : > { %v1353_v40 = vld [vmem:[#allocation4] sm:$0xff] }
 0x356   : > { %2053 = vmatpush3.bf16.msra.mxu0 %v1353_v40 }
 0x357   : > { %2054 = vmatprep.subr.bf16.mxu0 %v2310_v1 }
 0x359   : > { %v1354_v61 = vld [vmem:[#allocation4 + $0x8] sm:$0xff] }
 0x35a   : > { %2055 = vmatpush3.bf16.msra.mxu0 %v1354_v61 }
 0x35b   : > { %2056 = vmatprep.subr.bf16.mxu0 %v2310_v1 }
 0x35d   : > { %v1265_v18 = vpop.permute.xlu0 %1264 }
 0x35e   : > { %1287 = vst.msk [vmem:[#allocation4 + $0x10] sm:$0xff] %vm507_vm1, %v1265_v18 }
 0x35f   : > { %1336 = vst.msk [vmem:[#allocation4 + $0x10] sm:$0xff] %vm1333_vm9, %v1314_v50 }
 0x361   : > { %v1411_v63 = vpop.xlane.xlu1 %1410  ;;  %v1267_v20 = vpop.permute.xlu0 %1266 }
 0x362   : > { %v1456_v22 = vmul.f32 0.03125, %v1411_v63  ;;  %1288 = vst.msk [vmem:[#allocation4 + $0x18] sm:$0xff] %vm507_vm1, %v1267_v20 }
 0x363   : > { %1337 = vst.msk [vmem:[#allocation4 + $0x18] sm:$0xff] %vm1333_vm9, %v1316_v59 }
 0x364   : > { %v2881_v14 = vsub.f32 %v2686_v62, %v1456_v22 }
 0x365   : > { %v1420_v35 = vpop.xlane.xlu1 %1419 }
 0x366   : > { %v1355_v19 = vld [vmem:[#allocation4 + $0x10] sm:$0xff]  ;;  %v1488_v57 = vmul.f32 %v2881_v14, %v2881_v14  ;;  %v1459_v38 = vmul.f32 0.03125, %v1420_v35 }
 0x367   : > { %2057 = vmatpush3.bf16.msra.mxu0 %v1355_v19 }
 0x368   : > { %v1506_v23 = vsel %vm507_vm1, %v1488_v57, 0.0  ;;  %2058 = vmatprep.subr.bf16.mxu0 %v2310_v1  ;;  %v2914_v54 = vsub.f32 %v2700_v16, %v1459_v38 }
 0x369   : > { %1507 = vadd.xlane.f32.xlu0 %v1506_v23  ;;  %v1426_v44 = vpop.xlane.xlu1 %1425 }
 0x36a   : > { %v1356_v27 = vld [vmem:[#allocation4 + $0x18] sm:$0xff]  ;;  %v1461_v4 = vmul.f32 0.03125, %v1426_v44 }
 0x36b   : > { %2059 = vmatpush3.bf16.msra.mxu0 %v1356_v27 }
 0x36c   : > { %2060 = vmatprep.subr.bf16.mxu0 %v2310_v1  ;;  %v2923_v59 = vsub.f32 %v2694_v13, %v1461_v4 }
 0x36d   : > { %v1269_v29 = vpop.permute.xlu0 %1268  ;;  %v1432_v32 = vpop.xlane.xlu1 %1431 }
 0x36e   : > { %1289 = vst.msk [vmem:[#allocation4 + $0x20] sm:$0xff] %vm507_vm1, %v1269_v29  ;;  %v1463_v51 = vmul.f32 0.03125, %v1432_v32 }
 0x36f   : > { %1338 = vst.msk [vmem:[#allocation4 + $0x20] sm:$0xff] %vm1333_vm9, %v1318_v52 }
 0x371   : > { %v1271_v62 = vpop.permute.xlu0 %1270  ;;  %v1438_v48 = vpop.xlane.xlu1 %1437 }
 0x372   : > { %1290 = vst.msk [vmem:[#allocation4 + $0x28] sm:$0xff] %vm507_vm1, %v1271_v62  ;;  %v1465_v40 = vmul.f32 0.03125, %v1438_v48 }
 0x373   : > { %1339 = vst.msk [vmem:[#allocation4 + $0x28] sm:$0xff] %vm1333_vm9, %v1320_v6  ;;  %v2934_v6 = vsub.f32 %v2738_v37, %v1463_v51 }
 0x374   : > { %v2946_v20 = vsub.f32 %v2728_v34, %v1465_v40 }
 0x375   : > { %v1273_v41 = vpop.permute.xlu0 %1272  ;;  %v1444_v13 = vpop.xlane.xlu1 %1443 }
 0x376   : > { %1291 = vst.msk [vmem:[#allocation4 + $0x30] sm:$0xff] %vm507_vm1, %v1273_v41  ;;  %v1357_v12 = vld [vmem:[#allocation4 + $0x20] sm:$0xff]  ;;  %v1467_v22 = vmul.f32 0.03125, %v1444_v13 }
 0x377   : > { %1340 = vst.msk [vmem:[#allocation4 + $0x30] sm:$0xff] %vm1333_vm9, %v1322_v55  ;;  %2061 = vmatpush3.bf16.msra.mxu0 %v1357_v12  ;;  %v1497_v12 = vmul.f32 %v2946_v20, %v2946_v20 }
 0x378   : > { %2062 = vmatprep.subr.bf16.mxu0 %v2310_v1 }
 0x379   : > { %v1275_v17 = vpop.permute.xlu0 %1274  ;;  %v1450_v27 = vpop.xlane.xlu1 %1449 }
 0x37a   : > { %1292 = vst.msk [vmem:[#allocation4 + $0x38] sm:$0xff] %vm507_vm1, %v1275_v17  ;;  %v1358_v42 = vld [vmem:[#allocation4 + $0x28] sm:$0xff]  ;;  %v1469_v17 = vmul.f32 0.03125, %v1450_v27 }
 0x37b   : > { %1341 = vst.msk [vmem:[#allocation4 + $0x38] sm:$0xff] %vm1333_vm9, %v1324_v15  ;;  %2063 = vmatpush3.bf16.msra.mxu0 %v1358_v42  ;;  %v1493_v15 = vmul.f32 %v2923_v59, %v2923_v59 }
 0x37c   : > { %2064 = vmatprep.subr.bf16.mxu0 %v2310_v1  ;;  %v2971_v35 = vsub.f32 %v2768_v2, %v1469_v17 }
 0x37d   : > { %v1521_v57 = vsel %vm507_vm1, %v1493_v15, 0.0 }
 0x37e   : > { %v1359_v30 = vld [vmem:[#allocation4 + $0x30] sm:$0xff] }
 0x37f   : > { %2065 = vmatpush3.bf16.msra.mxu0 %v1359_v30 }
 0x380   : > { %2066 = vmatprep.subr.bf16.mxu0 %v2310_v1 }
 0x382   : > { %v1360_v33 = vld [vmem:[#allocation4 + $0x38] sm:$0xff] }
 0x383   : > { %2067 = vmatpush3.bf16.msra.mxu0 %v1360_v33 }
 0x386   : > { %2069 = vmatmul.mubr.msk.bf16.vlgmr.msra.gmra.mrb[4].mxu0 %vm1977_vm3, %v2317_v21  ;;  %v1533_v21 = vsel %vm507_vm1, %v1497_v12, 0.0 }
 0x3b3   : > { %v1408_v25 = vpop.xlane.xlu0 %1407 }
 0x3b4   : > { %v1455_v26 = vmul.f32 0.03125, %v1408_v25 }
 0x3b6   : > { %v2909_v28 = vsub.f32 %v2672_v60, %v1455_v26 }
 0x3b7   : > { %v1414_v39 = vpop.xlane.xlu0 %1413 }
 0x3b8   : > { %v1457_v56 = vmul.f32 0.03125, %v1414_v39  ;;  %v1487_v7 = vmul.f32 %v2909_v28, %v2909_v28  ;;  %v1501_v39 = vmul.f32 %v2971_v35, %v2971_v35 }
 0x3ba   : > { %v2917_v45 = vsub.f32 %v2666_v5, %v1457_v56  ;;  %v1503_v46 = vsel %vm507_vm1, %v1487_v7, 0.0  ;;  %v1491_v5 = vmul.f32 %v2914_v54, %v2914_v54 }
 0x3bb   : > { %1504 = vadd.xlane.f32.xlu1 %v1503_v46  ;;  %v1417_v49 = vpop.xlane.xlu0 %1416 }
 0x3bc   : > { %v1458_v50 = vmul.f32 0.03125, %v1417_v49  ;;  %v1489_v60 = vmul.f32 %v2917_v45, %v2917_v45 }
 0x3be   : > { %v2926_v16 = vsub.f32 %v2679_v8, %v1458_v50  ;;  %v1509_v9 = vsel %vm507_vm1, %v1489_v60, 0.0  ;;  %v1515_v8 = vsel %vm507_vm1, %v1491_v5, 0.0 }
 0x3bf   : > { %1510 = vadd.xlane.f32.xlu1 %v1509_v9  ;;  %v1423_v52 = vpop.xlane.xlu0 %1422 }
 0x3c0   : > { %v1460_v58 = vmul.f32 0.03125, %v1423_v52  ;;  %v1490_v53 = vmul.f32 %v2926_v16, %v2926_v16 }
 0x3c2   : > { %v2937_v55 = vsub.f32 %v2712_v24, %v1460_v58  ;;  %v1512_v61 = vsel %vm507_vm1, %v1490_v53, 0.0  ;;  %v1495_v24 = vmul.f32 %v2934_v6, %v2934_v6  ;;  %v3007_v58 = vld [vmem:[%s3199_s8 + $0x2] ss:$0 sm:$0xff] }
 0x3c3   : > { %1516 = vadd.xlane.f32.xlu1 %v1515_v8  ;;  %1513 = vadd.xlane.f32.xlu0 %v1512_v61  ;;  %v1429_v18 = vpop.xlane.xlu0 %1428 }
 0x3c4   : > { %v1462_v63 = vmul.f32 0.03125, %v1429_v18  ;;  %v1492_v37 = vmul.f32 %v2937_v55, %v2937_v55  ;;  %v1527_v41 = vsel %vm507_vm1, %v1495_v24, 0.0  ;;  %v2270_v18 = vld [vmem:[%s2453_s17 + $0x8] sm:$0xff] }
 0x3c6   : > { %v2951_v19 = vsub.f32 %v2706_v0, %v1462_v63  ;;  %v1518_v23 = vsel %vm507_vm1, %v1492_v37, 0.0  ;;  %v2961_v0 = vsub.f32 %v2772_v3, %v1467_v22 }
 0x3c7   : > { %1522 = vadd.xlane.f32.xlu1 %v1521_v57  ;;  %1519 = vadd.xlane.f32.xlu0 %v1518_v23  ;;  %v1435_v29 = vpop.xlane.xlu0 %1434 }
 0x3c8   : > { %v1464_v62 = vmul.f32 0.03125, %v1435_v29  ;;  %v1494_v34 = vmul.f32 %v2951_v19, %v2951_v19  ;;  %v1499_v44 = vmul.f32 %v2961_v0, %v2961_v0 }
 0x3ca   : > { %v2964_v42 = vsub.f32 %v2753_v47, %v1464_v62  ;;  %v1524_v31 = vsel %vm507_vm1, %v1494_v34, 0.0  ;;  %v1539_v2 = vsel %vm507_vm1, %v1499_v44, 0.0  ;;  %v1352_v44 = vld [vmem:[%s3015_s27] sm:$0xff] }
 0x3cb   : > { %1528 = vadd.xlane.f32.xlu1 %v1527_v41  ;;  %1525 = vadd.xlane.f32.xlu0 %v1524_v31  ;;  %v1441_v36 = vpop.xlane.xlu0 %1440 }
 0x3cc   : > { %v1466_v30 = vmul.f32 0.03125, %v1441_v36  ;;  %v1496_v33 = vmul.f32 %v2964_v42, %v2964_v42 }
 0x3ce   : > { %v2974_v3 = vsub.f32 %v2745_v43, %v1466_v30  ;;  %v1530_v47 = vsel %vm507_vm1, %v1496_v33, 0.0 }
 0x3cf   : > { %1534 = vadd.xlane.f32.xlu1 %v1533_v21  ;;  %1531 = vadd.xlane.f32.xlu0 %v1530_v47  ;;  %v1447_v25 = vpop.xlane.xlu0 %1446 }
 0x3d0   : > { %v1468_v26 = vmul.f32 0.03125, %v1447_v25  ;;  %v1498_v32 = vmul.f32 %v2974_v3, %v2974_v3 }
 0x3d2   : > { %v2982_v38 = vsub.f32 %v2785_v11, %v1468_v26  ;;  %v1536_v43 = vsel %vm507_vm1, %v1498_v32, 0.0  ;;  %v1545_v11 = vsel %vm507_vm1, %v1501_v39, 0.0 }
 0x3d3   : > { %1540 = vadd.xlane.f32.xlu1 %v1539_v2  ;;  %1537 = vadd.xlane.f32.xlu0 %v1536_v43  ;;  %v1453_v56 = vpop.xlane.xlu0 %1452 }
 0x3d4   : > { %v1470_v7 = vmul.f32 0.03125, %v1453_v56  ;;  %v1500_v4 = vmul.f32 %v2982_v38, %v2982_v38 }
 0x3d6   : > { %v2991_v46 = vsub.f32 %v2781_v10, %v1470_v7  ;;  %v1542_v48 = vsel %vm507_vm1, %v1500_v4, 0.0  ;;  %v3001_v10 = vld [vmem:[%s3199_s8 + $0x1] ss:$0 sm:$0xff] }
 0x3d7   : > { %1546 = vadd.xlane.f32.xlu1 %v1545_v11  ;;  %1543 = vadd.xlane.f32.xlu0 %v1542_v48 }
 0x3d8   : > { %v1502_v49 = vmul.f32 %v2991_v46, %v2991_v46 }
 0x3da   : > { %v1548_v50 = vsel %vm507_vm1, %v1502_v49, 0.0 }
 0x3db   : > { %1549 = vadd.xlane.f32.xlu0 %v1548_v50 }
 0x3f6   : > { %v1508_v60 = vpop.xlane.xlu0 %1507 }
 0x3f7   : > { %v1552_v51 = vmul.f32 0.03125, %v1508_v60 }
 0x3f9   : > { %v1568_v9 = vadd.f32 1e-05, %v1552_v51 }
 0x3fb   : > { %2174 = vrsqrt.f32 %v1568_v9 }
 0x405   : > { %v2175_v5 = vpop.eup %2174 }
 0x406   : > { %v1600_v52 = vmul.f32 %v2175_v5, %v2881_v14 }
 0x408   : > { %v1620_v53 = vmul.f32 %v3001_v10, %v1600_v52 }
 0x40a   : > { %v1640_v40 = vadd.f32 %v3007_v58, %v1620_v53 }
 0x40c   : > { %v1982_v13 = vmul.f32 -1.442695, %v1640_v40 }
 0x40e   : > { %2176 = vpow2.f32 %v1982_v13 }
 0x418   : > { %v2177_v14 = vpop.eup %2176 }
 0x419   : > { %v1704_v8 = vadd.f32 1.0, %v2177_v14 }
 0x41b   : > { %2178 = vrcp.f32 %v1704_v8 }
 0x425   : > { %v2179_v61 = vpop.eup %2178 }
 0x426   : > { %v1752_v15 = vmul.f32 %v2179_v61, %v1640_v40 }
 0x428   : > { %v1768_v63 = vadd.f32 %v2270_v18, %v1752_v15 }
 0x42a   : > { %1784 = vst.msk [vmem:[%s3024_s30 + $0x8] sm:$0xff] %vm507_vm1, %v1768_v63 }
 0x448   : > { %v1505_v37 = vpop.xlane.xlu1 %1504 }
 0x449   : > { %v1551_v24 = vmul.f32 0.03125, %v1505_v37 }
 0x44b   : > { %v1567_v22 = vadd.f32 1e-05, %v1551_v24 }
 0x44c   : > { %v1511_v57 = vpop.xlane.xlu1 %1510 }
 0x44d   : > { %2180 = vrsqrt.f32 %v1567_v22  ;;  %v1553_v1 = vmul.f32 0.03125, %v1511_v57 }
 0x44f   : > { %v1569_v23 = vadd.f32 1e-05, %v1553_v1 }
 0x450   : > { %v1517_v27 = vpop.xlane.xlu1 %1516  ;;  %v1514_v29 = vpop.xlane.xlu0 %1513 }
 0x451   : > { %2182 = vrsqrt.f32 %v1569_v23  ;;  %v1555_v62 = vmul.f32 0.03125, %v1517_v27  ;;  %v1554_v34 = vmul.f32 0.03125, %v1514_v29 }
 0x453   : > { %v1571_v41 = vadd.f32 1e-05, %v1555_v62  ;;  %v1570_v12 = vadd.f32 1e-05, %v1554_v34 }
 0x454   : > { %v1523_v17 = vpop.xlane.xlu1 %1522  ;;  %v1520_v31 = vpop.xlane.xlu0 %1519 }
 0x455   : > { %2184 = vrsqrt.f32 %v1571_v41  ;;  %v1557_v36 = vmul.f32 0.03125, %v1523_v17  ;;  %v1556_v30 = vmul.f32 0.03125, %v1520_v31 }
 0x456   : > { %2186 = vrsqrt.f32 %v1570_v12 }
 0x457   : > { %v2181_v33 = vpop.eup %2180  ;;  %v1573_v21 = vadd.f32 1e-05, %v1557_v36  ;;  %v1572_v47 = vadd.f32 1e-05, %v1556_v30 }
 0x458   : > { %v1599_v25 = vmul.f32 %v2181_v33, %v2909_v28  ;;  %v1529_v26 = vpop.xlane.xlu1 %1528  ;;  %v1526_v32 = vpop.xlane.xlu0 %1525 }
 0x459   : > { %2188 = vrsqrt.f32 %v1573_v21  ;;  %v1559_v2 = vmul.f32 0.03125, %v1529_v26  ;;  %v1558_v43 = vmul.f32 0.03125, %v1526_v32  ;;  %v1395_v39 = vpop.f32.mrb[4].mxu0 }
 0x45a   : > { %v1619_v56 = vmul.f32 %v3001_v10, %v1599_v25  ;;  %2190 = vrsqrt.f32 %v1572_v47  ;;  %v1401_v7 = vadd.f32 %v1395_v39, %v1352_v44  ;;  %v2070_v4 = vpop.f32.mrb[5].mxu0 }
 0x45b   : > { %v2183_v11 = vpop.eup %2182  ;;  %v1575_v48 = vadd.f32 1e-05, %v1559_v2  ;;  %v1574_v49 = vadd.f32 1e-05, %v1558_v43  ;;  %v1398_v50 = vpop.f32.mrb[6].mxu0 }
 0x45c   : > { %v3033_v60 = vadd.f32 %v3007_v58, %v1619_v56  ;;  %v1601_v28 = vmul.f32 %v2183_v11, %v2917_v45  ;;  %v1535_v51 = vpop.xlane.xlu1 %1534  ;;  %v1532_v9 = vpop.xlane.xlu0 %1531  ;;  %1403 = vst.msk [vmem:[%s3015_s27] sm:$0xff] %vm552_vm2, %v1401_v7 }
 0x45d   : > { %2192 = vrsqrt.f32 %v1575_v48  ;;  %v1561_v5 = vmul.f32 0.03125, %v1535_v51  ;;  %v1560_v52 = vmul.f32 0.03125, %v1532_v9  ;;  %v2071_v53 = vpop.f32.mrb[7].mxu0 }
 0x45e   : > { %v1981_v40 = vmul.f32 -1.442695, %v3033_v60  ;;  %v1621_v13 = vmul.f32 %v3001_v10, %v1601_v28  ;;  %2194 = vrsqrt.f32 %v1574_v49 }
 0x45f   : > { %v2185_v14 = vpop.eup %2184  ;;  %v1577_v8 = vadd.f32 1e-05, %v1561_v5  ;;  %v1576_v61 = vadd.f32 1e-05, %v1560_v52 }
 0x460   : > { %v2187_v15 = vpop.eup %2186  ;;  %2196 = vpow2.f32 %v1981_v40  ;;  %v3041_v45 = vadd.f32 %v3007_v58, %v1621_v13  ;;  %v1603_v18 = vmul.f32 %v2185_v14, %v2914_v54  ;;  %v1541_v63 = vpop.xlane.xlu1 %1540 }
 0x461   : > { %v1538_v37 = vpop.xlane.xlu0 %1537  ;;  %v1602_v24 = vmul.f32 %v2187_v15, %v2926_v16  ;;  %2198 = vrsqrt.f32 %v1577_v8  ;;  %v1563_v22 = vmul.f32 0.03125, %v1541_v63 }
 0x462   : > { %v1562_v57 = vmul.f32 0.03125, %v1538_v37  ;;  %v1983_v1 = vmul.f32 -1.442695, %v3041_v45  ;;  %v1623_v23 = vmul.f32 %v3001_v10, %v1603_v18  ;;  %2200 = vrsqrt.f32 %v1576_v61 }
 0x463   : > { %v2189_v27 = vpop.eup %2188  ;;  %v1622_v29 = vmul.f32 %v3001_v10, %v1602_v24  ;;  %v1579_v62 = vadd.f32 1e-05, %v1563_v22 }
 0x464   : > { %v1578_v34 = vadd.f32 1e-05, %v1562_v57  ;;  %v2191_v41 = vpop.eup %2190  ;;  %2202 = vpow2.f32 %v1983_v1  ;;  %v3049_v54 = vadd.f32 %v3007_v58, %v1623_v23  ;;  %v1605_v16 = vmul.f32 %v2189_v27, %v2923_v59  ;;  %v1547_v12 = vpop.xlane.xlu1 %1546 }
 0x465   : > { %v1544_v17 = vpop.xlane.xlu0 %1543  ;;  %v3053_v31 = vadd.f32 %v3007_v58, %v1622_v29  ;;  %v1604_v36 = vmul.f32 %v2191_v41, %v2937_v55  ;;  %2204 = vrsqrt.f32 %v1579_v62  ;;  %v1565_v30 = vmul.f32 0.03125, %v1547_v12 }
 0x466   : > { %v1985_v33 = vmul.f32 -1.442695, %v3049_v54  ;;  %v1625_v21 = vmul.f32 %v3001_v10, %v1605_v16  ;;  %2206 = vrsqrt.f32 %v1578_v34  ;;  %v1564_v47 = vmul.f32 0.03125, %v1544_v17 }
 0x467   : > { %v2193_v44 = vpop.eup %2192  ;;  %v1984_v25 = vmul.f32 -1.442695, %v3053_v31  ;;  %v1624_v59 = vmul.f32 %v3001_v10, %v1604_v36  ;;  %v1581_v26 = vadd.f32 1e-05, %v1565_v30 }
 0x468   : > { %v2195_v32 = vpop.eup %2194  ;;  %2208 = vpow2.f32 %v1985_v33  ;;  %v3061_v2 = vadd.f32 %v3007_v58, %v1625_v21  ;;  %v1607_v55 = vmul.f32 %v2193_v44, %v2934_v6  ;;  %v1580_v43 = vadd.f32 1e-05, %v1564_v47 }
 0x469   : > { %v1550_v39 = vpop.xlane.xlu0 %1549  ;;  %2210 = vpow2.f32 %v1984_v25  ;;  %v3065_v56 = vadd.f32 %v3007_v58, %v1624_v59  ;;  %v1606_v7 = vmul.f32 %v2195_v32, %v2951_v19 }
 0x46a   : > { %v1566_v4 = vmul.f32 0.03125, %v1550_v39  ;;  %v2197_v11 = vpop.eup %2196  ;;  %v1987_v48 = vmul.f32 -1.442695, %v3061_v2  ;;  %v1627_v49 = vmul.f32 %v3001_v10, %v1607_v55  ;;  %2212 = vrsqrt.f32 %v1581_v26  ;;  %v2271_v39 = vld [vmem:[%s2453_s17] sm:$0xff] }
 0x46b   : > { %v2199_v50 = vpop.eup %2198  ;;  %v1703_v28 = vadd.f32 1.0, %v2197_v11  ;;  %v1986_v51 = vmul.f32 -1.442695, %v3065_v56  ;;  %v1626_v6 = vmul.f32 %v3001_v10, %v1606_v7  ;;  %2214 = vrsqrt.f32 %v1580_v43 }
 0x46c   : > { %v2201_v9 = vpop.eup %2200  ;;  %2216 = vpow2.f32 %v1987_v48  ;;  %v3073_v5 = vadd.f32 %v3007_v58, %v1627_v49  ;;  %v1609_v19 = vmul.f32 %v2199_v50, %v2946_v20  ;;  %v1582_v52 = vadd.f32 1e-05, %v1566_v4 }
 0x46d   : > { %2218 = vrcp.f32 %v1703_v28  ;;  %v3077_v53 = vadd.f32 %v3007_v58, %v1626_v6  ;;  %v1608_v40 = vmul.f32 %v2201_v9, %v2964_v42 }
 0x46e   : > { %v2203_v13 = vpop.eup %2202  ;;  %2220 = vpow2.f32 %v1986_v51  ;;  %v1989_v14 = vmul.f32 -1.442695, %v3073_v5  ;;  %v1629_v8 = vmul.f32 %v3001_v10, %v1609_v19 }
 0x46f   : > { %v2205_v61 = vpop.eup %2204  ;;  %v1705_v15 = vadd.f32 1.0, %v2203_v13  ;;  %v1988_v18 = vmul.f32 -1.442695, %v3077_v53  ;;  %v1628_v63 = vmul.f32 %v3001_v10, %v1608_v40  ;;  %2222 = vrsqrt.f32 %v1582_v52  ;;  %v2272_v52 = vld [vmem:[%s2453_s17 + $0x10] sm:$0xff] }
 0x470   : > { %v2207_v20 = vpop.eup %2206  ;;  %2224 = vpow2.f32 %v1989_v14  ;;  %v3085_v37 = vadd.f32 %v3007_v58, %v1629_v8  ;;  %v1611_v42 = vmul.f32 %v2205_v61, %v2961_v0 }
 0x471   : > { %2226 = vrcp.f32 %v1705_v15  ;;  %v3089_v24 = vadd.f32 %v3007_v58, %v1628_v63  ;;  %v1610_v22 = vmul.f32 %v2207_v20, %v2974_v3 }
 0x472   : > { %v2209_v57 = vpop.eup %2208  ;;  %2228 = vpow2.f32 %v1988_v18  ;;  %v1991_v1 = vmul.f32 -1.442695, %v3085_v37  ;;  %v1631_v23 = vmul.f32 %v3001_v10, %v1611_v42  ;;  %v2273_v18 = vld [vmem:[%s2453_s17 + $0x20] sm:$0xff] }
 0x473   : > { %v2211_v27 = vpop.eup %2210  ;;  %v1707_v29 = vadd.f32 1.0, %v2209_v57  ;;  %v1990_v62 = vmul.f32 -1.442695, %v3089_v24  ;;  %v1630_v34 = vmul.f32 %v3001_v10, %v1610_v22  ;;  %v2274_v22 = vld [vmem:[%s2453_s17 + $0x18] sm:$0xff] }
 0x474   : > { %v2213_v41 = vpop.eup %2212  ;;  %v1706_v0 = vadd.f32 1.0, %v2211_v27  ;;  %2230 = vpow2.f32 %v1991_v1  ;;  %v3097_v16 = vadd.f32 %v3007_v58, %v1631_v23 }
 0x475   : > { %v2215_v12 = vpop.eup %2214  ;;  %2232 = vrcp.f32 %v1707_v29  ;;  %v3100_v3 = vadd.f32 %v3007_v58, %v1630_v34  ;;  %v1613_v17 = vmul.f32 %v2213_v41, %v2971_v35  ;;  %v2275_v29 = vld [vmem:[%s2453_s17 + $0x30] sm:$0xff] }
 0x476   : > { %v2217_v36 = vpop.eup %2216  ;;  %2234 = vrcp.f32 %v1706_v0  ;;  %v1993_v30 = vmul.f32 -1.442695, %v3097_v16  ;;  %v1612_v33 = vmul.f32 %v2215_v12, %v2982_v38 }
 0x477   : > { %v2219_v21 = vpop.eup %2218  ;;  %v1709_v47 = vadd.f32 1.0, %v2217_v36  ;;  %2236 = vpow2.f32 %v1990_v62  ;;  %v1992_v44 = vmul.f32 -1.442695, %v3100_v3  ;;  %v1633_v25 = vmul.f32 %v3001_v10, %v1613_v17 }
 0x478   : > { %v2221_v59 = vpop.eup %2220  ;;  %v1751_v26 = vmul.f32 %v2219_v21, %v3033_v60  ;;  %2238 = vpow2.f32 %v1993_v30  ;;  %v1632_v35 = vmul.f32 %v3001_v10, %v1612_v33  ;;  %v2277_v21 = vld [vmem:[%s2453_s17 + $0x40] sm:$0xff] }
 0x479   : > { %v2223_v32 = vpop.eup %2222  ;;  %2240 = vrcp.f32 %v1709_v47  ;;  %v1708_v55 = vadd.f32 1.0, %v2221_v59  ;;  %v3110_v43 = vadd.f32 %v3007_v58, %v1633_v25 }
 0x47a   : > { %v2225_v38 = vpop.eup %2224  ;;  %v1767_v7 = vadd.f32 %v2271_v39, %v1751_v26  ;;  %2242 = vpow2.f32 %v1992_v44  ;;  %v3114_v4 = vadd.f32 %v3007_v58, %v1632_v35  ;;  %v1614_v60 = vmul.f32 %v2223_v32, %v2991_v46 }
 0x47b   : > { %v2227_v11 = vpop.eup %2226  ;;  %2244 = vrcp.f32 %v1708_v55  ;;  %v1711_v48 = vadd.f32 1.0, %v2225_v38  ;;  %v1995_v49 = vmul.f32 -1.442695, %v3110_v43 }
 0x47c   : > { %v2229_v50 = vpop.eup %2228  ;;  %1783 = vst.msk [vmem:[%s3024_s30] sm:$0xff] %vm507_vm1, %v1767_v7  ;;  %v1753_v28 = vmul.f32 %v2227_v11, %v3041_v45  ;;  %v1994_v51 = vmul.f32 -1.442695, %v3114_v4  ;;  %v1634_v6 = vmul.f32 %v3001_v10, %v1614_v60  ;;  %v2280_v11 = vld [vmem:[%s2453_s17 + $0x48] sm:$0xff] }
 0x47d   : > { %2246 = vrcp.f32 %v1711_v48  ;;  %v1710_v9 = vadd.f32 1.0, %v2229_v50 }
 0x47e   : > { %v2231_v19 = vpop.eup %2230  ;;  %v1769_v46 = vadd.f32 %v2272_v52, %v1753_v28  ;;  %2248 = vpow2.f32 %v1995_v49  ;;  %v3125_v40 = vadd.f32 %v3007_v58, %v1634_v6  ;;  %v2281_v49 = vld [vmem:[%s2453_s17 + $0x60] sm:$0xff] }
 0x47f   : > { %v2233_v13 = vpop.eup %2232  ;;  %2250 = vrcp.f32 %v1710_v9  ;;  %v1713_v14 = vadd.f32 1.0, %v2231_v19  ;;  %v2283_v19 = vld [vmem:[%s2453_s17 + $0x70] sm:$0xff] }
 0x480   : > { %v2235_v8 = vpop.eup %2234  ;;  %1785 = vst.msk [vmem:[%s3024_s30 + $0x10] sm:$0xff] %vm507_vm1, %v1769_v46  ;;  %v1755_v45 = vmul.f32 %v2233_v13, %v3049_v54  ;;  %2252 = vpow2.f32 %v1994_v51  ;;  %v1996_v10 = vmul.f32 -1.442695, %v3125_v40  ;;  %v2284_v13 = vld [vmem:[%s2453_s17 + $0x68] sm:$0xff] }
 0x481   : > { %v2237_v61 = vpop.eup %2236  ;;  %v1754_v15 = vmul.f32 %v2235_v8, %v3053_v31  ;;  %2254 = vrcp.f32 %v1713_v14 }
 0x482   : > { %v2239_v58 = vpop.eup %2238  ;;  %v1771_v63 = vadd.f32 %v2273_v18, %v1755_v45  ;;  %v1712_v20 = vadd.f32 1.0, %v2237_v61  ;;  %2256 = vpow2.f32 %v1996_v10  ;;  %v2285_v45 = vld [vmem:[%s2453_s17 + $0x78] sm:$0xff] }
 0x483   : > { %v2241_v42 = vpop.eup %2240  ;;  %v1770_v57 = vadd.f32 %v2274_v22, %v1754_v15  ;;  %v1715_v54 = vadd.f32 1.0, %v2239_v58 }
 0x484   : > { %v2243_v1 = vpop.eup %2242  ;;  %1787 = vst.msk [vmem:[%s3024_s30 + $0x20] sm:$0xff] %vm507_vm1, %v1771_v63  ;;  %v1757_v23 = vmul.f32 %v2241_v42, %v3061_v2  ;;  %2258 = vrcp.f32 %v1712_v20  ;;  %v2276_v2 = vld [vmem:[%s2453_s17 + $0x28] sm:$0xff] }
 0x485   : > { %v2245_v31 = vpop.eup %2244  ;;  %1786 = vst.msk [vmem:[%s3024_s30 + $0x18] sm:$0xff] %vm507_vm1, %v1770_v57  ;;  %2260 = vrcp.f32 %v1715_v54  ;;  %v1714_v27 = vadd.f32 1.0, %v2243_v1 }
 0x486   : > { %v1773_v62 = vadd.f32 %v2275_v29, %v1757_v23  ;;  %v1756_v34 = vmul.f32 %v2245_v31, %v3065_v56 }
 0x487   : > { %v2247_v41 = vpop.eup %2246  ;;  %2262 = vrcp.f32 %v1714_v27 }
 0x488   : > { %v2249_v0 = vpop.eup %2248  ;;  %1789 = vst.msk [vmem:[%s3024_s30 + $0x30] sm:$0xff] %vm507_vm1, %v1773_v62  ;;  %v1772_v12 = vadd.f32 %v2276_v2, %v1756_v34  ;;  %v1759_v17 = vmul.f32 %v2247_v41, %v3073_v5  ;;  %v2278_v5 = vld [vmem:[%s2453_s17 + $0x38] sm:$0xff] }
 0x489   : > { %v2251_v36 = vpop.eup %2250  ;;  %v1717_v30 = vadd.f32 1.0, %v2249_v0 }
 0x48a   : > { %v2253_v33 = vpop.eup %2252  ;;  %1788 = vst.msk [vmem:[%s3024_s30 + $0x28] sm:$0xff] %vm507_vm1, %v1772_v12  ;;  %v1775_v56 = vadd.f32 %v2277_v21, %v1759_v17  ;;  %v1758_v47 = vmul.f32 %v2251_v36, %v3077_v53  ;;  %v2279_v53 = vld [vmem:[%s2453_s17 + $0x50] sm:$0xff] }
 0x48b   : > { %v2255_v44 = vpop.eup %2254  ;;  %2264 = vrcp.f32 %v1717_v30  ;;  %v1716_v25 = vadd.f32 1.0, %v2253_v33 }
 0x48c   : > { %v2257_v59 = vpop.eup %2256  ;;  %1791 = vst.msk [vmem:[%s3024_s30 + $0x40] sm:$0xff] %vm507_vm1, %v1775_v56  ;;  %v1774_v26 = vadd.f32 %v2278_v5, %v1758_v47  ;;  %v1761_v35 = vmul.f32 %v2255_v44, %v3085_v37 }
 0x48d   : > { %2266 = vrcp.f32 %v1716_v25  ;;  %v1718_v32 = vadd.f32 1.0, %v2257_v59 }
 0x48e   : > { %v2259_v55 = vpop.eup %2258  ;;  %1790 = vst.msk [vmem:[%s3024_s30 + $0x38] sm:$0xff] %vm507_vm1, %v1774_v26  ;;  %v1777_v38 = vadd.f32 %v2279_v53, %v1761_v35 }
 0x48f   : > { %v2261_v39 = vpop.eup %2260  ;;  %v1760_v7 = vmul.f32 %v2259_v55, %v3089_v24  ;;  %2268 = vrcp.f32 %v1718_v32  ;;  %v2282_v24 = vld [vmem:[%s2453_s17 + $0x58] sm:$0xff] }
 0x490   : > { %1793 = vst.msk [vmem:[%s3024_s30 + $0x50] sm:$0xff] %vm507_vm1, %v1777_v38  ;;  %v1763_v37 = vmul.f32 %v2261_v39, %v3097_v16 }
 0x491   : > { %v2263_v60 = vpop.eup %2262  ;;  %v1776_v48 = vadd.f32 %v2280_v11, %v1760_v7 }
 0x492   : > { %v1779_v50 = vadd.f32 %v2281_v49, %v1763_v37  ;;  %v1762_v28 = vmul.f32 %v2263_v60, %v3100_v3 }
 0x493   : > { %1792 = vst.msk [vmem:[%s3024_s30 + $0x48] sm:$0xff] %vm507_vm1, %v1776_v48 }
 0x494   : > { %1795 = vst.msk [vmem:[%s3024_s30 + $0x60] sm:$0xff] %vm507_vm1, %v1779_v50  ;;  %v1778_v51 = vadd.f32 %v2282_v24, %v1762_v28 }
 0x495   : > { %v2265_v6 = vpop.eup %2264 }
 0x496   : > { %1794 = vst.msk [vmem:[%s3024_s30 + $0x58] sm:$0xff] %vm507_vm1, %v1778_v51  ;;  %v1765_v16 = vmul.f32 %v2265_v6, %v3110_v43 }
 0x497   : > { %v2267_v9 = vpop.eup %2266 }
 0x498   : > { %v1781_v52 = vadd.f32 %v2283_v19, %v1765_v16  ;;  %v1764_v46 = vmul.f32 %v2267_v9, %v3114_v4 }
 0x499   : > { %v2269_v3 = vpop.eup %2268 }
 0x49a   : > { %1797 = vst.msk [vmem:[%s3024_s30 + $0x70] sm:$0xff] %vm507_vm1, %v1781_v52  ;;  %v1780_v14 = vadd.f32 %v2284_v13, %v1764_v46  ;;  %v1766_v8 = vmul.f32 %v2269_v3, %v3125_v40 }
 0x49c   : > { %1796 = vst.msk [vmem:[%s3024_s30 + $0x68] sm:$0xff] %vm507_vm1, %v1780_v14  ;;  %v1782_v10 = vadd.f32 %v2285_v45, %v1766_v8 }
 0x49e   : > { %1798 = vst.msk [vmem:[%s3024_s30 + $0x78] sm:$0xff] %vm507_vm1, %v1782_v10 }
 0x49f PF: > { %s21_s15 = sadd.s32 1, %s2308_s15   ;;  %s3202_s13 = smov %s2304_s14 }
 0x4a0   : > { %p18_p6 = scmp.ge.s32.totalorder %s21_s15, 4   ;;  %s3203_s14 = smov %s3205_s16 }
 0x4a2   :  { %20 = sbr.rel (!%p18_p6) target bundleno = 2 (0x2), region = 111 }

// kernel: alignn_conv.6
= control target key start
LH: loop header
LB: loop body
LE: loop exit
PB: predicated region body
PF: predicated region fallthrough
CT: control target
= control target key end

     0   :  { %s2384_s13 = smov 0   ;;  %s2386_s14 = smov 0   ;;  %s3193_s0 = inlined_call_operand.vmem [shape: f32[16,32], index: 0, kind: input, shape index: {}]   ;;  %s3194_s1 = inlined_call_operand.vmem [shape: f32[256,32], index: 1, kind: input, shape index: {}]   ;;  %s3195_s2 = inlined_call_operand.vmem [shape: s32[256,1], index: 2, kind: input, shape index: {}]   ;;  %s3196_s3 = inlined_call_operand.vmem [shape: s32[256,1], index: 3, kind: input, shape index: {}]   ;;  %s3197_s4 = inlined_call_operand.vmem [shape: s32[1,256], index: 4, kind: input, shape index: {}]   ;;  %s3198_s5 = inlined_call_operand.vmem [shape: bf16[32,96], index: 5, kind: input, shape index: {}]   ;;  %s3199_s6 = inlined_call_operand.vmem [shape: f32[1,96], index: 6, kind: input, shape index: {}]   ;;  %s3200_s7 = inlined_call_operand.vmem [shape: bf16[32,32], index: 7, kind: input, shape index: {}]   ;;  %s3201_s8 = inlined_call_operand.vmem [shape: f32[8,32], index: 8, kind: input, shape index: {}]   ;;  %s3202_s9 = inlined_call_operand.vmem [shape: f32[2,16,64], index: 9, kind: output, shape index: {0}]   ;;  %s3203_s10 = inlined_call_operand.vmem [shape: f32[256,32], index: 10, kind: output, shape index: {1}]  }
   0x1   :  { %s2388_s15 = smov 0  }
   0x2 LB: > { %s33_s16 = sadd.s32 1, %s2316_s14  ;;  %p1943_p0 = scmp.ge.s32.totalorder %s2320_s15, 1  ;;  %s2320_s15 = sphi %s2388_s15, %s21_s15   ;;  %s2316_s14 = sphi %s2386_s14, %s3205_s14   ;;  %s2312_s13 = sphi %s2384_s13, %s3204_s13  }
   0x3   : > { %p35_p1 = scmp.ge.s32.totalorder %s33_s16, 2  ;;  %p376_p2 = scmp.lt.s32.totalorder %s2320_s15, 3 }
   0x5   : > { %s3207_s16 = smov (%p35_p1, %s33_s16), 0  ;;  %p377_p3 = pnand %p1943_p0, %p376_p2 }
   0x6   : > { %v2118_v0 = vld [vmem:[%s3198_s5] sm:$0xff] (!%p377_p3)   ;;  %v2322_v1 = vmov (!%p377_p3), 0.0   ;;  %v2120_v3 = vld [vmem:[%s3200_s7 + $0x8] sm:$0xff] (!%p377_p3)   ;;  %v2323_v4 = vmov (!%p377_p3), 0   ;;  %vm556_vm0 = vcmask (!%p377_p3), 523264   ;;  %vm510_vm1 = vcmask (!%p377_p3), 261120  }
   0x7   : > { %380 = sbr.rel (%p377_p3) target bundleno = 1182 (0x49e), region = 56  ;;  %2033 = vmatprep.subr.bf16.mxu0 (!%p377_p3), %v2322_v1  ;;  %v2119_v2 = vld [vmem:[%s3200_s7] sm:$0xff] (!%p377_p3)   ;;  %2117 = vset.pattern.permute.xlu1 (!%p377_p3), %v2323_v4  ;;  %v2121_v5 = vld [vmem:[%s3198_s5 + $0x8] sm:$0xff] (!%p377_p3)   ;;  %559 = vst.msk [vmem:[#allocation2 + $0x10] sm:$0xff] (!%p377_p3), %vm556_vm0, %v2323_v4  ;;  %560 = vst.msk [vmem:[#allocation2 + $0x18] sm:$0xff] (!%p377_p3), %vm556_vm0, %v2323_v4  ;;  %s1944_s25 = sshll.u32 (!%p377_p3), %s2312_s13, 4  ;;  %v589_v42 = vlaneseq (!%p377_p3) }
   0x8   : > { %2034 = vmatpush3.bf16.msra.mxu0 (!%p377_p3), %v2118_v0  ;;  %2116 = vset.pattern.permute.xlu0 (!%p377_p3), %v2323_v4  ;;  %557 = vst.msk [vmem:[#allocation2] sm:$0xff] (!%p377_p3), %vm556_vm0, %v2323_v4  ;;  %558 = vst.msk [vmem:[#allocation2 + $0x8] sm:$0xff] (!%p377_p3), %vm556_vm0, %v2323_v4  ;;  %v484_v6 = vld [vmem:[%s3193_s0] sm:$0xff] (!%p377_p3)  ;;  %v485_v7 = vld [vmem:[%s3193_s0 + $0x8] sm:$0xff] (!%p377_p3)  ;;  %p439_p4 = scmp.lt.s32.totalorder (!%p377_p3), %s1944_s25, 31  ;;  %vm2324_vm2 = vmmov (!%p377_p3), 0  }
   0x9   : > { %2035 = vmatprep.subr.bf16.mxu0 (!%p377_p3), %v2322_v1  ;;  %585 = vst.msk [vmem:[#allocation2 + $0x10] sm:$0xff] (!%p377_p3), %vm510_vm1, %v2119_v2  ;;  %586 = vst.msk [vmem:[#allocation2 + $0x18] sm:$0xff] (!%p377_p3), %vm510_vm1, %v2120_v3  ;;  %2037 = vmatprep.mubr.msk.bf16.mxu0 (!%p377_p3), %vm2324_vm2, %v2322_v1  ;;  %v486_v8 = vpack.c.bf16 (!%p377_p3), %v485_v7, %v484_v6  ;;  %s2325_s24 = smov (!%p377_p3), 32   ;;  %v2489_v43 = vand.u32 (!%p377_p3), 127, %v589_v42  ;;  %vm815_vm15 = vcmask (!%p377_p3), 130048   ;;  %s2327_s28 = smov (!%p377_p3), 96  }
   0xa   : > { %p462_p5 = scmp.lt.s32.totalorder (!%p377_p3), %s2312_s13, 1 }
   0xc   : > { %2036 = vmatpush3.bf16.msra.mxu0 (!%p377_p3), %v2121_v5 }
   0xd   : > { %2065 = vmatprep.subr.bf16.mxu0 (!%p377_p3), %v2322_v1 }
   0xe   : > { %s3209_s25 = smov (!%p439_p4, %s1944_s25), 31  ;;  %s3211_s13 = smov (!%p462_p5, %s2312_s13), 1 }
   0xf   : > { %s2433_s30 = sshll.u32 %s3209_s25, 3  ;;  %2038 = vmatmul.mubr.msk.bf16.vlgmr.msra.gmra.mrb[0].mxu0 %vm510_vm1, %v486_v8  ;;  %s2326_s25 = smov 16  }
  0x10   : > { %s2440_s17 = scalar_lea.vmem %s3196_s3, %s2433_s30  ;;  %2081 = vmatprep.mubr.msk.bf16.mxu0 %vm2324_vm2, %v2322_v1  ;;  %s2463_s20 = scalar_lea.vmem %s3195_s2, %s2433_s30 }
  0x11   : > { %v697_v9 = vld [vmem:[%s2440_s17 + $0x10] sm:$0xff]  ;;  %v695_v10 = vld [vmem:[%s2440_s17] sm:$0xff]  ;;  %v698_v11 = vld [vmem:[%s2440_s17 + $0x18] sm:$0xff]  ;;  %s2475_s23 = scalar_lea.vmem %s3194_s1, %s2433_s30  ;;  %s464_s18 = scalar_lea.vmem %s3197_s4, %s3211_s13 }
  0x12   : > { %718 = vperm.xlu1 %2117, %v697_v9   ;;  %712 = vperm.xlu0 %2116, %v695_v10   ;;  %v696_v12 = vld [vmem:[%s2440_s17 + $0x8] sm:$0xff]  ;;  %v699_v14 = vld [vmem:[%s2440_s17 + $0x20] sm:$0xff]  ;;  %v702_v15 = vld [vmem:[%s2440_s17 + $0x38] sm:$0xff] }
  0x13   : > { %v700_v13 = vld [vmem:[%s2440_s17 + $0x28] sm:$0xff]  ;;  %v701_v16 = vld [vmem:[%s2440_s17 + $0x30] sm:$0xff]  ;;  %v703_v18 = vld [vmem:[%s2440_s17 + $0x40] sm:$0xff] }
  0x14   : > { %v704_v17 = vld [vmem:[%s2440_s17 + $0x48] sm:$0xff]  ;;  %v706_v19 = vld [vmem:[%s2440_s17 + $0x58] sm:$0xff]  ;;  %v705_v20 = vld [vmem:[%s2440_s17 + $0x50] sm:$0xff] }
  0x15   : > { %v708_v21 = vld [vmem:[%s2440_s17 + $0x68] sm:$0xff]  ;;  %v707_v22 = vld [vmem:[%s2440_s17 + $0x60] sm:$0xff]  ;;  %v710_v23 = vld [vmem:[%s2440_s17 + $0x78] sm:$0xff] }
  0x16   : > { %721 = vperm.xlu1 %2117, %v698_v11   ;;  %715 = vperm.xlu0 %2116, %v696_v12   ;;  %v709_v24 = vld [vmem:[%s2440_s17 + $0x70] sm:$0xff]  ;;  %v591_v25 = vld [vmem:[%s2463_s20] sm:$0xff]  ;;  %v592_v26 = vld [vmem:[%s2463_s20 + $0x8] sm:$0xff] }
  0x17   : > { %v593_v27 = vld [vmem:[%s2463_s20 + $0x10] sm:$0xff]  ;;  %v594_v28 = vld [vmem:[%s2463_s20 + $0x18] sm:$0xff]  ;;  %v595_v29 = vld [vmem:[%s2463_s20 + $0x20] sm:$0xff] }
  0x18   : > { %v596_v30 = vld [vmem:[%s2463_s20 + $0x28] sm:$0xff]  ;;  %v597_v31 = vld [vmem:[%s2463_s20 + $0x30] sm:$0xff]  ;;  %v598_v32 = vld [vmem:[%s2463_s20 + $0x38] sm:$0xff] }
  0x19   : > { %v799_v33 = vld [vmem:[%s2475_s23] sm:$0xff]  ;;  %v800_v34 = vld [vmem:[%s2475_s23 + $0x8] sm:$0xff]  ;;  %v801_v35 = vld [vmem:[%s2475_s23 + $0x10] sm:$0xff] }
  0x1a   : > { %727 = vperm.xlu1 %2117, %v700_v13   ;;  %724 = vperm.xlu0 %2116, %v699_v14   ;;  %v802_v36 = vld [vmem:[%s2475_s23 + $0x18] sm:$0xff]  ;;  %v865_v37 = vpack.c.bf16 %v800_v34, %v799_v33  ;;  %v599_v39 = vld [vmem:[%s2463_s20 + $0x40] sm:$0xff]  ;;  %v600_v40 = vld [vmem:[%s2463_s20 + $0x48] sm:$0xff] }
  0x1b   : > { %v866_v38 = vpack.c.bf16 %v802_v36, %v801_v35  ;;  %v601_v41 = vld [vmem:[%s2463_s20 + $0x50] sm:$0xff]  ;;  %v803_v58 = vld [vmem:[%s2475_s23 + $0x20] sm:$0xff]  ;;  %v804_v59 = vld [vmem:[%s2475_s23 + $0x28] sm:$0xff] }
  0x1c   : > { %v867_v63 = vpack.c.bf16 %v804_v59, %v803_v58  ;;  %v603_v3 = vld [vmem:[%s2463_s20 + $0x60] sm:$0xff]  ;;  %v605_v6 = vld [vmem:[%s2463_s20 + $0x70] sm:$0xff]  ;;  %v808_v13 = vld [vmem:[%s2475_s23 + $0x48] sm:$0xff] }
  0x1d   : > { %v807_v12 = vld [vmem:[%s2475_s23 + $0x40] sm:$0xff] }
  0x1e   : > { %733 = vperm.xlu1 %2117, %v702_v15   ;;  %730 = vperm.xlu0 %2116, %v701_v16   ;;  %v869_v16 = vpack.c.bf16 %v808_v13, %v807_v12 }
  0x22   : > { %739 = vperm.xlu1 %2117, %v704_v17   ;;  %736 = vperm.xlu0 %2116, %v703_v18  }
  0x26   : > { %745 = vperm.xlu1 %2117, %v706_v19   ;;  %742 = vperm.xlu0 %2116, %v705_v20  }
  0x2a   : > { %751 = vperm.xlu1 %2117, %v708_v21   ;;  %748 = vperm.xlu0 %2116, %v707_v22  }
  0x2e   : > { %757 = vperm.xlu1 %2117, %v710_v23   ;;  %754 = vperm.xlu0 %2116, %v709_v24   ;;  %v811_v24 = vld [vmem:[%s2475_s23 + $0x60] sm:$0xff] }
  0x32   : > { %608 = vperm.xlu1 %2117, %v591_v25   ;;  %611 = vperm.xlu0 %2116, %v592_v26   ;;  %v812_v25 = vld [vmem:[%s2475_s23 + $0x68] sm:$0xff] }
  0x36   : > { %614 = vperm.xlu1 %2117, %v593_v27   ;;  %617 = vperm.xlu0 %2116, %v594_v28  }
  0x3a   : > { %620 = vperm.xlu1 %2117, %v595_v29   ;;  %623 = vperm.xlu0 %2116, %v596_v30   ;;  %v871_v29 = vpack.c.bf16 %v812_v25, %v811_v24 }
  0x3e   : > { %626 = vperm.xlu1 %2117, %v597_v31   ;;  %629 = vperm.xlu0 %2116, %v598_v32  }
  0x42   : > { %881 = vrot.lane.b32.xlu1 %v865_v37, %s2325_s24  ;;  %883 = vrot.lane.b32.xlu0 %v866_v38, %s2325_s24 }
  0x46   : > { %632 = vperm.xlu1 %2117, %v599_v39   ;;  %635 = vperm.xlu0 %2116, %v600_v40  }
  0x4a   : > { %638 = vperm.xlu1 %2117, %v601_v41  }
  0x91   : > { %v719_v44 = vpop.permute.xlu1 %718  ;;  %v713_v45 = vpop.permute.xlu0 %712 }
  0x92   : > { %vm761_vm3 = vcmp.eq.s32.totalorder %v2489_v43, %v719_v44  ;;  %vm759_vm4 = vcmp.eq.s32.totalorder %v2489_v43, %v713_v45 }
  0x93   : > { %v777_v46 = vsel %vm761_vm3, 1.0, %v2322_v1  ;;  %v775_v47 = vsel %vm759_vm4, 1.0, %v2322_v1 }
  0x95   : > { %v722_v48 = vpop.permute.xlu1 %721  ;;  %v716_v49 = vpop.permute.xlu0 %715 }
  0x96   : > { %vm762_vm5 = vcmp.eq.s32.totalorder %v2489_v43, %v722_v48  ;;  %vm760_vm6 = vcmp.eq.s32.totalorder %v2489_v43, %v716_v49 }
  0x97   : > { %v778_v50 = vsel %vm762_vm5, 1.0, %v2322_v1  ;;  %v776_v51 = vsel %vm760_vm6, 1.0, %v2322_v1 }
  0x98   : > { %v792_v52 = vpack.c.bf16 %v778_v50, %v777_v46  ;;  %v791_v53 = vpack.c.bf16 %v776_v51, %v775_v47 }
  0x99   : > { %v728_v54 = vpop.permute.xlu1 %727  ;;  %v725_v55 = vpop.permute.xlu0 %724 }
  0x9a   : > { %vm764_vm7 = vcmp.eq.s32.totalorder %v2489_v43, %v728_v54  ;;  %vm763_vm8 = vcmp.eq.s32.totalorder %v2489_v43, %v725_v55  ;;  %832 = vrot.lane.b32.xlu1 %v791_v53, %s2326_s25  ;;  %834 = vrot.lane.b32.xlu0 %v792_v52, %s2326_s25  ;;  %v1954_v52 = vld [vmem:[%s3199_s6] ss:$0 sm:$0xff] }
  0x9b   : > { %v780_v56 = vsel %vm764_vm7, 1.0, %v2322_v1  ;;  %v779_v57 = vsel %vm763_vm8, 1.0, %v2322_v1 }
  0x9c   : > { %v793_v60 = vpack.c.bf16 %v780_v56, %v779_v57 }
  0x9d   : > { %v2507_v61 = vpop.permute.xlu1 %733  ;;  %v2509_v62 = vpop.permute.xlu0 %730 }
  0x9e   : > { %836 = vrot.lane.b32.xlu1 %v793_v60, %s2326_s25  ;;  %v602_v60 = vld [vmem:[%s2463_s20 + $0x58] sm:$0xff] }
  0xa1   : > { %v740_v0 = vpop.permute.xlu1 %739  ;;  %v737_v2 = vpop.permute.xlu0 %736 }
  0xa2   : > { %885 = vrot.lane.b32.xlu1 %v867_v63, %s2325_s24  ;;  %vm768_vm9 = vcmp.eq.s32.totalorder %v2489_v43, %v740_v0  ;;  %vm767_vm10 = vcmp.eq.s32.totalorder %v2489_v43, %v737_v2  ;;  %v805_v2 = vld [vmem:[%s2475_s23 + $0x30] sm:$0xff] }
  0xa3   : > { %v784_v7 = vsel %vm768_vm9, 1.0, %v2322_v1  ;;  %v783_v8 = vsel %vm767_vm10, 1.0, %v2322_v1  ;;  %vm766_vm10 = vcmp.eq.s32.totalorder %v2489_v43, %v2507_v61 }
  0xa4   : > { %v795_v11 = vpack.c.bf16 %v784_v7, %v783_v8  ;;  %v782_v63 = vsel %vm766_vm10, 1.0, %v2322_v1  ;;  %v606_v7 = vld [vmem:[%s2463_s20 + $0x78] sm:$0xff] }
  0xa5   : > { %v2516_v4 = vpop.permute.xlu1 %745  ;;  %v2518_v5 = vpop.permute.xlu0 %742 }
  0xa6   : > { %644 = vperm.xlu1 %2117, %v603_v3   ;;  %v806_v3 = vld [vmem:[%s2475_s23 + $0x38] sm:$0xff] }
  0xa9   : > { %v752_v9 = vpop.permute.xlu1 %751  ;;  %v749_v10 = vpop.permute.xlu0 %748 }
  0xaa   : > { %650 = vperm.xlu1 %2117, %v605_v6   ;;  %vm772_vm11 = vcmp.eq.s32.totalorder %v2489_v43, %v752_v9  ;;  %vm771_vm12 = vcmp.eq.s32.totalorder %v2489_v43, %v749_v10  ;;  %v604_v6 = vld [vmem:[%s2463_s20 + $0x68] sm:$0xff]  ;;  %v809_v10 = vld [vmem:[%s2475_s23 + $0x50] sm:$0xff] }
  0xab   : > { %v788_v17 = vsel %vm772_vm11, 1.0, %v2322_v1  ;;  %v787_v18 = vsel %vm771_vm12, 1.0, %v2322_v1  ;;  %vm765_vm11 = vcmp.eq.s32.totalorder %v2489_v43, %v2509_v62  ;;  %v868_v62 = vpack.c.bf16 %v806_v3, %v805_v2 }
  0xac   : > { %v797_v21 = vpack.c.bf16 %v788_v17, %v787_v18  ;;  %v781_v0 = vsel %vm765_vm11, 1.0, %v2322_v1  ;;  %vm770_vm12 = vcmp.eq.s32.totalorder %v2489_v43, %v2516_v4  ;;  %v814_v17 = vld [vmem:[%s2475_s23 + $0x78] sm:$0xff] }
  0xad   : > { %v2527_v14 = vpop.permute.xlu1 %757  ;;  %v2529_v15 = vpop.permute.xlu0 %754  ;;  %v794_v61 = vpack.c.bf16 %v782_v63, %v781_v0  ;;  %v786_v8 = vsel %vm770_vm12, 1.0, %v2322_v1  ;;  %v2652_v63 = vld [vmem:[%s3201_s8] ss:$0 sm:$0xff] }
  0xae   : > { %840 = vrot.lane.b32.xlu1 %v795_v11, %s2326_s25  ;;  %v810_v11 = vld [vmem:[%s2475_s23 + $0x58] sm:$0xff] }
  0xaf   : > { %v870_v4 = vpack.c.bf16 %v810_v11, %v809_v10 }
  0xb1   : > { %v609_v19 = vpop.permute.xlu1 %608  ;;  %v612_v20 = vpop.permute.xlu0 %611 }
  0xb2   : > { %vm655_vm13 = vcmp.eq.s32.totalorder %v2489_v43, %v609_v19  ;;  %vm656_vm14 = vcmp.eq.s32.totalorder %v2489_v43, %v612_v20  ;;  %889 = vrot.lane.b32.xlu1 %v869_v16, %s2325_s24  ;;  %v813_v16 = vld [vmem:[%s2475_s23 + $0x70] sm:$0xff] }
  0xb3   : > { %v671_v22 = vsel %vm655_vm13, 1.0, %v2322_v1  ;;  %v672_v23 = vsel %vm656_vm14, 1.0, %v2322_v1  ;;  %vm769_vm13 = vcmp.eq.s32.totalorder %v2489_v43, %v2518_v5  ;;  %vm774_vm14 = vcmp.eq.s32.totalorder %v2489_v43, %v2527_v14 }
  0xb4   : > { %v687_v26 = vpack.c.bf16 %v672_v23, %v671_v22  ;;  %v785_v9 = vsel %vm769_vm13, 1.0, %v2322_v1  ;;  %v790_v5 = vsel %vm774_vm14, 1.0, %v2322_v1  ;;  %v872_v20 = vpack.c.bf16 %v814_v17, %v813_v16 }
  0xb5   : > { %v615_v27 = vpop.permute.xlu1 %614  ;;  %v618_v28 = vpop.permute.xlu0 %617  ;;  %v796_v12 = vpack.c.bf16 %v786_v8, %v785_v9 }
  0xb6   : > { %vm657_vm2 = vcmp.eq.s32.totalorder %v2489_v43, %v615_v27  ;;  %vm658_vm3 = vcmp.eq.s32.totalorder %v2489_v43, %v618_v28  ;;  %844 = vrot.lane.b32.xlu1 %v797_v21, %s2326_s25  ;;  %816 = vst.msk [vmem:[#allocation3] sm:$0xff] %vm815_vm15, %v687_v26 }
  0xb7   : > { %v673_v30 = vsel %vm657_vm2, 1.0, %v2322_v1  ;;  %v674_v31 = vsel %vm658_vm3, 1.0, %v2322_v1  ;;  %vm773_vm2 = vcmp.eq.s32.totalorder %v2489_v43, %v2529_v15  ;;  %vm856_vm3 = vcmask 261248  }
  0xb8   : > { %v688_v32 = vpack.c.bf16 %v674_v31, %v673_v30  ;;  %v789_v13 = vsel %vm773_vm2, 1.0, %v2322_v1  ;;  %v924_v31 = vld [vmem:[#allocation2 + $0x10] sm:$0xff] }
  0xb9   : > { %v621_v33 = vpop.permute.xlu1 %620  ;;  %v624_v34 = vpop.permute.xlu0 %623  ;;  %v798_v18 = vpack.c.bf16 %v790_v5, %v789_v13 }
  0xba   : > { %vm659_vm4 = vcmp.eq.s32.totalorder %v2489_v43, %v621_v33  ;;  %vm660_vm5 = vcmp.eq.s32.totalorder %v2489_v43, %v624_v34  ;;  %817 = vst.msk [vmem:[#allocation3 + $0x8] sm:$0xff] %vm815_vm15, %v688_v32  ;;  %893 = vrot.lane.b32.xlu1 %v871_v29, %s2325_s24  ;;  %v925_v32 = vld [vmem:[#allocation2 + $0x18] sm:$0xff] }
  0xbb   : > { %v675_v35 = vsel %vm659_vm4, 1.0, %v2322_v1  ;;  %v676_v36 = vsel %vm660_vm5, 1.0, %v2322_v1  ;;  %vm566_vm4 = vcmask 523520  }
  0xbc   : > { %v689_v37 = vpack.c.bf16 %v676_v36, %v675_v35 }
  0xbd   : > { %v627_v38 = vpop.permute.xlu1 %626  ;;  %v630_v39 = vpop.permute.xlu0 %629 }
  0xbe   : > { %vm661_vm6 = vcmp.eq.s32.totalorder %v2489_v43, %v627_v38  ;;  %vm662_vm7 = vcmp.eq.s32.totalorder %v2489_v43, %v630_v39  ;;  %818 = vst.msk [vmem:[#allocation3 + $0x10] sm:$0xff] %vm815_vm15, %v689_v37 }
  0xbf   : > { %v677_v40 = vsel %vm661_vm6, 1.0, %v2322_v1  ;;  %v678_v41 = vsel %vm662_vm7, 1.0, %v2322_v1 }
  0xc0   : > { %v690_v44 = vpack.c.bf16 %v678_v41, %v677_v40 }
  0xc1   : > { %v2558_v45 = vpop.permute.xlu1 %881  ;;  %v2560_v46 = vpop.permute.xlu0 %883 }
  0xc2   : > { %819 = vst.msk [vmem:[#allocation3 + $0x18] sm:$0xff] %vm815_vm15, %v690_v44 }
  0xc5   : > { %v633_v47 = vpop.permute.xlu1 %632  ;;  %v636_v48 = vpop.permute.xlu0 %635 }
  0xc6   : > { %vm663_vm8 = vcmp.eq.s32.totalorder %v2489_v43, %v633_v47  ;;  %vm664_vm9 = vcmp.eq.s32.totalorder %v2489_v43, %v636_v48 }
  0xc7   : > { %v679_v49 = vsel %vm663_vm8, 1.0, %v2322_v1  ;;  %v680_v50 = vsel %vm664_vm9, 1.0, %v2322_v1 }
  0xc8   : > { %v691_v51 = vpack.c.bf16 %v680_v50, %v679_v49 }
  0xc9   : > { %v639_v19 = vpop.permute.xlu1 %638 }
  0xca   : > { %820 = vst.msk [vmem:[#allocation3 + $0x20] sm:$0xff] %vm815_vm15, %v691_v51  ;;  %vm665_vm5 = vcmp.eq.s32.totalorder %v2489_v43, %v639_v19 }
  0xcb   : > { %v681_v34 = vsel %vm665_vm5, 1.0, %v2322_v1 }
  0xe2   : > { %v548_v53 = vpop.f32.mrb[0].mxu0 }
  0xe3   : > { %v2039_v54 = vpop.f32.mrb[1].mxu0  ;;  %v549_v56 = vadd.f32 %v1954_v52, %v548_v53 }
  0xe4   : > { %v551_v55 = vpop.f32.mrb[2].mxu0 }
  0xe5   : > { %v552_v57 = vadd.f32 %v1954_v52, %v551_v55  ;;  %v2040_v58 = vpop.f32.mrb[3].mxu0 }
  0xe7   : > { %v555_v59 = vpack.c.bf16 %v552_v57, %v549_v56 }
  0xe9   : > { %561 = vst.msk [vmem:[#allocation2] sm:$0xff] %vm510_vm1, %v555_v59  ;;  %563 = vrot.lane.b32.xlu0 %v555_v59, %s2327_s28 }
  0xed   : > { %641 = vperm.xlu0 %2116, %v602_v60  }
  0xf1   : > { %838 = vrot.lane.b32.xlu0 %v794_v61, %s2326_s25 }
  0xf5   : > { %887 = vrot.lane.b32.xlu0 %v868_v62, %s2325_s24 }
  0xf9   : > { %647 = vperm.xlu0 %2116, %v604_v6  }
  0xfd   : > { %653 = vperm.xlu0 %2116, %v606_v7  }
 0x101   : > { %842 = vrot.lane.b32.xlu0 %v796_v12, %s2326_s25 }
 0x105   : > { %891 = vrot.lane.b32.xlu0 %v870_v4, %s2325_s24 }
 0x109   : > { %846 = vrot.lane.b32.xlu0 %v798_v18, %s2326_s25 }
 0x10c   : > { %v833_v14 = vpop.permute.xlu1 %832  ;;  %v835_v15 = vpop.permute.xlu0 %834 }
 0x10d   : > { %857 = vst.msk [vmem:[#allocation3] sm:$0xff] %vm856_vm3, %v833_v14  ;;  %895 = vrot.lane.b32.xlu0 %v872_v20, %s2325_s24  ;;  %858 = vst.msk [vmem:[#allocation3 + $0x8] sm:$0xff] %vm856_vm3, %v835_v15 }
 0x10e   : > { %906 = vst.msk [vmem:[#allocation3] sm:$0xff] %vm566_vm4, %v2558_v45  ;;  %907 = vst.msk [vmem:[#allocation3 + $0x8] sm:$0xff] %vm566_vm4, %v2560_v46 }
 0x110   : > { %v837_v21 = vpop.permute.xlu1 %836 }
 0x111   : > { %859 = vst.msk [vmem:[#allocation3 + $0x10] sm:$0xff] %vm856_vm3, %v837_v21 }
 0x114   : > { %v886_v22 = vpop.permute.xlu1 %885 }
 0x115   : > { %908 = vst.msk [vmem:[#allocation3 + $0x10] sm:$0xff] %vm566_vm4, %v886_v22  ;;  %v914_v23 = vld [vmem:[#allocation3] sm:$0xff]  ;;  %v915_v38 = vld [vmem:[#allocation3 + $0x8] sm:$0xff] }
 0x116   : > { %2049 = vmatprep.mubr.msk.bf16.mxu1 %vm556_vm0, %v914_v23 }
 0x11c   : > { %v916_v40 = vld [vmem:[#allocation3 + $0x10] sm:$0xff] }
 0x125   : > { %v645_v24 = vpop.permute.xlu1 %644 }
 0x126   : > { %vm667_vm7 = vcmp.eq.s32.totalorder %v2489_v43, %v645_v24 }
 0x127   : > { %v683_v45 = vsel %vm667_vm7, 1.0, %v2322_v1 }
 0x129   : > { %v651_v25 = vpop.permute.xlu1 %650 }
 0x12a   : > { %vm669_vm9 = vcmp.eq.s32.totalorder %v2489_v43, %v651_v25 }
 0x12b   : > { %v685_v52 = vsel %vm669_vm9, 1.0, %v2322_v1 }
 0x12d   : > { %v841_v26 = vpop.permute.xlu1 %840 }
 0x12e   : > { %861 = vst.msk [vmem:[#allocation3 + $0x20] sm:$0xff] %vm856_vm3, %v841_v26 }
 0x131   : > { %v890_v27 = vpop.permute.xlu1 %889 }
 0x132   : > { %910 = vst.msk [vmem:[#allocation3 + $0x20] sm:$0xff] %vm566_vm4, %v890_v27 }
 0x135   : > { %v845_v41 = vpop.permute.xlu1 %844 }
 0x139   : > { %v918_v48 = vld [vmem:[#allocation3 + $0x20] sm:$0xff]  ;;  %v894_v51 = vpop.permute.xlu1 %893 }
 0x15b   : > { %v564_v28 = vpop.permute.xlu0 %563 }
 0x15c   : > { %567 = vst.msk [vmem:[#allocation2] sm:$0xff] %vm566_vm4, %v564_v28 }
 0x15d   : > { %568 = vst.msk [vmem:[#allocation2 + $0x8] sm:$0xff] %vm510_vm1, %v564_v28 }
 0x163   : > { %v922_v29 = vld [vmem:[#allocation2] sm:$0xff] }
 0x164   : > { %2041 = vmatprep.subr.bf16.mxu1 %v922_v29  ;;  %v923_v30 = vld [vmem:[#allocation2 + $0x8] sm:$0xff] }
 0x165   : > { %2042 = vmatpush3.bf16.msra.mxu1 %v922_v29 }
 0x166   : > { %2043 = vmatprep.subr.bf16.mxu1 %v923_v30 }
 0x169   : > { %2044 = vmatpush3.bf16.msra.mxu1 %v923_v30 }
 0x16a   : > { %2045 = vmatprep.subr.bf16.mxu1 %v924_v31 }
 0x16c   : > { %v642_v33 = vpop.permute.xlu0 %641 }
 0x16d   : > { %vm666_vm6 = vcmp.eq.s32.totalorder %v2489_v43, %v642_v33  ;;  %2046 = vmatpush3.bf16.msra.mxu1 %v924_v31 }
 0x16e   : > { %v682_v35 = vsel %vm666_vm6, 1.0, %v2322_v1  ;;  %2047 = vmatprep.subr.bf16.mxu1 %v925_v32 }
 0x16f   : > { %v692_v36 = vpack.c.bf16 %v682_v35, %v681_v34 }
 0x170   : > { %v839_v37 = vpop.permute.xlu0 %838 }
 0x171   : > { %821 = vst.msk [vmem:[#allocation3 + $0x28] sm:$0xff] %vm815_vm15, %v692_v36  ;;  %2048 = vmatpush3.bf16.msra.mxu1 %v925_v32 }
 0x172   : > { %860 = vst.msk [vmem:[#allocation3 + $0x18] sm:$0xff] %vm856_vm3, %v839_v37 }
 0x174   : > { %v888_v39 = vpop.permute.xlu0 %887  ;;  %2050 = vmatmul.mubr.msk.bf16.vlgmr.msra.gmra.mrb[0].mxu1 %vm556_vm0, %v915_v38 }
 0x175   : > { %909 = vst.msk [vmem:[#allocation3 + $0x18] sm:$0xff] %vm566_vm4, %v888_v39  ;;  %2053 = vmatprep.mubr.msk.bf16.mxu1 %vm556_vm0, %v916_v40 }
 0x178   : > { %v648_v44 = vpop.permute.xlu0 %647 }
 0x179   : > { %vm668_vm8 = vcmp.eq.s32.totalorder %v2489_v43, %v648_v44 }
 0x17a   : > { %v684_v46 = vsel %vm668_vm8, 1.0, %v2322_v1 }
 0x17b   : > { %v693_v47 = vpack.c.bf16 %v684_v46, %v683_v45 }
 0x17c   : > { %v654_v49 = vpop.permute.xlu0 %653  ;;  %v917_v50 = vld [vmem:[#allocation3 + $0x18] sm:$0xff] }
 0x17d   : > { %822 = vst.msk [vmem:[#allocation3 + $0x30] sm:$0xff] %vm815_vm15, %v693_v47  ;;  %vm670_vm10 = vcmp.eq.s32.totalorder %v2489_v43, %v654_v49  ;;  %2054 = vmatmul.mubr.msk.bf16.gmra.mrb[4].mxu1 %vm556_vm0, %v917_v50 }
 0x17e   : > { %863 = vst.msk [vmem:[#allocation3 + $0x30] sm:$0xff] %vm856_vm3, %v845_v41  ;;  %v686_v53 = vsel %vm670_vm10, 1.0, %v2322_v1  ;;  %2057 = vmatprep.mubr.msk.bf16.mxu1 %vm556_vm0, %v918_v48 }
 0x17f   : > { %v694_v54 = vpack.c.bf16 %v686_v53, %v685_v52  ;;  %912 = vst.msk [vmem:[#allocation3 + $0x30] sm:$0xff] %vm566_vm4, %v894_v51 }
 0x180   : > { %v843_v55 = vpop.permute.xlu0 %842 }
 0x181   : > { %823 = vst.msk [vmem:[#allocation3 + $0x38] sm:$0xff] %vm815_vm15, %v694_v54 }
 0x182   : > { %862 = vst.msk [vmem:[#allocation3 + $0x28] sm:$0xff] %vm856_vm3, %v843_v55 }
 0x184   : > { %v892_v56 = vpop.permute.xlu0 %891 }
 0x185   : > { %911 = vst.msk [vmem:[#allocation3 + $0x28] sm:$0xff] %vm566_vm4, %v892_v56 }
 0x186   : > { %v920_v57 = vld [vmem:[#allocation3 + $0x30] sm:$0xff] }
 0x188   : > { %v847_v43 = vpop.permute.xlu0 %846 }
 0x189   : > { %864 = vst.msk [vmem:[#allocation3 + $0x38] sm:$0xff] %vm856_vm3, %v847_v43 }
 0x18c   : > { %v896_v58 = vpop.permute.xlu0 %895  ;;  %v919_v59 = vld [vmem:[#allocation3 + $0x28] sm:$0xff] }
 0x18d   : > { %913 = vst.msk [vmem:[#allocation3 + $0x38] sm:$0xff] %vm566_vm4, %v896_v58  ;;  %2058 = vmatmul.mubr.msk.bf16.gmra.mrb[8].mxu1 %vm556_vm0, %v919_v59 }
 0x18e   : > { %2061 = vmatprep.mubr.msk.bf16.mxu1 %vm556_vm0, %v920_v57 }
 0x194   : > { %v921_v60 = vld [vmem:[#allocation3 + $0x38] sm:$0xff] }
 0x195   : > { %2062 = vmatmul.mubr.msk.bf16.gmra.mrb[12].mxu1 %vm556_vm0, %v921_v60 }
 0x247   : > { %v2654_v0 = vpop.f32.mrb[0].mxu1 }
 0x248   : > { %v2658_v2 = vadd.f32 %v2654_v0, %v2652_v63  ;;  %v2660_v3 = vpop.f32.mrb[1].mxu1 }
 0x249   : > { %v2664_v61 = vadd.f32 %v2652_v63, %v2660_v3  ;;  %v2666_v62 = vpop.f32.mrb[2].mxu1 }
 0x24a   : > { %v1971_v6 = vmul.f32 -1.442695, %v2658_v2  ;;  %v2671_v7 = vadd.f32 %v2666_v62, %v2652_v63  ;;  %v2673_v8 = vpop.f32.mrb[3].mxu1 }
 0x24b   : > { %v1969_v9 = vmul.f32 -1.442695, %v2664_v61  ;;  %v2678_v10 = vadd.f32 %v2652_v63, %v2673_v8 }
 0x24c   : > { %2122 = vpow2.f32 %v1971_v6  ;;  %v1972_v11 = vmul.f32 -1.442695, %v2671_v7 }
 0x24d   : > { %2124 = vpow2.f32 %v1969_v9  ;;  %v1970_v12 = vmul.f32 -1.442695, %v2678_v10 }
 0x24e   : > { %2126 = vpow2.f32 %v1972_v11 }
 0x24f   : > { %2128 = vpow2.f32 %v1970_v12 }
 0x250   : > { %v2682_v4 = vpop.f32.mrb[4].mxu1 }
 0x251   : > { %v2686_v5 = vadd.f32 %v2682_v4, %v2652_v63  ;;  %v2688_v13 = vpop.f32.mrb[5].mxu1 }
 0x252   : > { %v2692_v16 = vadd.f32 %v2652_v63, %v2688_v13  ;;  %v2694_v17 = vpop.f32.mrb[6].mxu1 }
 0x253   : > { %v1975_v18 = vmul.f32 -1.442695, %v2686_v5  ;;  %v2699_v19 = vadd.f32 %v2694_v17, %v2652_v63  ;;  %v2701_v20 = vpop.f32.mrb[7].mxu1 }
 0x254   : > { %v1973_v14 = vmul.f32 -1.442695, %v2692_v16  ;;  %v2706_v15 = vadd.f32 %v2652_v63, %v2701_v20 }
 0x255   : > { %2130 = vpow2.f32 %v1975_v18  ;;  %v1976_v21 = vmul.f32 -1.442695, %v2699_v19 }
 0x256   : > { %v2123_v22 = vpop.eup %2122  ;;  %2132 = vpow2.f32 %v1973_v14  ;;  %v1974_v23 = vmul.f32 -1.442695, %v2706_v15 }
 0x257   : > { %v2125_v24 = vpop.eup %2124  ;;  %2134 = vpow2.f32 %v1976_v21  ;;  %v1119_v28 = vadd.f32 1.0, %v2123_v22 }
 0x258   : > { %v2127_v25 = vpop.eup %2126  ;;  %v1117_v26 = vadd.f32 1.0, %v2125_v24  ;;  %2136 = vpow2.f32 %v1974_v23 }
 0x259   : > { %v2129_v27 = vpop.eup %2128  ;;  %v1120_v30 = vadd.f32 1.0, %v2127_v25 }
 0x25a   : > { %2138 = vrcp.f32 %v1117_v26  ;;  %v1118_v29 = vadd.f32 1.0, %v2129_v27 }
 0x25c   : > { %2140 = vrcp.f32 %v1118_v29 }
 0x25d   : > { %2142 = vrcp.f32 %v1119_v28 }
 0x25e   : > { %2144 = vrcp.f32 %v1120_v30 }
 0x25f   : > { %v2131_v31 = vpop.eup %2130 }
 0x260   : > { %v2133_v32 = vpop.eup %2132  ;;  %v1123_v33 = vadd.f32 1.0, %v2131_v31  ;;  %v2710_v34 = vpop.f32.mrb[8].mxu1 }
 0x261   : > { %v2135_v35 = vpop.eup %2134  ;;  %v1121_v36 = vadd.f32 1.0, %v2133_v32  ;;  %v2714_v37 = vadd.f32 %v2710_v34, %v2652_v63  ;;  %v2716_v38 = vpop.f32.mrb[9].mxu1 }
 0x262   : > { %v2137_v39 = vpop.eup %2136  ;;  %2146 = vrcp.f32 %v1123_v33  ;;  %v1124_v40 = vadd.f32 1.0, %v2135_v35  ;;  %v2720_v41 = vadd.f32 %v2652_v63, %v2716_v38  ;;  %v2722_v44 = vpop.f32.mrb[10].mxu1 }
 0x263   : > { %2148 = vrcp.f32 %v1121_v36  ;;  %v1122_v45 = vadd.f32 1.0, %v2137_v39  ;;  %v1979_v46 = vmul.f32 -1.442695, %v2714_v37  ;;  %v2727_v47 = vadd.f32 %v2722_v44, %v2652_v63  ;;  %v2729_v48 = vpop.f32.mrb[11].mxu1 }
 0x264   : > { %v2731_v49 = vpop.eup %2138  ;;  %2150 = vrcp.f32 %v1124_v40  ;;  %v1977_v50 = vmul.f32 -1.442695, %v2720_v41  ;;  %v2736_v51 = vadd.f32 %v2652_v63, %v2729_v48 }
 0x265   : > { %2152 = vrcp.f32 %v1122_v45  ;;  %v1980_v52 = vmul.f32 -1.442695, %v2727_v47  ;;  %1181 = vrot.lane.b32.xlu1 %v2731_v49, %s2325_s24 }
 0x266   : > { %v2741_v53 = vpop.eup %2140  ;;  %2154 = vpow2.f32 %v1979_v46  ;;  %v1978_v54 = vmul.f32 -1.442695, %v2736_v51 }
 0x267   : > { %2156 = vpow2.f32 %v1977_v50  ;;  %1183 = vrot.lane.b32.xlu0 %v2741_v53, %s2325_s24  ;;  %v2746_v55 = vpop.eup %2142 }
 0x268   : > { %2158 = vpow2.f32 %v1980_v52  ;;  %v2748_v56 = vpop.f32.mrb[12].mxu1  ;;  %v2758_v58 = vpop.eup %2144 }
 0x269   : > { %2160 = vpow2.f32 %v1978_v54  ;;  %v2752_v43 = vadd.f32 %v2748_v56, %v2652_v63  ;;  %1185 = vrot.lane.b32.xlu1 %v2746_v55, %s2325_s24  ;;  %v2756_v57 = vpop.f32.mrb[13].mxu1 }
 0x26a   : > { %v2762_v59 = vadd.f32 %v2652_v63, %v2756_v57  ;;  %v2764_v60 = vpop.f32.mrb[14].mxu1 }
 0x26b   : > { %v1983_v6 = vmul.f32 -1.442695, %v2752_v43  ;;  %v2769_v9 = vadd.f32 %v2764_v60, %v2652_v63  ;;  %1187 = vrot.lane.b32.xlu0 %v2758_v58, %s2325_s24  ;;  %v2773_v11 = vpop.f32.mrb[15].mxu1 }
 0x26c   : > { %v2775_v12 = vpop.eup %2146  ;;  %v1981_v18 = vmul.f32 -1.442695, %v2762_v59  ;;  %v2780_v14 = vadd.f32 %v2652_v63, %v2773_v11 }
 0x26d   : > { %v2149_v21 = vpop.eup %2148  ;;  %v1984_v22 = vmul.f32 -1.442695, %v2769_v9 }
 0x26e   : > { %v2151_v23 = vpop.eup %2150  ;;  %2162 = vpow2.f32 %v1981_v18  ;;  %v1982_v24 = vmul.f32 -1.442695, %v2780_v14  ;;  %1189 = vrot.lane.b32.xlu1 %v2149_v21, %s2325_s24 }
 0x26f   : > { %v2153_v25 = vpop.eup %2152  ;;  %2164 = vpow2.f32 %v1983_v6 }
 0x270   : > { %v2155_v26 = vpop.eup %2154  ;;  %2166 = vpow2.f32 %v1982_v24  ;;  %1191 = vrot.lane.b32.xlu0 %v2153_v25, %s2325_s24 }
 0x271   : > { %v2157_v27 = vpop.eup %2156  ;;  %2168 = vpow2.f32 %v1984_v22  ;;  %v1127_v30 = vadd.f32 1.0, %v2155_v26 }
 0x272   : > { %v2159_v28 = vpop.eup %2158  ;;  %v1125_v63 = vadd.f32 1.0, %v2157_v27  ;;  %1193 = vrot.lane.b32.xlu1 %v2775_v12, %s2325_s24 }
 0x273   : > { %v2161_v29 = vpop.eup %2160  ;;  %v1128_v32 = vadd.f32 1.0, %v2159_v28  ;;  %v1294_v28 = vpack.c.bf16 %v2741_v53, %v2731_v49 }
 0x274   : > { %2170 = vrcp.f32 %v1125_v63  ;;  %v1126_v31 = vadd.f32 1.0, %v2161_v29  ;;  %1195 = vrot.lane.b32.xlu0 %v2151_v23, %s2325_s24  ;;  %v1295_v63 = vpack.c.bf16 %v2758_v58, %v2746_v55  ;;  %v1296_v29 = vpack.c.bf16 %v2153_v25, %v2149_v21 }
 0x275   : > { %v1415_v55 = vsel %vm510_vm1, %v2678_v10, 0.0  ;;  %v1418_v58 = vsel %vm510_vm1, %v2658_v2, 0.0  ;;  %v1430_v21 = vsel %vm510_vm1, %v2686_v5, 0.0 }
 0x276   : > { %2172 = vrcp.f32 %v1126_v31 }
 0x277   : > { %2174 = vrcp.f32 %v1127_v30  ;;  %v1297_v30 = vpack.c.bf16 %v2151_v23, %v2775_v12  ;;  %v1424_v12 = vsel %vm510_vm1, %v2692_v16, 0.0 }
 0x278   : > { %v2163_v33 = vpop.eup %2162  ;;  %2176 = vrcp.f32 %v1128_v32 }
 0x279   : > { %v2165_v35 = vpop.eup %2164  ;;  %v1129_v36 = vadd.f32 1.0, %v2163_v33 }
 0x27a   : > { %v2167_v39 = vpop.eup %2166  ;;  %v1131_v46 = vadd.f32 1.0, %v2165_v35 }
 0x27b   : > { %v2169_v40 = vpop.eup %2168  ;;  %2178 = vrcp.f32 %v1129_v36  ;;  %v1130_v45 = vadd.f32 1.0, %v2167_v39  ;;  %v1436_v36 = vsel %vm510_vm1, %v2720_v41, 0.0 }
 0x27c   : > { %v1132_v52 = vadd.f32 1.0, %v2169_v40 }
 0x27d   : > { %2180 = vrcp.f32 %v1130_v45 }
 0x27e   : > { %v2171_v50 = vpop.eup %2170  ;;  %2182 = vrcp.f32 %v1131_v46 }
 0x27f   : > { %1197 = vrot.lane.b32.xlu1 %v2171_v50, %s2325_s24  ;;  %2184 = vrcp.f32 %v1132_v52  ;;  %v1442_v52 = vsel %vm510_vm1, %v2714_v37, 0.0 }
 0x280   : > { %v2173_v54 = vpop.eup %2172 }
 0x281   : > { %1199 = vrot.lane.b32.xlu0 %v2173_v54, %s2325_s24  ;;  %v2175_v6 = vpop.eup %2174  ;;  %v1298_v31 = vpack.c.bf16 %v2173_v54, %v2171_v50 }
 0x282   : > { %v2177_v18 = vpop.eup %2176 }
 0x283   : > { %1201 = vrot.lane.b32.xlu1 %v2175_v6, %s2325_s24  ;;  %v1299_v32 = vpack.c.bf16 %v2177_v18, %v2175_v6 }
 0x285   : > { %v2179_v22 = vpop.eup %2178  ;;  %1203 = vrot.lane.b32.xlu0 %v2177_v18, %s2325_s24 }
 0x287   : > { %v2181_v24 = vpop.eup %2180  ;;  %1205 = vrot.lane.b32.xlu1 %v2179_v22, %s2325_s24 }
 0x288   : > { %v2183_v26 = vpop.eup %2182  ;;  %v1300_v49 = vpack.c.bf16 %v2181_v24, %v2179_v22 }
 0x289   : > { %1207 = vrot.lane.b32.xlu0 %v2181_v24, %s2325_s24  ;;  %v2185_v27 = vpop.eup %2184 }
 0x28a   : > { %v1301_v53 = vpack.c.bf16 %v2185_v27, %v2183_v26 }
 0x28b   : > { %1209 = vrot.lane.b32.xlu1 %v2183_v26, %s2325_s24 }
 0x28d   : > { %1211 = vrot.lane.b32.xlu0 %v2185_v27, %s2325_s24 }
 0x291   : > { %1310 = vrot.lane.b32.xlu0 %v1294_v28, %s2325_s24  ;;  %v1454_v28 = vsel %vm510_vm1, %v2752_v43, 0.0 }
 0x295   : > { %1312 = vrot.lane.b32.xlu0 %v1295_v63, %s2325_s24 }
 0x299   : > { %1314 = vrot.lane.b32.xlu0 %v1296_v29, %s2325_s24 }
 0x29d   : > { %1316 = vrot.lane.b32.xlu0 %v1297_v30, %s2325_s24 }
 0x2a1   : > { %1318 = vrot.lane.b32.xlu0 %v1298_v31, %s2325_s24 }
 0x2a5   : > { %1320 = vrot.lane.b32.xlu0 %v1299_v32, %s2325_s24 }
 0x2a9   : > { %1322 = vrot.lane.b32.xlu0 %v1300_v49, %s2325_s24 }
 0x2ad   : > { %1324 = vrot.lane.b32.xlu0 %v1301_v53, %s2325_s24  ;;  %s2008_s24 = sshll.u32 %s3211_s13, 4  ;;  %s3023_s13 = scalar_lea.vmem %s3203_s10, %s2433_s30 }
 0x2ae   : > { %s3011_s27 = scalar_lea.vmem %s3202_s9, %s2008_s24 }
 0x2af   : > { %587 = vst.msk [vmem:[%s3011_s27] sm:$0xff] %vm556_vm0, %v2322_v1  ;;  %588 = vst.msk [vmem:[%s3011_s27 + $0x8] sm:$0xff] %vm556_vm0, %v2322_v1 }
 0x2cc   : > { %1416 = vadd.xlane.f32.xlu0 %v1415_v55 }
 0x2d0   : > { %1419 = vadd.xlane.f32.xlu0 %v1418_v58 }
 0x2d4   : > { %1425 = vadd.xlane.f32.xlu0 %v1424_v12 }
 0x2d7   : > { %v1182_v23 = vpop.permute.xlu1 %1181 }
 0x2d8   : > { %1431 = vadd.xlane.f32.xlu0 %v1430_v21  ;;  %v1229_v33 = vmul.f32 %v1182_v23, %v2660_v3 }
 0x2d9   : > { %v1184_v25 = vpop.permute.xlu0 %1183 }
 0x2da   : > { %v1230_v35 = vmul.f32 %v1184_v25, %v2673_v8 }
 0x2db   : > { %v1186_v39 = vpop.permute.xlu1 %1185 }
 0x2dc   : > { %v1245_v40 = vpack.c.bf16 %v1230_v35, %v1229_v33  ;;  %1437 = vadd.xlane.f32.xlu0 %v1436_v36  ;;  %v1231_v46 = vmul.f32 %v2654_v0, %v1186_v39  ;;  %v1448_v0 = vsel %vm510_vm1, %v2762_v59, 0.0  ;;  %v1412_v33 = vsel %vm510_vm1, %v2664_v61, 0.0 }
 0x2dd   : > { %v1188_v45 = vpop.permute.xlu0 %1187  ;;  %v1427_v35 = vsel %vm510_vm1, %v2706_v15, 0.0  ;;  %v1439_v39 = vsel %vm510_vm1, %v2736_v51, 0.0 }
 0x2de   : > { %v1232_v50 = vmul.f32 %v2666_v62, %v1188_v45  ;;  %1261 = vrot.lane.b32.xlu1 %v1245_v40, %s2327_s28  ;;  %v1445_v40 = vsel %vm510_vm1, %v2727_v47, 0.0 }
 0x2e0   : > { %v1246_v54 = vpack.c.bf16 %v1232_v50, %v1231_v46  ;;  %1443 = vadd.xlane.f32.xlu0 %v1442_v52  ;;  %v1190_v3 = vpop.permute.xlu1 %1189  ;;  %v1451_v46 = vsel %vm510_vm1, %v2780_v14, 0.0  ;;  %v1457_v52 = vsel %vm510_vm1, %v2769_v9, 0.0 }
 0x2e1   : > { %v1233_v6 = vmul.f32 %v1190_v3, %v2688_v13 }
 0x2e2   : > { %v1192_v8 = vpop.permute.xlu0 %1191  ;;  %1263 = vrot.lane.b32.xlu1 %v1246_v54, %s2327_s28 }
 0x2e3   : > { %v1234_v18 = vmul.f32 %v1192_v8, %v2701_v20 }
 0x2e4   : > { %1449 = vadd.xlane.f32.xlu0 %v1448_v0  ;;  %v1194_v62 = vpop.permute.xlu1 %1193 }
 0x2e5   : > { %v1247_v22 = vpack.c.bf16 %v1234_v18, %v1233_v6  ;;  %v1235_v26 = vmul.f32 %v2682_v4, %v1194_v62 }
 0x2e6   : > { %v1196_v24 = vpop.permute.xlu0 %1195 }
 0x2e7   : > { %v1236_v27 = vmul.f32 %v2694_v17, %v1196_v24  ;;  %1265 = vrot.lane.b32.xlu1 %v1247_v22, %s2327_s28 }
 0x2e8   : > { %1455 = vadd.xlane.f32.xlu0 %v1454_v28 }
 0x2e9   : > { %v1248_v13 = vpack.c.bf16 %v1236_v27, %v1235_v26 }
 0x2eb   : > { %1267 = vrot.lane.b32.xlu1 %v1248_v13, %s2327_s28 }
 0x2f1   : > { %v1198_v20 = vpop.permute.xlu1 %1197 }
 0x2f2   : > { %v1237_v29 = vmul.f32 %v1198_v20, %v2716_v38 }
 0x2f3   : > { %v1200_v63 = vpop.permute.xlu0 %1199 }
 0x2f4   : > { %v1238_v30 = vmul.f32 %v1200_v63, %v2729_v48 }
 0x2f5   : > { %v1202_v31 = vpop.permute.xlu1 %1201 }
 0x2f6   : > { %v1249_v32 = vpack.c.bf16 %v1238_v30, %v1237_v29  ;;  %v1239_v17 = vmul.f32 %v2710_v34, %v1202_v31 }
 0x2f7   : > { %v1204_v4 = vpop.permute.xlu0 %1203 }
 0x2f8   : > { %v1240_v49 = vmul.f32 %v2722_v44, %v1204_v4  ;;  %1269 = vrot.lane.b32.xlu1 %v1249_v32, %s2327_s28  ;;  %v1343_v4 = vshrl.u32 %v589_v42, 7 }
 0x2f9   : > { %v1206_v53 = vpop.permute.xlu1 %1205 }
 0x2fa   : > { %v1250_v55 = vpack.c.bf16 %v1240_v49, %v1239_v17  ;;  %v1241_v12 = vmul.f32 %v1206_v53, %v2756_v57  ;;  %v1344_v53 = vadd.s32 8, %v1343_v4 }
 0x2fb   : > { %v1208_v58 = vpop.permute.xlu0 %1207 }
 0x2fc   : > { %v1242_v21 = vmul.f32 %v1208_v58, %v2773_v11  ;;  %1271 = vrot.lane.b32.xlu1 %v1250_v55, %s2327_s28  ;;  %v1421_v11 = vsel %vm510_vm1, %v2671_v7, 0.0  ;;  %v1985_v55 = vld [vmem:[%s464_s18] ss:$0 sm:$0xff] }
 0x2fd   : > { %v1210_v38 = vpop.permute.xlu1 %1209  ;;  %vm1350_vm15 = vcmp.eq.s32.totalorder %v1343_v4, %v1985_v55  ;;  %vm1351_vm11 = vcmp.eq.s32.totalorder %v1344_v53, %v1985_v55 }
 0x2fe   : > { %v1251_v48 = vpack.c.bf16 %v1242_v21, %v1241_v12  ;;  %v1243_v25 = vmul.f32 %v2748_v56, %v1210_v38  ;;  %vm1986_vm12 = vmpackc.low %vm1351_vm11, %vm1350_vm15  ;;  %v2328_v12 = vmov 1.0|1.0  }
 0x2ff   : > { %v1212_v23 = vpop.permute.xlu0 %1211 }
 0x300   : > { %v1244_v34 = vmul.f32 %v2764_v60, %v1212_v23  ;;  %1273 = vrot.lane.b32.xlu1 %v1251_v48, %s2327_s28  ;;  %v1433_v60 = vsel %vm510_vm1, %v2699_v19, 0.0 }
 0x302   : > { %v1252_v44 = vpack.c.bf16 %v1244_v34, %v1243_v25 }
 0x303   : > { %v1311_v57 = vpop.permute.xlu0 %1310 }
 0x304   : > { %1275 = vrot.lane.b32.xlu1 %v1252_v44, %s2327_s28 }
 0x307   : > { %v1313_v56 = vpop.permute.xlu0 %1312 }
 0x30b   : > { %v1315_v36 = vpop.permute.xlu0 %1314 }
 0x30f   : > { %v1317_v45 = vpop.permute.xlu0 %1316 }
 0x313   : > { %v1319_v50 = vpop.permute.xlu0 %1318 }
 0x317   : > { %v1321_v54 = vpop.permute.xlu0 %1320 }
 0x31b   : > { %v1323_v3 = vpop.permute.xlu0 %1322 }
 0x31f   : > { %v1325_v18 = vpop.permute.xlu0 %1324 }
 0x328   : > { %1413 = vadd.xlane.f32.xlu1 %v1412_v33 }
 0x32c   : > { %1422 = vadd.xlane.f32.xlu1 %v1421_v11 }
 0x330   : > { %1428 = vadd.xlane.f32.xlu1 %v1427_v35 }
 0x334   : > { %1434 = vadd.xlane.f32.xlu1 %v1433_v60 }
 0x338   : > { %1440 = vadd.xlane.f32.xlu1 %v1439_v39 }
 0x33c   : > { %1446 = vadd.xlane.f32.xlu1 %v1445_v40 }
 0x340   : > { %1452 = vadd.xlane.f32.xlu1 %v1451_v46 }
 0x344   : > { %1458 = vadd.xlane.f32.xlu1 %v1457_v52 }
 0x350   : > { %v1262_v8 = vpop.permute.xlu1 %1261 }
 0x351   : > { %1286 = vst.msk [vmem:[#allocation4] sm:$0xff] %vm510_vm1, %v1262_v8 }
 0x352   : > { %1334 = vst.msk [vmem:[#allocation4] sm:$0xff] %vm566_vm4, %v1311_v57 }
 0x354   : > { %v1264_v6 = vpop.permute.xlu1 %1263 }
 0x355   : > { %1287 = vst.msk [vmem:[#allocation4 + $0x8] sm:$0xff] %vm510_vm1, %v1264_v6 }
 0x356   : > { %1335 = vst.msk [vmem:[#allocation4 + $0x8] sm:$0xff] %vm566_vm4, %v1313_v56 }
 0x359   : > { %v1417_v0 = vpop.xlane.xlu0 %1416  ;;  %v1266_v62 = vpop.permute.xlu1 %1265  ;;  %v1357_v22 = vld [vmem:[#allocation4] sm:$0xff] }
 0x35a   : > { %v1462_v24 = vmul.f32 0.03125, %v1417_v0  ;;  %1288 = vst.msk [vmem:[#allocation4 + $0x10] sm:$0xff] %vm510_vm1, %v1266_v62  ;;  %2066 = vmatpush3.bf16.msra.mxu0 %v1357_v22 }
 0x35b   : > { %1336 = vst.msk [vmem:[#allocation4 + $0x10] sm:$0xff] %vm566_vm4, %v1315_v36  ;;  %2067 = vmatprep.subr.bf16.mxu0 %v2322_v1 }
 0x35c   : > { %v2874_v26 = vsub.f32 %v2678_v10, %v1462_v24 }
 0x35d   : > { %v1268_v27 = vpop.permute.xlu1 %1267  ;;  %v1358_v28 = vld [vmem:[#allocation4 + $0x8] sm:$0xff]  ;;  %v1420_v21 = vpop.xlane.xlu0 %1419 }
 0x35e   : > { %1289 = vst.msk [vmem:[#allocation4 + $0x18] sm:$0xff] %vm510_vm1, %v1268_v27  ;;  %2068 = vmatpush3.bf16.msra.mxu0 %v1358_v28  ;;  %v1494_v13 = vmul.f32 %v2874_v26, %v2874_v26  ;;  %v1463_v23 = vmul.f32 0.03125, %v1420_v21 }
 0x35f   : > { %1337 = vst.msk [vmem:[#allocation4 + $0x18] sm:$0xff] %vm566_vm4, %v1317_v45  ;;  %2069 = vmatprep.subr.bf16.mxu0 %v2322_v1 }
 0x360   : > { %v1512_v20 = vsel %vm510_vm1, %v1494_v13, 0.0  ;;  %v2905_v44 = vsub.f32 %v2658_v2, %v1463_v23 }
 0x361   : > { %1513 = vadd.xlane.f32.xlu1 %v1512_v20  ;;  %v1426_v38 = vpop.xlane.xlu0 %1425 }
 0x362   : > { %v1359_v63 = vld [vmem:[#allocation4 + $0x10] sm:$0xff]  ;;  %v1465_v57 = vmul.f32 0.03125, %v1426_v38  ;;  %v1495_v36 = vmul.f32 %v2905_v44, %v2905_v44 }
 0x363   : > { %2070 = vmatpush3.bf16.msra.mxu0 %v1359_v63 }
 0x364   : > { %2071 = vmatprep.subr.bf16.mxu0 %v2322_v1  ;;  %v2915_v39 = vsub.f32 %v2692_v16, %v1465_v57 }
 0x365   : > { %v1432_v48 = vpop.xlane.xlu0 %1431 }
 0x366   : > { %v1360_v10 = vld [vmem:[#allocation4 + $0x18] sm:$0xff]  ;;  %v1467_v40 = vmul.f32 0.03125, %v1432_v48  ;;  %v1497_v6 = vmul.f32 %v2915_v39, %v2915_v39 }
 0x367   : > { %2072 = vmatpush3.bf16.msra.mxu0 %v1360_v10 }
 0x368   : > { %2073 = vmatprep.subr.bf16.mxu0 %v2322_v1  ;;  %v2925_v8 = vsub.f32 %v2686_v5, %v1467_v40  ;;  %v1521_v27 = vsel %vm510_vm1, %v1497_v6, 0.0 }
 0x369   : > { %v1438_v33 = vpop.xlane.xlu0 %1437 }
 0x36a   : > { %v1270_v29 = vpop.permute.xlu1 %1269  ;;  %v1499_v13 = vmul.f32 %v2925_v8, %v2925_v8 }
 0x36b   : > { %1290 = vst.msk [vmem:[#allocation4 + $0x20] sm:$0xff] %vm510_vm1, %v1270_v29 }
 0x36c   : > { %1338 = vst.msk [vmem:[#allocation4 + $0x20] sm:$0xff] %vm566_vm4, %v1319_v50 }
 0x36d   : > { %v1444_v46 = vpop.xlane.xlu0 %1443 }
 0x36e   : > { %v1272_v30 = vpop.permute.xlu1 %1271  ;;  %v1471_v5 = vmul.f32 0.03125, %v1444_v46 }
 0x36f   : > { %1291 = vst.msk [vmem:[#allocation4 + $0x28] sm:$0xff] %vm510_vm1, %v1272_v30 }
 0x370   : > { %1339 = vst.msk [vmem:[#allocation4 + $0x28] sm:$0xff] %vm566_vm4, %v1321_v54  ;;  %v1469_v54 = vmul.f32 0.03125, %v1438_v33  ;;  %v2948_v10 = vsub.f32 %v2714_v37, %v1471_v5 }
 0x371   : > { %v1450_v24 = vpop.xlane.xlu0 %1449 }
 0x372   : > { %v1274_v31 = vpop.permute.xlu1 %1273  ;;  %v2936_v22 = vsub.f32 %v2720_v41, %v1469_v54  ;;  %v1473_v29 = vmul.f32 0.03125, %v1450_v24  ;;  %v1503_v55 = vmul.f32 %v2948_v10, %v2948_v10  ;;  %v2282_v24 = vld [vmem:[%s2475_s23 + $0x8] sm:$0xff] }
 0x373   : > { %1292 = vst.msk [vmem:[#allocation4 + $0x30] sm:$0xff] %vm510_vm1, %v1274_v31  ;;  %v1361_v32 = vld [vmem:[#allocation4 + $0x20] sm:$0xff]  ;;  %v1527_v31 = vsel %vm510_vm1, %v1499_v13, 0.0 }
 0x374   : > { %1340 = vst.msk [vmem:[#allocation4 + $0x30] sm:$0xff] %vm566_vm4, %v1323_v3  ;;  %2074 = vmatpush3.bf16.msra.mxu0 %v1361_v32  ;;  %v1515_v3 = vsel %vm510_vm1, %v1495_v36, 0.0  ;;  %v1539_v23 = vsel %vm510_vm1, %v1503_v55, 0.0  ;;  %v1355_v55 = vld [vmem:[%s3011_s27] sm:$0xff] }
 0x375   : > { %2075 = vmatprep.subr.bf16.mxu0 %v2322_v1  ;;  %v1456_v4 = vpop.xlane.xlu0 %1455 }
 0x376   : > { %v1276_v17 = vpop.permute.xlu1 %1275 }
 0x377   : > { %1293 = vst.msk [vmem:[#allocation4 + $0x38] sm:$0xff] %vm510_vm1, %v1276_v17  ;;  %v1362_v49 = vld [vmem:[#allocation4 + $0x28] sm:$0xff] }
 0x378   : > { %1341 = vst.msk [vmem:[#allocation4 + $0x38] sm:$0xff] %vm566_vm4, %v1325_v18  ;;  %2076 = vmatpush3.bf16.msra.mxu0 %v1362_v49 }
 0x379   : > { %2077 = vmatprep.subr.bf16.mxu0 %v2322_v1 }
 0x37b   : > { %v1363_v58 = vld [vmem:[#allocation4 + $0x30] sm:$0xff] }
 0x37c   : > { %2078 = vmatpush3.bf16.msra.mxu0 %v1363_v58  ;;  %v1475_v58 = vmul.f32 0.03125, %v1456_v4 }
 0x37d   : > { %2079 = vmatprep.subr.bf16.mxu0 %v2322_v1 }
 0x37f   : > { %v1364_v42 = vld [vmem:[#allocation4 + $0x38] sm:$0xff] }
 0x380   : > { %2080 = vmatpush3.bf16.msra.mxu0 %v1364_v42 }
 0x383   : > { %2082 = vmatmul.mubr.msk.bf16.vlgmr.msra.gmra.mrb[4].mxu0 %vm1986_vm12, %v2328_v12 }
 0x3b5   : > { %v1414_v25 = vpop.xlane.xlu1 %1413 }
 0x3b6   : > { %v1461_v34 = vmul.f32 0.03125, %v1414_v25  ;;  %v2973_v25 = vsub.f32 %v2752_v43, %v1475_v58 }
 0x3b8   : > { %v2908_v11 = vsub.f32 %v2664_v61, %v1461_v34 }
 0x3b9   : > { %v1423_v35 = vpop.xlane.xlu1 %1422 }
 0x3ba   : > { %v1464_v56 = vmul.f32 0.03125, %v1423_v35  ;;  %v1493_v60 = vmul.f32 %v2908_v11, %v2908_v11 }
 0x3bc   : > { %v2918_v2 = vsub.f32 %v2671_v7, %v1464_v56  ;;  %v1509_v45 = vsel %vm510_vm1, %v1493_v60, 0.0  ;;  %v1507_v60 = vmul.f32 %v2973_v25, %v2973_v25 }
 0x3bd   : > { %1510 = vadd.xlane.f32.xlu0 %v1509_v45  ;;  %v1429_v61 = vpop.xlane.xlu1 %1428 }
 0x3be   : > { %v1466_v50 = vmul.f32 0.03125, %v1429_v61  ;;  %v1496_v52 = vmul.f32 %v2918_v2, %v2918_v2  ;;  %v1551_v40 = vsel %vm510_vm1, %v1507_v60, 0.0 }
 0x3c0   : > { %v2928_v16 = vsub.f32 %v2706_v15, %v1466_v50  ;;  %v1518_v7 = vsel %vm510_vm1, %v1496_v52, 0.0  ;;  %v2997_v52 = vld [vmem:[%s3201_s8 + $0x1] ss:$0 sm:$0xff] }
 0x3c1   : > { %1516 = vadd.xlane.f32.xlu0 %v1515_v3  ;;  %1519 = vadd.xlane.f32.xlu1 %v1518_v7  ;;  %v1435_v18 = vpop.xlane.xlu1 %1434  ;;  %v3003_v3 = vld [vmem:[%s3201_s8 + $0x2] ss:$0 sm:$0xff] }
 0x3c2   : > { %v1468_v0 = vmul.f32 0.03125, %v1435_v18  ;;  %v1498_v62 = vmul.f32 %v2928_v16, %v2928_v16 }
 0x3c4   : > { %v2939_v15 = vsub.f32 %v2699_v19, %v1468_v0  ;;  %v1524_v28 = vsel %vm510_vm1, %v1498_v62, 0.0  ;;  %v1501_v19 = vmul.f32 %v2936_v22, %v2936_v22 }
 0x3c5   : > { %1522 = vadd.xlane.f32.xlu0 %v1521_v27  ;;  %1525 = vadd.xlane.f32.xlu1 %v1524_v28  ;;  %v1441_v20 = vpop.xlane.xlu1 %1440 }
 0x3c6   : > { %v1470_v63 = vmul.f32 0.03125, %v1441_v20  ;;  %v1500_v41 = vmul.f32 %v2939_v15, %v2939_v15  ;;  %v1533_v53 = vsel %vm510_vm1, %v1501_v19, 0.0 }
 0x3c8   : > { %v2953_v30 = vsub.f32 %v2736_v51, %v1470_v63  ;;  %v1530_v32 = vsel %vm510_vm1, %v1500_v41, 0.0  ;;  %v2963_v51 = vsub.f32 %v2762_v59, %v1473_v29 }
 0x3c9   : > { %1528 = vadd.xlane.f32.xlu0 %v1527_v31  ;;  %1531 = vadd.xlane.f32.xlu1 %v1530_v32  ;;  %v1447_v17 = vpop.xlane.xlu1 %1446 }
 0x3ca   : > { %v1472_v49 = vmul.f32 0.03125, %v1447_v17  ;;  %v1502_v37 = vmul.f32 %v2953_v30, %v2953_v30  ;;  %v1505_v34 = vmul.f32 %v2963_v51, %v2963_v51 }
 0x3cc   : > { %v2966_v42 = vsub.f32 %v2727_v47, %v1472_v49  ;;  %v1536_v12 = vsel %vm510_vm1, %v1502_v37, 0.0  ;;  %v1545_v43 = vsel %vm510_vm1, %v1505_v34, 0.0 }
 0x3cd   : > { %1534 = vadd.xlane.f32.xlu0 %v1533_v53  ;;  %1537 = vadd.xlane.f32.xlu1 %v1536_v12  ;;  %v1453_v21 = vpop.xlane.xlu1 %1452 }
 0x3ce   : > { %v1474_v38 = vmul.f32 0.03125, %v1453_v21  ;;  %v1504_v48 = vmul.f32 %v2966_v42, %v2966_v42 }
 0x3d0   : > { %v2976_v59 = vsub.f32 %v2780_v14, %v1474_v38  ;;  %v1542_v47 = vsel %vm510_vm1, %v1504_v48, 0.0 }
 0x3d1   : > { %1540 = vadd.xlane.f32.xlu0 %v1539_v23  ;;  %1543 = vadd.xlane.f32.xlu1 %v1542_v47  ;;  %v1459_v33 = vpop.xlane.xlu1 %1458  ;;  %v1356_v23 = vld [vmem:[%s3011_s27 + $0x8] sm:$0xff] }
 0x3d2   : > { %v1476_v57 = vmul.f32 0.03125, %v1459_v33  ;;  %v1506_v35 = vmul.f32 %v2976_v59, %v2976_v59 }
 0x3d4   : > { %v2984_v56 = vsub.f32 %v2769_v9, %v1476_v57  ;;  %v1548_v14 = vsel %vm510_vm1, %v1506_v35, 0.0 }
 0x3d5   : > { %1546 = vadd.xlane.f32.xlu0 %v1545_v43  ;;  %1549 = vadd.xlane.f32.xlu1 %v1548_v14 }
 0x3d6   : > { %v1508_v36 = vmul.f32 %v2984_v56, %v2984_v56 }
 0x3d8   : > { %v1554_v45 = vsel %vm510_vm1, %v1508_v36, 0.0 }
 0x3d9   : > { %1552 = vadd.xlane.f32.xlu0 %v1551_v40  ;;  %1555 = vadd.xlane.f32.xlu1 %v1554_v45 }
 0x3ee   : > { %v1514_v9 = vpop.xlane.xlu1 %1513 }
 0x3ef   : > { %v1558_v46 = vmul.f32 0.03125, %v1514_v9 }
 0x3f1   : > { %v1574_v61 = vadd.f32 1e-05, %v1558_v46 }
 0x3f3   : > { %2186 = vrsqrt.f32 %v1574_v61 }
 0x3fd   : > { %v2187_v50 = vpop.eup %2186 }
 0x3fe   : > { %v1606_v54 = vmul.f32 %v2187_v50, %v2874_v26 }
 0x400   : > { %v1626_v7 = vmul.f32 %v2997_v52, %v1606_v54 }
 0x402   : > { %v1646_v6 = vadd.f32 %v3003_v3, %v1626_v7 }
 0x404   : > { %v1991_v18 = vmul.f32 -1.442695, %v1646_v6 }
 0x406   : > { %2188 = vpow2.f32 %v1991_v18 }
 0x410   : > { %v2189_v0 = vpop.eup %2188 }
 0x411   : > { %v1710_v62 = vadd.f32 1.0, %v2189_v0 }
 0x413   : > { %2190 = vrcp.f32 %v1710_v62 }
 0x41d   : > { %v2191_v26 = vpop.eup %2190 }
 0x41e   : > { %v1758_v5 = vmul.f32 %v2191_v26, %v1646_v6 }
 0x420   : > { %v1774_v27 = vadd.f32 %v2282_v24, %v1758_v5 }
 0x422   : > { %1790 = vst.msk [vmem:[%s3023_s13 + $0x8] sm:$0xff] %vm510_vm1, %v1774_v27 }
 0x44a   : > { %v1511_v28 = vpop.xlane.xlu0 %1510 }
 0x44b   : > { %v1557_v13 = vmul.f32 0.03125, %v1511_v28 }
 0x44d   : > { %v1573_v20 = vadd.f32 1e-05, %v1557_v13 }
 0x44e   : > { %v1517_v63 = vpop.xlane.xlu0 %1516  ;;  %v1520_v41 = vpop.xlane.xlu1 %1519 }
 0x44f   : > { %2192 = vrsqrt.f32 %v1573_v20  ;;  %v1559_v1 = vmul.f32 0.03125, %v1517_v63  ;;  %v1560_v19 = vmul.f32 0.03125, %v1520_v41 }
 0x451   : > { %v1575_v29 = vadd.f32 1e-05, %v1559_v1  ;;  %v1576_v31 = vadd.f32 1e-05, %v1560_v19 }
 0x452   : > { %v1523_v32 = vpop.xlane.xlu0 %1522  ;;  %v1526_v4 = vpop.xlane.xlu1 %1525 }
 0x453   : > { %2194 = vrsqrt.f32 %v1575_v29  ;;  %v1561_v17 = vmul.f32 0.03125, %v1523_v32  ;;  %v1562_v49 = vmul.f32 0.03125, %v1526_v4 }
 0x454   : > { %2196 = vrsqrt.f32 %v1576_v31 }
 0x455   : > { %v1577_v37 = vadd.f32 1e-05, %v1561_v17  ;;  %v1578_v53 = vadd.f32 1e-05, %v1562_v49 }
 0x456   : > { %v1529_v58 = vpop.xlane.xlu0 %1528  ;;  %v1532_v12 = vpop.xlane.xlu1 %1531 }
 0x457   : > { %2198 = vrsqrt.f32 %v1577_v37  ;;  %v1563_v21 = vmul.f32 0.03125, %v1529_v58  ;;  %v1564_v38 = vmul.f32 0.03125, %v1532_v12  ;;  %v1399_v48 = vpop.f32.mrb[4].mxu0 }
 0x458   : > { %2200 = vrsqrt.f32 %v1578_v53  ;;  %v1406_v47 = vadd.f32 %v1399_v48, %v1355_v55  ;;  %v2083_v34 = vpop.f32.mrb[5].mxu0 }
 0x459   : > { %v2193_v33 = vpop.eup %2192  ;;  %v1579_v57 = vadd.f32 1e-05, %v1563_v21  ;;  %v1580_v35 = vadd.f32 1e-05, %v1564_v38  ;;  %v1402_v43 = vpop.f32.mrb[6].mxu0 }
 0x45a   : > { %v1605_v14 = vmul.f32 %v2193_v33, %v2908_v11  ;;  %v1535_v60 = vpop.xlane.xlu0 %1534  ;;  %v1538_v36 = vpop.xlane.xlu1 %1537  ;;  %1408 = vst.msk [vmem:[%s3011_s27] sm:$0xff] %vm556_vm0, %v1406_v47  ;;  %v1407_v40 = vadd.f32 %v1402_v43, %v1356_v23 }
 0x45b   : > { %2202 = vrsqrt.f32 %v1579_v57  ;;  %v1565_v45 = vmul.f32 0.03125, %v1535_v60  ;;  %v1566_v9 = vmul.f32 0.03125, %v1538_v36  ;;  %v2084_v46 = vpop.f32.mrb[7].mxu0 }
 0x45c   : > { %v1625_v61 = vmul.f32 %v2997_v52, %v1605_v14  ;;  %2204 = vrsqrt.f32 %v1580_v35  ;;  %1409 = vst.msk [vmem:[%s3011_s27 + $0x8] sm:$0xff] %vm556_vm0, %v1407_v40 }
 0x45d   : > { %v2195_v50 = vpop.eup %2194  ;;  %v1581_v54 = vadd.f32 1e-05, %v1565_v45  ;;  %v1582_v7 = vadd.f32 1e-05, %v1566_v9 }
 0x45e   : > { %v2197_v6 = vpop.eup %2196  ;;  %v3037_v11 = vadd.f32 %v3003_v3, %v1625_v61  ;;  %v1607_v18 = vmul.f32 %v2195_v50, %v2905_v44  ;;  %v1541_v0 = vpop.xlane.xlu0 %1540 }
 0x45f   : > { %v1544_v62 = vpop.xlane.xlu1 %1543  ;;  %v1608_v26 = vmul.f32 %v2197_v6, %v2918_v2  ;;  %2206 = vrsqrt.f32 %v1581_v54  ;;  %v1567_v5 = vmul.f32 0.03125, %v1541_v0 }
 0x460   : > { %v1568_v24 = vmul.f32 0.03125, %v1544_v62  ;;  %v1990_v27 = vmul.f32 -1.442695, %v3037_v11  ;;  %v1627_v28 = vmul.f32 %v2997_v52, %v1607_v18  ;;  %2208 = vrsqrt.f32 %v1582_v7 }
 0x461   : > { %v2199_v13 = vpop.eup %2198  ;;  %v1628_v20 = vmul.f32 %v2997_v52, %v1608_v26  ;;  %v1583_v63 = vadd.f32 1e-05, %v1567_v5 }
 0x462   : > { %v1584_v41 = vadd.f32 1e-05, %v1568_v24  ;;  %v2201_v1 = vpop.eup %2200  ;;  %2210 = vpow2.f32 %v1990_v27  ;;  %v3045_v44 = vadd.f32 %v3003_v3, %v1627_v28  ;;  %v1609_v2 = vmul.f32 %v2199_v13, %v2915_v39  ;;  %v1547_v19 = vpop.xlane.xlu0 %1546 }
 0x463   : > { %v1550_v29 = vpop.xlane.xlu1 %1549  ;;  %v3049_v31 = vadd.f32 %v3003_v3, %v1628_v20  ;;  %v1610_v32 = vmul.f32 %v2201_v1, %v2928_v16  ;;  %2212 = vrsqrt.f32 %v1583_v63  ;;  %v1569_v4 = vmul.f32 0.03125, %v1547_v19 }
 0x464   : > { %v1992_v17 = vmul.f32 -1.442695, %v3045_v44  ;;  %v1629_v49 = vmul.f32 %v2997_v52, %v1609_v2  ;;  %2214 = vrsqrt.f32 %v1584_v41  ;;  %v1570_v37 = vmul.f32 0.03125, %v1550_v29 }
 0x465   : > { %v2203_v53 = vpop.eup %2202  ;;  %v1993_v55 = vmul.f32 -1.442695, %v3049_v31  ;;  %v1630_v39 = vmul.f32 %v2997_v52, %v1610_v32  ;;  %v1585_v58 = vadd.f32 1e-05, %v1569_v4 }
 0x466   : > { %v2205_v12 = vpop.eup %2204  ;;  %2216 = vpow2.f32 %v1992_v17  ;;  %v3057_v21 = vadd.f32 %v3003_v3, %v1629_v49  ;;  %v1611_v16 = vmul.f32 %v2203_v53, %v2925_v8  ;;  %v1586_v38 = vadd.f32 1e-05, %v1570_v37  ;;  %v1553_v48 = vpop.xlane.xlu0 %1552 }
 0x467   : > { %v1556_v23 = vpop.xlane.xlu1 %1555  ;;  %2218 = vpow2.f32 %v1993_v55  ;;  %v3061_v47 = vadd.f32 %v3003_v3, %v1630_v39  ;;  %v1612_v34 = vmul.f32 %v2205_v12, %v2939_v15  ;;  %v1571_v33 = vmul.f32 0.03125, %v1553_v48 }
 0x468   : > { %v1994_v57 = vmul.f32 -1.442695, %v3057_v21  ;;  %v1631_v35 = vmul.f32 %v2997_v52, %v1611_v16  ;;  %2220 = vrsqrt.f32 %v1585_v58  ;;  %v1572_v43 = vmul.f32 0.03125, %v1556_v23 }
 0x469   : > { %v2207_v14 = vpop.eup %2206  ;;  %v1995_v60 = vmul.f32 -1.442695, %v3061_v47  ;;  %v1632_v8 = vmul.f32 %v2997_v52, %v1612_v34  ;;  %2222 = vrsqrt.f32 %v1586_v38  ;;  %v1587_v36 = vadd.f32 1e-05, %v1571_v33 }
 0x46a   : > { %v2209_v40 = vpop.eup %2208  ;;  %2224 = vpow2.f32 %v1994_v57  ;;  %v3069_v45 = vadd.f32 %v3003_v3, %v1631_v35  ;;  %v1613_v15 = vmul.f32 %v2207_v14, %v2936_v22  ;;  %v1588_v9 = vadd.f32 1e-05, %v1572_v43 }
 0x46b   : > { %2226 = vpow2.f32 %v1995_v60  ;;  %v3073_v46 = vadd.f32 %v3003_v3, %v1632_v8  ;;  %v1614_v61 = vmul.f32 %v2209_v40, %v2953_v30 }
 0x46c   : > { %v2211_v50 = vpop.eup %2210  ;;  %v1996_v54 = vmul.f32 -1.442695, %v3069_v45  ;;  %v1633_v7 = vmul.f32 %v2997_v52, %v1613_v15  ;;  %2228 = vrsqrt.f32 %v1587_v36  ;;  %v2283_v15 = vld [vmem:[%s2475_s23] sm:$0xff] }
 0x46d   : > { %v2213_v6 = vpop.eup %2212  ;;  %v1709_v18 = vadd.f32 1.0, %v2211_v50  ;;  %v1997_v0 = vmul.f32 -1.442695, %v3073_v46  ;;  %v1634_v62 = vmul.f32 %v2997_v52, %v1614_v61  ;;  %2230 = vrsqrt.f32 %v1588_v9 }
 0x46e   : > { %v2215_v22 = vpop.eup %2214  ;;  %2232 = vpow2.f32 %v1996_v54  ;;  %v3081_v26 = vadd.f32 %v3003_v3, %v1633_v7  ;;  %v1615_v30 = vmul.f32 %v2213_v6, %v2948_v10 }
 0x46f   : > { %2234 = vrcp.f32 %v1709_v18  ;;  %v3085_v5 = vadd.f32 %v3003_v3, %v1634_v62  ;;  %v1616_v24 = vmul.f32 %v2215_v22, %v2966_v42  ;;  %v2284_v62 = vld [vmem:[%s2475_s23 + $0x10] sm:$0xff] }
 0x470   : > { %v2217_v27 = vpop.eup %2216  ;;  %2236 = vpow2.f32 %v1997_v0  ;;  %v1998_v28 = vmul.f32 -1.442695, %v3081_v26  ;;  %v1635_v13 = vmul.f32 %v2997_v52, %v1615_v30 }
 0x471   : > { %v2219_v20 = vpop.eup %2218  ;;  %v1711_v63 = vadd.f32 1.0, %v2217_v27  ;;  %v1999_v41 = vmul.f32 -1.442695, %v3085_v5  ;;  %v1636_v1 = vmul.f32 %v2997_v52, %v1616_v24  ;;  %v2285_v27 = vld [vmem:[%s2475_s23 + $0x18] sm:$0xff] }
 0x472   : > { %v2221_v2 = vpop.eup %2220  ;;  %v1712_v10 = vadd.f32 1.0, %v2219_v20  ;;  %2238 = vpow2.f32 %v1998_v28  ;;  %v3093_v19 = vadd.f32 %v3003_v3, %v1635_v13 }
 0x473   : > { %v2223_v29 = vpop.eup %2222  ;;  %2240 = vrcp.f32 %v1711_v63  ;;  %v3096_v42 = vadd.f32 %v3003_v3, %v1636_v1  ;;  %v1617_v32 = vmul.f32 %v2221_v2, %v2963_v51 }
 0x474   : > { %v2225_v4 = vpop.eup %2224  ;;  %2242 = vrcp.f32 %v1712_v10  ;;  %v2000_v17 = vmul.f32 -1.442695, %v3093_v19  ;;  %v1618_v49 = vmul.f32 %v2223_v29, %v2976_v59  ;;  %v2287_v29 = vld [vmem:[%s2475_s23 + $0x28] sm:$0xff] }
 0x475   : > { %v2227_v37 = vpop.eup %2226  ;;  %v1713_v53 = vadd.f32 1.0, %v2225_v4  ;;  %2244 = vpow2.f32 %v1999_v41  ;;  %v2001_v55 = vmul.f32 -1.442695, %v3096_v42  ;;  %v1637_v39 = vmul.f32 %v2997_v52, %v1617_v32  ;;  %v2286_v41 = vld [vmem:[%s2475_s23 + $0x20] sm:$0xff] }
 0x476   : > { %v2229_v58 = vpop.eup %2228  ;;  %v1714_v12 = vadd.f32 1.0, %v2227_v37  ;;  %2246 = vpow2.f32 %v2000_v17  ;;  %v1638_v16 = vmul.f32 %v2997_v52, %v1618_v49  ;;  %v2288_v37 = vld [vmem:[%s2475_s23 + $0x30] sm:$0xff] }
 0x477   : > { %v2231_v38 = vpop.eup %2230  ;;  %2248 = vrcp.f32 %v1713_v53  ;;  %v3105_v51 = vadd.f32 %v3003_v3, %v1637_v39  ;;  %v1619_v48 = vmul.f32 %v2229_v58, %v2973_v25 }
 0x478   : > { %v2233_v59 = vpop.eup %2232  ;;  %2250 = vrcp.f32 %v1714_v12  ;;  %v3109_v23 = vadd.f32 %v3003_v3, %v1638_v16  ;;  %v1620_v34 = vmul.f32 %v2231_v38, %v2984_v56 }
 0x479   : > { %v2235_v33 = vpop.eup %2234  ;;  %v1715_v57 = vadd.f32 1.0, %v2233_v59  ;;  %2252 = vpow2.f32 %v2001_v55  ;;  %v2002_v35 = vmul.f32 -1.442695, %v3105_v51  ;;  %v1639_v43 = vmul.f32 %v2997_v52, %v1619_v48 }
 0x47a   : > { %v2237_v14 = vpop.eup %2236  ;;  %v1757_v60 = vmul.f32 %v2235_v33, %v3037_v11  ;;  %v2003_v25 = vmul.f32 -1.442695, %v3109_v23  ;;  %v1640_v8 = vmul.f32 %v2997_v52, %v1620_v34 }
 0x47b   : > { %2254 = vrcp.f32 %v1715_v57  ;;  %v1716_v36 = vadd.f32 1.0, %v2237_v14  ;;  %v3118_v40 = vadd.f32 %v3003_v3, %v1639_v43  ;;  %v2291_v14 = vld [vmem:[%s2475_s23 + $0x48] sm:$0xff] }
 0x47c   : > { %v2239_v56 = vpop.eup %2238  ;;  %v1773_v9 = vadd.f32 %v2283_v15, %v1757_v60  ;;  %2256 = vpow2.f32 %v2002_v35  ;;  %v3122_v61 = vadd.f32 %v3003_v3, %v1640_v8  ;;  %v2292_v8 = vld [vmem:[%s2475_s23 + $0x50] sm:$0xff]  ;;  %v2293_v15 = vld [vmem:[%s2475_s23 + $0x58] sm:$0xff] }
 0x47d   : > { %v2241_v50 = vpop.eup %2240  ;;  %2258 = vrcp.f32 %v1716_v36  ;;  %v1717_v11 = vadd.f32 1.0, %v2239_v56  ;;  %v2004_v54 = vmul.f32 -1.442695, %v3118_v40 }
 0x47e   : > { %v2243_v52 = vpop.eup %2242  ;;  %1789 = vst.msk [vmem:[%s3023_s13] sm:$0xff] %vm510_vm1, %v1773_v9  ;;  %v1759_v7 = vmul.f32 %v2241_v50, %v3045_v44  ;;  %2260 = vpow2.f32 %v2003_v25  ;;  %v2005_v6 = vmul.f32 -1.442695, %v3122_v61 }
 0x47f   : > { %v2245_v18 = vpop.eup %2244  ;;  %v1760_v0 = vmul.f32 %v2243_v52, %v3049_v31  ;;  %2262 = vrcp.f32 %v1717_v11  ;;  %v2294_v11 = vld [vmem:[%s2475_s23 + $0x60] sm:$0xff] }
 0x480   : > { %v2247_v3 = vpop.eup %2246  ;;  %v1775_v22 = vadd.f32 %v2284_v62, %v1759_v7  ;;  %v1718_v30 = vadd.f32 1.0, %v2245_v18  ;;  %2264 = vpow2.f32 %v2004_v54 }
 0x481   : > { %v2249_v24 = vpop.eup %2248  ;;  %v1776_v28 = vadd.f32 %v2285_v27, %v1760_v0  ;;  %v1719_v44 = vadd.f32 1.0, %v2247_v3  ;;  %2266 = vpow2.f32 %v2005_v6  ;;  %v2295_v6 = vld [vmem:[%s2475_s23 + $0x68] sm:$0xff]  ;;  %v2296_v3 = vld [vmem:[%s2475_s23 + $0x70] sm:$0xff] }
 0x482   : > { %v2251_v13 = vpop.eup %2250  ;;  %1791 = vst.msk [vmem:[%s3023_s13 + $0x10] sm:$0xff] %vm510_vm1, %v1775_v22  ;;  %v1761_v31 = vmul.f32 %v2249_v24, %v3057_v21  ;;  %2268 = vrcp.f32 %v1718_v30  ;;  %v2297_v22 = vld [vmem:[%s2475_s23 + $0x78] sm:$0xff] }
 0x483   : > { %v2253_v20 = vpop.eup %2252  ;;  %1792 = vst.msk [vmem:[%s3023_s13 + $0x18] sm:$0xff] %vm510_vm1, %v1776_v28  ;;  %v1762_v63 = vmul.f32 %v2251_v13, %v3061_v47  ;;  %2270 = vrcp.f32 %v1719_v44 }
 0x484   : > { %v1777_v1 = vadd.f32 %v2286_v41, %v1761_v31  ;;  %v1720_v2 = vadd.f32 1.0, %v2253_v20 }
 0x485   : > { %v2255_v10 = vpop.eup %2254  ;;  %v1778_v32 = vadd.f32 %v2287_v29, %v1762_v63 }
 0x486   : > { %v2257_v4 = vpop.eup %2256  ;;  %1793 = vst.msk [vmem:[%s3023_s13 + $0x20] sm:$0xff] %vm510_vm1, %v1777_v1  ;;  %v1763_v21 = vmul.f32 %v2255_v10, %v3069_v45  ;;  %2272 = vrcp.f32 %v1720_v2  ;;  %v2289_v45 = vld [vmem:[%s2475_s23 + $0x38] sm:$0xff] }
 0x487   : > { %v2259_v17 = vpop.eup %2258  ;;  %1794 = vst.msk [vmem:[%s3023_s13 + $0x28] sm:$0xff] %vm510_vm1, %v1778_v32  ;;  %v1721_v47 = vadd.f32 1.0, %v2257_v4 }
 0x488   : > { %v2261_v49 = vpop.eup %2260  ;;  %v1779_v53 = vadd.f32 %v2288_v37, %v1763_v21  ;;  %v1764_v55 = vmul.f32 %v2259_v17, %v3073_v46  ;;  %v2290_v46 = vld [vmem:[%s2475_s23 + $0x40] sm:$0xff] }
 0x489   : > { %v2263_v39 = vpop.eup %2262  ;;  %2274 = vrcp.f32 %v1721_v47  ;;  %v1722_v58 = vadd.f32 1.0, %v2261_v49 }
 0x48a   : > { %v2265_v12 = vpop.eup %2264  ;;  %1795 = vst.msk [vmem:[%s3023_s13 + $0x30] sm:$0xff] %vm510_vm1, %v1779_v53  ;;  %v1780_v16 = vadd.f32 %v2289_v45, %v1764_v55  ;;  %v1765_v38 = vmul.f32 %v2263_v39, %v3081_v26 }
 0x48b   : > { %v2267_v48 = vpop.eup %2266  ;;  %2276 = vrcp.f32 %v1722_v58  ;;  %v1723_v59 = vadd.f32 1.0, %v2265_v12 }
 0x48c   : > { %v2269_v34 = vpop.eup %2268  ;;  %1796 = vst.msk [vmem:[%s3023_s13 + $0x38] sm:$0xff] %vm510_vm1, %v1780_v16  ;;  %v1781_v33 = vadd.f32 %v2290_v46, %v1765_v38  ;;  %v1724_v57 = vadd.f32 1.0, %v2267_v48 }
 0x48d   : > { %v2271_v35 = vpop.eup %2270  ;;  %v1766_v43 = vmul.f32 %v2269_v34, %v3085_v5  ;;  %2278 = vrcp.f32 %v1723_v59 }
 0x48e   : > { %1797 = vst.msk [vmem:[%s3023_s13 + $0x40] sm:$0xff] %vm510_vm1, %v1781_v33  ;;  %v1767_v26 = vmul.f32 %v2271_v35, %v3093_v19  ;;  %2280 = vrcp.f32 %v1724_v57 }
 0x48f   : > { %v1782_v60 = vadd.f32 %v2291_v14, %v1766_v43 }
 0x490   : > { %v2273_v25 = vpop.eup %2272  ;;  %v1783_v36 = vadd.f32 %v2292_v8, %v1767_v26 }
 0x491   : > { %1798 = vst.msk [vmem:[%s3023_s13 + $0x48] sm:$0xff] %vm510_vm1, %v1782_v60  ;;  %v1768_v56 = vmul.f32 %v2273_v25, %v3096_v42 }
 0x492   : > { %1799 = vst.msk [vmem:[%s3023_s13 + $0x50] sm:$0xff] %vm510_vm1, %v1783_v36 }
 0x493   : > { %v2275_v5 = vpop.eup %2274  ;;  %v1784_v19 = vadd.f32 %v2293_v15, %v1768_v56 }
 0x494   : > { %v1769_v9 = vmul.f32 %v2275_v5, %v3105_v51 }
 0x495   : > { %v2277_v50 = vpop.eup %2276  ;;  %1800 = vst.msk [vmem:[%s3023_s13 + $0x58] sm:$0xff] %vm510_vm1, %v1784_v19 }
 0x496   : > { %v1785_v54 = vadd.f32 %v2294_v11, %v1769_v9  ;;  %v1770_v52 = vmul.f32 %v2277_v50, %v3109_v23 }
 0x497   : > { %v2279_v42 = vpop.eup %2278 }
 0x498   : > { %v2281_v7 = vpop.eup %2280  ;;  %1801 = vst.msk [vmem:[%s3023_s13 + $0x60] sm:$0xff] %vm510_vm1, %v1785_v54  ;;  %v1786_v18 = vadd.f32 %v2295_v6, %v1770_v52  ;;  %v1771_v0 = vmul.f32 %v2279_v42, %v3118_v40 }
 0x499   : > { %v1772_v51 = vmul.f32 %v2281_v7, %v3122_v61 }
 0x49a   : > { %1802 = vst.msk [vmem:[%s3023_s13 + $0x68] sm:$0xff] %vm510_vm1, %v1786_v18  ;;  %v1787_v62 = vadd.f32 %v2296_v3, %v1771_v0 }
 0x49b   : > { %v1788_v30 = vadd.f32 %v2297_v22, %v1772_v51 }
 0x49c   : > { %1803 = vst.msk [vmem:[%s3023_s13 + $0x70] sm:$0xff] %vm510_vm1, %v1787_v62 }
 0x49d   : > { %1804 = vst.msk [vmem:[%s3023_s13 + $0x78] sm:$0xff] %vm510_vm1, %v1788_v30 }
 0x49e PF: > { %s21_s15 = sadd.s32 1, %s2320_s15   ;;  %s3204_s13 = smov %s2316_s14 }
 0x49f   : > { %p18_p6 = scmp.ge.s32.totalorder %s21_s15, 4   ;;  %s3205_s14 = smov %s3207_s16 }
 0x4a1   :  { %20 = sbr.rel (!%p18_p6) target bundleno = 2 (0x2), region = 111 }

</bundles_post_ra>
